<compile_context>
chip_gen: v7x
topology: tpu7x:2x2x1
jax: 0.10.0
libtpu: 0.0.40
codegen_flags: <defaults>
</compile_context>

<pallas_src>
import functools

import jax
import jax.numpy as jnp
import numpy as np
from jax import lax
from jax.experimental import pallas as pl
from jax.experimental.pallas import tpu as pltpu


def _sppf_kernel(x_ref, w1_ref, s1_ref, b1_ref, w2_ref, s2_ref, b2_ref, o_ref,
                 *, H, W):
    """One batch element per grid step; spatial dims flattened to H*W.

    x_ref:          (1, H*W, C1)   channel-last input, spatially flattened
    w1_ref:         (C1, C_)       cv1 1x1 conv weight (matmul layout)
    s1_ref, b1_ref: (1, C_)        fused BN scale / bias for cv1
    w2_ref:         (4*C_, C2)     cv2 1x1 conv weight (matmul layout)
    s2_ref, b2_ref: (1, C2)        fused BN scale / bias for cv2
    o_ref:          (1, H*W, C2)
    """
    C_ = w1_ref.shape[1]

    # cv1: 1x1 conv == one K-dense matmul over channels, f32 accumulation,
    # fused BN scale/bias + SiLU.
    a = jnp.dot(x_ref[0], w1_ref[...], preferred_element_type=jnp.float32)
    a = a * s1_ref[...] + b1_ref[...]
    x0 = a * jax.nn.sigmoid(a)                          # (H*W, C_) f32

    x0_hwc = x0.reshape(H, W, C_)                       # spatial view for pooling

    def maxpool5(t):
        # 5x5 max pool, stride 1, implicit -inf padding of 2 (PyTorch
        # MaxPool2d semantics), computed separably: rows then columns.
        ninf_rows = jnp.full((2, W, C_), -jnp.inf, dtype=t.dtype)
        tp = jnp.concatenate([ninf_rows, t, ninf_rows], axis=0)   # (H+4, W, C_)
        v = tp[0:H]
        for dy in range(1, 5):                                    # outer-dim slices: free views
            v = jnp.maximum(v, tp[dy:dy + H])                     # (H, W, C_)
        ninf_cols = jnp.full((H, 2, C_), -jnp.inf, dtype=t.dtype)
        vp = jnp.concatenate([ninf_cols, v, ninf_cols], axis=1)   # (H, W+4, C_)
        out = vp[:, 0:W]
        for dx in range(1, 5):
            out = jnp.maximum(out, vp[:, dx:dx + W])              # (H, W, C_)
        return out

    y1 = maxpool5(x0_hwc)
    y2 = maxpool5(y1)
    y3 = maxpool5(y2)

    # Lane (channel) concat of the 4 pyramid branches -> single matmul for cv2.
    cat = jnp.concatenate([x0_hwc, y1, y2, y3], axis=-1)          # (H, W, 4*C_)
    cat = cat.reshape(H * W, 4 * C_)

    b = jnp.dot(cat, w2_ref[...], preferred_element_type=jnp.float32)
    b = b * s2_ref[...] + b2_ref[...]
    out = b * jax.nn.sigmoid(b)                                   # (H*W, C2)

    o_ref[0] = out.astype(o_ref.dtype)


def sppf_forward(x_nchw, w1, g1, beta1, m1, v1, w2, g2, beta2, m2, v2, eps=1e-5):
    """SPPF forward.  x_nchw: (N, C1, H, W) -> (N, C2, H, W)."""
    N, C1, H, W = x_nchw.shape
    C_ = w1.shape[0]
    C2 = w2.shape[0]
    assert w1.shape == (C_, C1, 1, 1)
    assert w2.shape == (C2, 4 * C_, 1, 1)

    # NCHW -> (N, H*W, C): channels sit on the (fast) lane axis.
    x = jnp.transpose(x_nchw, (0, 2, 3, 1)).reshape(N, H * W, C1)

    # 1x1 conv weights as (Cin, Cout) matmul operands.
    w1_m = w1.reshape(C_, C1).T                 # (C1, C_)
    w2_m = w2.reshape(C2, 4 * C_).T             # (4*C_, C2)

    # Fused inference BatchNorm: y = conv(x) * scale + bias.
    s1 = g1 / jnp.sqrt(v1 + eps)
    b1 = beta1 - m1 * s1
    s2 = g2 / jnp.sqrt(v2 + eps)
    b2 = beta2 - m2 * s2

    kernel = functools.partial(_sppf_kernel, H=H, W=W)

    out = pl.pallas_call(
        kernel,
        out_shape=jax.ShapeDtypeStruct((N, H * W, C2), x.dtype),
        grid=(N,),
        in_specs=[
            pl.BlockSpec((1, H * W, C1), lambda n: (n, 0, 0)),
            pl.BlockSpec((C1, C_), lambda n: (0, 0)),
            pl.BlockSpec((1, C_), lambda n: (0, 0)),
            pl.BlockSpec((1, C_), lambda n: (0, 0)),
            pl.BlockSpec((4 * C_, C2), lambda n: (0, 0)),
            pl.BlockSpec((1, C2), lambda n: (0, 0)),
            pl.BlockSpec((1, C2), lambda n: (0, 0)),
        ],
        out_specs=pl.BlockSpec((1, H * W, C2), lambda n: (n, 0, 0)),
        compiler_params=pltpu.CompilerParams(
            dimension_semantics=("parallel",),
            vmem_limit_bytes=32 * 1024 * 1024),
    )(x, w1_m, s1.reshape(1, C_), b1.reshape(1, C_),
      w2_m, s2.reshape(1, C2), b2.reshape(1, C2))

    # (N, H*W, C2) -> NCHW to match the PyTorch convention.
    return jnp.transpose(out.reshape(N, H, W, C2), (0, 3, 1, 2))


def sppf_reference(x, w1, g1, beta1, m1, v1, w2, g2, beta2, m2, v2, eps=1e-5):
    """Pure-JAX reference (no Pallas) for correctness checking."""
    def conv_bn_silu(t, w, g, b, m, v):
        y = lax.conv_general_dilated(
            t, w, window_strides=(1, 1), padding=((0, 0), (0, 0)),
            dimension_numbers=("NCHW", "OIHW", "NCHW"))
        s = (g / jnp.sqrt(v + eps)).reshape(1, -1, 1, 1)
        bias = (b - m * g / jnp.sqrt(v + eps)).reshape(1, -1, 1, 1)
        y = y * s + bias
        return y * jax.nn.sigmoid(y)

    def maxpool5(t):
        return lax.reduce_window(
            t, -jnp.inf, lax.max,
            window_dimensions=(1, 1, 5, 5), window_strides=(1, 1, 1, 1),
            padding=((0, 0), (0, 0), (2, 2), (2, 2)))

    x0 = conv_bn_silu(x, w1, g1, beta1, m1, v1)
    y1 = maxpool5(x0)
    y2 = maxpool5(y1)
    y3 = maxpool5(y2)
    return conv_bn_silu(jnp.concatenate([x0, y1, y2, y3], axis=1),
                        w2, g2, beta2, m2, v2)


if __name__ == "__main__":
    # Small deterministic problem: N=2, c1=8 (-> c_=4), c2=16, H=W=16.
    N, C1, C2, H, W = 2, 8, 16, 16, 16
    C_ = C1 // 2

    key = jax.random.PRNGKey(0)
    keys = jax.random.split(key, 11)

    x = jax.random.normal(keys[0], (N, C1, H, W), dtype=jnp.float32)
    # cv1: Conv2d(c1, c_, 1, bias=False) weight + BatchNorm2d(c_) params/stats.
    w1 = jax.random.normal(keys[1], (C_, C1, 1, 1), dtype=jnp.float32) * 0.1
    g1 = 1.0 + 0.1 * jax.random.normal(keys[2], (C_,), dtype=jnp.float32)
    beta1 = 0.1 * jax.random.normal(keys[3], (C_,), dtype=jnp.float32)
    m1 = 0.1 * jax.random.normal(keys[4], (C_,), dtype=jnp.float32)
    v1 = jnp.abs(1.0 + 0.1 * jax.random.normal(keys[5], (C_,), dtype=jnp.float32))
    # cv2: Conv2d(4*c_, c2, 1, bias=False) weight + BatchNorm2d(c2) params/stats.
    w2 = jax.random.normal(keys[6], (C2, 4 * C_, 1, 1), dtype=jnp.float32) * 0.1
    g2 = 1.0 + 0.1 * jax.random.normal(keys[7], (C2,), dtype=jnp.float32)
    beta2 = 0.1 * jax.random.normal(keys[8], (C2,), dtype=jnp.float32)
    m2 = 0.1 * jax.random.normal(keys[9], (C2,), dtype=jnp.float32)
    v2 = jnp.abs(1.0 + 0.1 * jax.random.normal(keys[10], (C2,), dtype=jnp.float32))

    out = sppf_forward(x, w1, g1, beta1, m1, v1, w2, g2, beta2, m2, v2)
    out = jax.block_until_ready(out)

    ref = sppf_reference(x, w1, g1, beta1, m1, v1, w2, g2, beta2, m2, v2)
    ref = jax.block_until_ready(ref)

    assert out.shape == (N, C2, H, W), out.shape
    np.testing.assert_allclose(np.asarray(out), np.asarray(ref),
                               rtol=1e-5, atol=1e-5)
    print("KERNEL_OK")
</pallas_src>

<mosaic_0001>
module attributes {stable_mosaic.version = 11 : i64} {
  func.func @_sppf_kernel(%arg0: i32, %arg1: memref<1x256x8xf32, #tpu.memory_space<vmem>>, %arg2: memref<8x4xf32, #tpu.memory_space<vmem>>, %arg3: memref<1x4xf32, #tpu.memory_space<vmem>>, %arg4: memref<1x4xf32, #tpu.memory_space<vmem>>, %arg5: memref<16x16xf32, #tpu.memory_space<vmem>>, %arg6: memref<1x16xf32, #tpu.memory_space<vmem>>, %arg7: memref<1x16xf32, #tpu.memory_space<vmem>>, %arg8: memref<1x256x16xf32, #tpu.memory_space<vmem>>) attributes {dimension_semantics = [#tpu.dimension_semantics<parallel>], iteration_bounds = array<i64: 2>, scalar_prefetch = 0 : i64, scratch_operands = 0 : i64, tpu.core_type = #tpu.core_type<tc>, window_params = [{transform_indices = @transform_0, window_bounds = array<i64: 1, 256, 8>}, {pipeline_mode = #tpu.pipeline_mode<synchronous>, transform_indices = @transform_1, window_bounds = array<i64: 8, 4>}, {pipeline_mode = #tpu.pipeline_mode<synchronous>, transform_indices = @transform_2, window_bounds = array<i64: 1, 4>}, {pipeline_mode = #tpu.pipeline_mode<synchronous>, transform_indices = @transform_3, window_bounds = array<i64: 1, 4>}, {pipeline_mode = #tpu.pipeline_mode<synchronous>, transform_indices = @transform_4, window_bounds = array<i64: 16, 16>}, {pipeline_mode = #tpu.pipeline_mode<synchronous>, transform_indices = @transform_5, window_bounds = array<i64: 1, 16>}, {pipeline_mode = #tpu.pipeline_mode<synchronous>, transform_indices = @transform_6, window_bounds = array<i64: 1, 16>}, {transform_indices = @transform_7, window_bounds = array<i64: 1, 256, 16>}]} {
    %c0 = arith.constant 0 : index
    %c0_0 = arith.constant 0 : index
    %c0_1 = arith.constant 0 : index
    %0 = vector.load %arg1[%c0, %c0_0, %c0_1] : memref<1x256x8xf32, #tpu.memory_space<vmem>>, vector<1x256x8xf32>
    %1 = vector.shape_cast %0 : vector<1x256x8xf32> to vector<256x8xf32>
    %c0_2 = arith.constant 0 : index
    %c0_3 = arith.constant 0 : index
    %2 = vector.load %arg2[%c0_2, %c0_3] : memref<8x4xf32, #tpu.memory_space<vmem>>, vector<8x4xf32>
    %cst = arith.constant dense<0.000000e+00> : vector<256x4xf32>
    %3 = tpu.matmul %1, %2, %cst {dimension_numbers = #tpu.dot_dimension_numbers<[1], [0], [0], [1], [0, 0, 1, 1], [], []>} : vector<256x8xf32>, vector<8x4xf32>, vector<256x4xf32> -> vector<256x4xf32>
    %c0_4 = arith.constant 0 : index
    %c0_5 = arith.constant 0 : index
    %4 = vector.load %arg3[%c0_4, %c0_5] : memref<1x4xf32, #tpu.memory_space<vmem>>, vector<1x4xf32>
    %5 = vector.broadcast %4 : vector<1x4xf32> to vector<256x4xf32>
    %6 = arith.mulf %3, %5 : vector<256x4xf32>
    %c0_6 = arith.constant 0 : index
    %c0_7 = arith.constant 0 : index
    %7 = vector.load %arg4[%c0_6, %c0_7] : memref<1x4xf32, #tpu.memory_space<vmem>>, vector<1x4xf32>
    %8 = vector.broadcast %7 : vector<1x4xf32> to vector<256x4xf32>
    %9 = arith.addf %6, %8 : vector<256x4xf32>
    %10 = arith.negf %9 : vector<256x4xf32>
    %11 = math.exp %10 : vector<256x4xf32>
    %cst_8 = arith.constant 1.000000e+00 : f32
    %12 = vector.broadcast %cst_8 : f32 to vector<256x4xf32>
    %13 = arith.addf %12, %11 : vector<256x4xf32>
    %14 = arith.divf %12, %13 : vector<256x4xf32>
    %15 = arith.mulf %9, %14 : vector<256x4xf32>
    %16 = vector.shape_cast %15 : vector<256x4xf32> to vector<16x16x4xf32>
    %cst_9 = arith.constant 0xFF800000 : f32
    %17 = vector.broadcast %cst_9 : f32 to vector<2x16x4xf32>
    %18 = tpu.concatenate %17, %16, %17 in 0 : vector<2x16x4xf32>, vector<16x16x4xf32>, vector<2x16x4xf32> -> vector<20x16x4xf32>
    %19 = vector.extract_strided_slice %18 {offsets = [0, 0, 0], sizes = [16, 16, 4], strides = [1, 1, 1]} : vector<20x16x4xf32> to vector<16x16x4xf32>
    %20 = vector.extract_strided_slice %18 {offsets = [1, 0, 0], sizes = [16, 16, 4], strides = [1, 1, 1]} : vector<20x16x4xf32> to vector<16x16x4xf32>
    %21 = arith.maximumf %19, %20 : vector<16x16x4xf32>
    %22 = vector.extract_strided_slice %18 {offsets = [2, 0, 0], sizes = [16, 16, 4], strides = [1, 1, 1]} : vector<20x16x4xf32> to vector<16x16x4xf32>
    %23 = arith.maximumf %21, %22 : vector<16x16x4xf32>
    %24 = vector.extract_strided_slice %18 {offsets = [3, 0, 0], sizes = [16, 16, 4], strides = [1, 1, 1]} : vector<20x16x4xf32> to vector<16x16x4xf32>
    %25 = arith.maximumf %23, %24 : vector<16x16x4xf32>
    %26 = vector.extract_strided_slice %18 {offsets = [4, 0, 0], sizes = [16, 16, 4], strides = [1, 1, 1]} : vector<20x16x4xf32> to vector<16x16x4xf32>
    %27 = arith.maximumf %25, %26 : vector<16x16x4xf32>
    %cst_10 = arith.constant 0xFF800000 : f32
    %28 = vector.broadcast %cst_10 : f32 to vector<16x2x4xf32>
    %29 = tpu.concatenate %28, %27, %28 in 1 : vector<16x2x4xf32>, vector<16x16x4xf32>, vector<16x2x4xf32> -> vector<16x20x4xf32>
    %30 = vector.extract_strided_slice %29 {offsets = [0, 0, 0], sizes = [16, 16, 4], strides = [1, 1, 1]} : vector<16x20x4xf32> to vector<16x16x4xf32>
    %31 = vector.extract_strided_slice %29 {offsets = [0, 1, 0], sizes = [16, 16, 4], strides = [1, 1, 1]} : vector<16x20x4xf32> to vector<16x16x4xf32>
    %32 = arith.maximumf %30, %31 : vector<16x16x4xf32>
    %33 = vector.extract_strided_slice %29 {offsets = [0, 2, 0], sizes = [16, 16, 4], strides = [1, 1, 1]} : vector<16x20x4xf32> to vector<16x16x4xf32>
    %34 = arith.maximumf %32, %33 : vector<16x16x4xf32>
    %35 = vector.extract_strided_slice %29 {offsets = [0, 3, 0], sizes = [16, 16, 4], strides = [1, 1, 1]} : vector<16x20x4xf32> to vector<16x16x4xf32>
    %36 = arith.maximumf %34, %35 : vector<16x16x4xf32>
    %37 = vector.extract_strided_slice %29 {offsets = [0, 4, 0], sizes = [16, 16, 4], strides = [1, 1, 1]} : vector<16x20x4xf32> to vector<16x16x4xf32>
    %38 = arith.maximumf %36, %37 : vector<16x16x4xf32>
    %cst_11 = arith.constant 0xFF800000 : f32
    %39 = vector.broadcast %cst_11 : f32 to vector<2x16x4xf32>
    %40 = tpu.concatenate %39, %38, %39 in 0 : vector<2x16x4xf32>, vector<16x16x4xf32>, vector<2x16x4xf32> -> vector<20x16x4xf32>
    %41 = vector.extract_strided_slice %40 {offsets = [0, 0, 0], sizes = [16, 16, 4], strides = [1, 1, 1]} : vector<20x16x4xf32> to vector<16x16x4xf32>
    %42 = vector.extract_strided_slice %40 {offsets = [1, 0, 0], sizes = [16, 16, 4], strides = [1, 1, 1]} : vector<20x16x4xf32> to vector<16x16x4xf32>
    %43 = arith.maximumf %41, %42 : vector<16x16x4xf32>
    %44 = vector.extract_strided_slice %40 {offsets = [2, 0, 0], sizes = [16, 16, 4], strides = [1, 1, 1]} : vector<20x16x4xf32> to vector<16x16x4xf32>
    %45 = arith.maximumf %43, %44 : vector<16x16x4xf32>
    %46 = vector.extract_strided_slice %40 {offsets = [3, 0, 0], sizes = [16, 16, 4], strides = [1, 1, 1]} : vector<20x16x4xf32> to vector<16x16x4xf32>
    %47 = arith.maximumf %45, %46 : vector<16x16x4xf32>
    %48 = vector.extract_strided_slice %40 {offsets = [4, 0, 0], sizes = [16, 16, 4], strides = [1, 1, 1]} : vector<20x16x4xf32> to vector<16x16x4xf32>
    %49 = arith.maximumf %47, %48 : vector<16x16x4xf32>
    %cst_12 = arith.constant 0xFF800000 : f32
    %50 = vector.broadcast %cst_12 : f32 to vector<16x2x4xf32>
    %51 = tpu.concatenate %50, %49, %50 in 1 : vector<16x2x4xf32>, vector<16x16x4xf32>, vector<16x2x4xf32> -> vector<16x20x4xf32>
    %52 = vector.extract_strided_slice %51 {offsets = [0, 0, 0], sizes = [16, 16, 4], strides = [1, 1, 1]} : vector<16x20x4xf32> to vector<16x16x4xf32>
    %53 = vector.extract_strided_slice %51 {offsets = [0, 1, 0], sizes = [16, 16, 4], strides = [1, 1, 1]} : vector<16x20x4xf32> to vector<16x16x4xf32>
    %54 = arith.maximumf %52, %53 : vector<16x16x4xf32>
    %55 = vector.extract_strided_slice %51 {offsets = [0, 2, 0], sizes = [16, 16, 4], strides = [1, 1, 1]} : vector<16x20x4xf32> to vector<16x16x4xf32>
    %56 = arith.maximumf %54, %55 : vector<16x16x4xf32>
    %57 = vector.extract_strided_slice %51 {offsets = [0, 3, 0], sizes = [16, 16, 4], strides = [1, 1, 1]} : vector<16x20x4xf32> to vector<16x16x4xf32>
    %58 = arith.maximumf %56, %57 : vector<16x16x4xf32>
    %59 = vector.extract_strided_slice %51 {offsets = [0, 4, 0], sizes = [16, 16, 4], strides = [1, 1, 1]} : vector<16x20x4xf32> to vector<16x16x4xf32>
    %60 = arith.maximumf %58, %59 : vector<16x16x4xf32>
    %cst_13 = arith.constant 0xFF800000 : f32
    %61 = vector.broadcast %cst_13 : f32 to vector<2x16x4xf32>
    %62 = tpu.concatenate %61, %60, %61 in 0 : vector<2x16x4xf32>, vector<16x16x4xf32>, vector<2x16x4xf32> -> vector<20x16x4xf32>
    %63 = vector.extract_strided_slice %62 {offsets = [0, 0, 0], sizes = [16, 16, 4], strides = [1, 1, 1]} : vector<20x16x4xf32> to vector<16x16x4xf32>
    %64 = vector.extract_strided_slice %62 {offsets = [1, 0, 0], sizes = [16, 16, 4], strides = [1, 1, 1]} : vector<20x16x4xf32> to vector<16x16x4xf32>
    %65 = arith.maximumf %63, %64 : vector<16x16x4xf32>
    %66 = vector.extract_strided_slice %62 {offsets = [2, 0, 0], sizes = [16, 16, 4], strides = [1, 1, 1]} : vector<20x16x4xf32> to vector<16x16x4xf32>
    %67 = arith.maximumf %65, %66 : vector<16x16x4xf32>
    %68 = vector.extract_strided_slice %62 {offsets = [3, 0, 0], sizes = [16, 16, 4], strides = [1, 1, 1]} : vector<20x16x4xf32> to vector<16x16x4xf32>
    %69 = arith.maximumf %67, %68 : vector<16x16x4xf32>
    %70 = vector.extract_strided_slice %62 {offsets = [4, 0, 0], sizes = [16, 16, 4], strides = [1, 1, 1]} : vector<20x16x4xf32> to vector<16x16x4xf32>
    %71 = arith.maximumf %69, %70 : vector<16x16x4xf32>
    %cst_14 = arith.constant 0xFF800000 : f32
    %72 = vector.broadcast %cst_14 : f32 to vector<16x2x4xf32>
    %73 = tpu.concatenate %72, %71, %72 in 1 : vector<16x2x4xf32>, vector<16x16x4xf32>, vector<16x2x4xf32> -> vector<16x20x4xf32>
    %74 = vector.extract_strided_slice %73 {offsets = [0, 0, 0], sizes = [16, 16, 4], strides = [1, 1, 1]} : vector<16x20x4xf32> to vector<16x16x4xf32>
    %75 = vector.extract_strided_slice %73 {offsets = [0, 1, 0], sizes = [16, 16, 4], strides = [1, 1, 1]} : vector<16x20x4xf32> to vector<16x16x4xf32>
    %76 = arith.maximumf %74, %75 : vector<16x16x4xf32>
    %77 = vector.extract_strided_slice %73 {offsets = [0, 2, 0], sizes = [16, 16, 4], strides = [1, 1, 1]} : vector<16x20x4xf32> to vector<16x16x4xf32>
    %78 = arith.maximumf %76, %77 : vector<16x16x4xf32>
    %79 = vector.extract_strided_slice %73 {offsets = [0, 3, 0], sizes = [16, 16, 4], strides = [1, 1, 1]} : vector<16x20x4xf32> to vector<16x16x4xf32>
    %80 = arith.maximumf %78, %79 : vector<16x16x4xf32>
    %81 = vector.extract_strided_slice %73 {offsets = [0, 4, 0], sizes = [16, 16, 4], strides = [1, 1, 1]} : vector<16x20x4xf32> to vector<16x16x4xf32>
    %82 = arith.maximumf %80, %81 : vector<16x16x4xf32>
    %83 = tpu.concatenate %16, %38, %60, %82 in 2 : vector<16x16x4xf32>, vector<16x16x4xf32>, vector<16x16x4xf32>, vector<16x16x4xf32> -> vector<16x16x16xf32>
    %84 = vector.shape_cast %83 : vector<16x16x16xf32> to vector<256x16xf32>
    %c0_15 = arith.constant 0 : index
    %c0_16 = arith.constant 0 : index
    %85 = vector.load %arg5[%c0_15, %c0_16] : memref<16x16xf32, #tpu.memory_space<vmem>>, vector<16x16xf32>
    %cst_17 = arith.constant dense<0.000000e+00> : vector<256x16xf32>
    %86 = tpu.matmul %84, %85, %cst_17 {dimension_numbers = #tpu.dot_dimension_numbers<[1], [0], [0], [1], [0, 0, 1, 1], [], []>} : vector<256x16xf32>, vector<16x16xf32>, vector<256x16xf32> -> vector<256x16xf32>
    %c0_18 = arith.constant 0 : index
    %c0_19 = arith.constant 0 : index
    %87 = vector.load %arg6[%c0_18, %c0_19] : memref<1x16xf32, #tpu.memory_space<vmem>>, vector<1x16xf32>
    %88 = vector.broadcast %87 : vector<1x16xf32> to vector<256x16xf32>
    %89 = arith.mulf %86, %88 : vector<256x16xf32>
    %c0_20 = arith.constant 0 : index
    %c0_21 = arith.constant 0 : index
    %90 = vector.load %arg7[%c0_20, %c0_21] : memref<1x16xf32, #tpu.memory_space<vmem>>, vector<1x16xf32>
    %91 = vector.broadcast %90 : vector<1x16xf32> to vector<256x16xf32>
    %92 = arith.addf %89, %91 : vector<256x16xf32>
    %93 = arith.negf %92 : vector<256x16xf32>
    %94 = math.exp %93 : vector<256x16xf32>
    %cst_22 = arith.constant 1.000000e+00 : f32
    %95 = vector.broadcast %cst_22 : f32 to vector<256x16xf32>
    %96 = arith.addf %95, %94 : vector<256x16xf32>
    %97 = arith.divf %95, %96 : vector<256x16xf32>
    %98 = arith.mulf %92, %97 : vector<256x16xf32>
    %c0_23 = arith.constant 0 : index
    %c0_24 = arith.constant 0 : index
    %c0_25 = arith.constant 0 : index
    %99 = vector.load %arg8[%c0_23, %c0_24, %c0_25] : memref<1x256x16xf32, #tpu.memory_space<vmem>>, vector<1x256x16xf32>
    %100 = vector.shape_cast %99 : vector<1x256x16xf32> to vector<256x16xf32>
    %101 = vector.shape_cast %98 : vector<256x16xf32> to vector<1x256x16xf32>
    tpu.vector_store %arg8[%c0_23, %c0_24, %c0_25], %101 {strides = array<i32>} : memref<1x256x16xf32, #tpu.memory_space<vmem>>, vector<1x256x16xf32>,
    return
  }
  func.func @transform_0(%arg0: i32) -> (i32, i32, i32) {
    %c0_i32 = arith.constant 0 : i32
    %c0_i32_0 = arith.constant 0 : i32
    %c0_i32_1 = arith.constant 0 : i32
    return %arg0, %c0_i32, %c0_i32_0 : i32, i32, i32
  }
  func.func @transform_1(%arg0: i32) -> (i32, i32) {
    %c0_i32 = arith.constant 0 : i32
    %c0_i32_0 = arith.constant 0 : i32
    %c0_i32_1 = arith.constant 0 : i32
    return %c0_i32, %c0_i32_0 : i32, i32
  }
  func.func @transform_2(%arg0: i32) -> (i32, i32) {
    %c0_i32 = arith.constant 0 : i32
    %c0_i32_0 = arith.constant 0 : i32
    %c0_i32_1 = arith.constant 0 : i32
    return %c0_i32, %c0_i32_0 : i32, i32
  }
  func.func @transform_3(%arg0: i32) -> (i32, i32) {
    %c0_i32 = arith.constant 0 : i32
    %c0_i32_0 = arith.constant 0 : i32
    %c0_i32_1 = arith.constant 0 : i32
    return %c0_i32, %c0_i32_0 : i32, i32
  }
  func.func @transform_4(%arg0: i32) -> (i32, i32) {
    %c0_i32 = arith.constant 0 : i32
    %c0_i32_0 = arith.constant 0 : i32
    %c0_i32_1 = arith.constant 0 : i32
    return %c0_i32, %c0_i32_0 : i32, i32
  }
  func.func @transform_5(%arg0: i32) -> (i32, i32) {
    %c0_i32 = arith.constant 0 : i32
    %c0_i32_0 = arith.constant 0 : i32
    %c0_i32_1 = arith.constant 0 : i32
    return %c0_i32, %c0_i32_0 : i32, i32
  }
  func.func @transform_6(%arg0: i32) -> (i32, i32) {
    %c0_i32 = arith.constant 0 : i32
    %c0_i32_0 = arith.constant 0 : i32
    %c0_i32_1 = arith.constant 0 : i32
    return %c0_i32, %c0_i32_0 : i32, i32
  }
  func.func @transform_7(%arg0: i32) -> (i32, i32, i32) {
    %c0_i32 = arith.constant 0 : i32
    %c0_i32_0 = arith.constant 0 : i32
    %c0_i32_1 = arith.constant 0 : i32
    return %arg0, %c0_i32, %c0_i32_0 : i32, i32, i32
  }
}

</mosaic_0001>

<bundles_post_ra>
// kernel: tpu_custom_call.1
= control target key start
LH: loop header
LB: loop body
LE: loop exit
PB: predicated region body
PF: predicated region fallthrough
CT: control target
= control target key end

     0   :  { %s5396_s24 = smov 0   ;;  %s8661_s0 = inlined_call_operand.vmem [shape: f32[2,256,8], index: 0, kind: input, shape index: {}]   ;;  %s8662_s1 = inlined_call_operand.vmem [shape: f32[8,4], index: 1, kind: input, shape index: {}]   ;;  %s8663_s2 = inlined_call_operand.vmem [shape: f32[1,4], index: 2, kind: input, shape index: {}]   ;;  %s8664_s3 = inlined_call_operand.vmem [shape: f32[1,4], index: 3, kind: input, shape index: {}]   ;;  %s8665_s4 = inlined_call_operand.vmem [shape: f32[16,16], index: 4, kind: input, shape index: {}]   ;;  %s8666_s5 = inlined_call_operand.vmem [shape: f32[1,16], index: 5, kind: input, shape index: {}]   ;;  %s8667_s6 = inlined_call_operand.vmem [shape: f32[1,16], index: 6, kind: input, shape index: {}]   ;;  %s8668_s7 = inlined_call_operand.vmem [shape: f32[2,256,16], index: 7, kind: output, shape index: {}]  }
   0x1 LB: > { %s4758_s25 = sadd.s32 4294967295, %s5351_s24   ;;  %p4762_p0 = scmp.ge.s32.totalorder %s5351_s24, 1  ;;  %s5351_s24 = sphi %s5396_s24, %s17_s24  }
   0x2   : > { %p237_p1 = scmp.lt.s32.totalorder %s5351_s24, 3 }
   0x4   : > { %p238_p2 = pnand %p4762_p0, %p237_p1 }
   0x6   : > { %241 = sbr.rel (%p238_p2) target bundleno = 1167 (0x48f), region = 48 }
   0xd   : > { %v311_v0 = vld [vmem:[%s8662_s1] sm:$0xff]  ;;  %p269_p3 = scmp.lt.s32.totalorder %s4758_s25, 1  ;;  %vm312_vm0 = vcmask 64512   ;;  %vm1074_vm1 = vcmask 1041408   ;;  %vm1235_vm2 = vcmask 1046528   ;;  %vm1380_vm3 = vcmask 1045504  }
   0xe   : > { %4970 = vmatprep.subr.mxu0 %v311_v0  ;;  %v5484_v33 = vld [vmem:[%s8663_s2] ss:$0 sm:$0xff]  ;;  %vm1525_vm4 = vcmask 1044480   ;;  %vm1670_vm5 = vcmask 1043456   ;;  %s5353_s13 = smov 4   ;;  %s5354_s18 = smov 8  }
   0xf   : > { %4971 = vmatpush3.msra.mxu0 %v311_v0  ;;  %s9074_s25 = smov (!%p269_p3, %s4758_s25), 1  ;;  %v5489_v35 = vld [vmem:[%s8664_s3] ss:$0 sm:$0xff]  ;;  %s5355_s19 = smov 12   ;;  %vm3947_vm6 = vcmask 31744   ;;  %vm4012_vm7 = vcmask 97280  }
  0x10   : > { %s4901_s28 = sshll.u32 %s9074_s25, 8  ;;  %vm4047_vm8 = vcmask 130048  }
  0x11   : > { %s5415_s8 = scalar_lea.vmem %s8661_s0, %s4901_s28  ;;  %s8508_s10 = scalar_lea.vmem %s8668_s7, %s4901_s28 }
  0x12   : > { %v279_v1 = vld [vmem:[%s5415_s8] sm:$0xff]  ;;  %v280_v2 = vld [vmem:[%s5415_s8 + $0x8] sm:$0xff]  ;;  %v281_v3 = vld [vmem:[%s5415_s8 + $0x10] sm:$0xff] }
  0x13   : > { %4972 = vmatprep.mubr.msk.f32.mxu0 %vm312_vm0, %v279_v1  ;;  %v282_v4 = vld [vmem:[%s5415_s8 + $0x18] sm:$0xff]  ;;  %v283_v5 = vld [vmem:[%s5415_s8 + $0x20] sm:$0xff]  ;;  %v284_v6 = vld [vmem:[%s5415_s8 + $0x28] sm:$0xff] }
  0x14   : > { %4973 = vmatmul.mubr.msk.f32.vlgmr.msra.gmra.mrb[0].mxu0 %vm312_vm0, %v280_v2  ;;  %v285_v7 = vld [vmem:[%s5415_s8 + $0x30] sm:$0xff]  ;;  %v286_v8 = vld [vmem:[%s5415_s8 + $0x38] sm:$0xff]  ;;  %v287_v9 = vld [vmem:[%s5415_s8 + $0x40] sm:$0xff] }
  0x15   : > { %4975 = vmatprep.mubr.msk.f32.mxu0 %vm312_vm0, %v281_v3  ;;  %v288_v10 = vld [vmem:[%s5415_s8 + $0x48] sm:$0xff]  ;;  %v289_v11 = vld [vmem:[%s5415_s8 + $0x50] sm:$0xff]  ;;  %v290_v12 = vld [vmem:[%s5415_s8 + $0x58] sm:$0xff] }
  0x16   : > { %v291_v13 = vld [vmem:[%s5415_s8 + $0x60] sm:$0xff]  ;;  %v292_v14 = vld [vmem:[%s5415_s8 + $0x68] sm:$0xff]  ;;  %v293_v15 = vld [vmem:[%s5415_s8 + $0x70] sm:$0xff] }
  0x17   : > { %v294_v16 = vld [vmem:[%s5415_s8 + $0x78] sm:$0xff]  ;;  %v295_v17 = vld [vmem:[%s5415_s8 + $0x80] sm:$0xff]  ;;  %v296_v18 = vld [vmem:[%s5415_s8 + $0x88] sm:$0xff] }
  0x18   : > { %4976 = vmatmul.mubr.msk.f32.gmra.mrb[2].mxu0 %vm312_vm0, %v282_v4  ;;  %v297_v19 = vld [vmem:[%s5415_s8 + $0x90] sm:$0xff]  ;;  %v298_v20 = vld [vmem:[%s5415_s8 + $0x98] sm:$0xff]  ;;  %v299_v21 = vld [vmem:[%s5415_s8 + $0xa0] sm:$0xff] }
  0x19   : > { %4978 = vmatprep.mubr.msk.f32.mxu0 %vm312_vm0, %v283_v5  ;;  %v300_v22 = vld [vmem:[%s5415_s8 + $0xa8] sm:$0xff]  ;;  %v301_v23 = vld [vmem:[%s5415_s8 + $0xb0] sm:$0xff]  ;;  %v302_v24 = vld [vmem:[%s5415_s8 + $0xb8] sm:$0xff] }
  0x1a   : > { %v303_v25 = vld [vmem:[%s5415_s8 + $0xc0] sm:$0xff]  ;;  %v304_v26 = vld [vmem:[%s5415_s8 + $0xc8] sm:$0xff]  ;;  %v305_v27 = vld [vmem:[%s5415_s8 + $0xd0] sm:$0xff] }
  0x1b   : > { %v306_v28 = vld [vmem:[%s5415_s8 + $0xd8] sm:$0xff]  ;;  %v307_v29 = vld [vmem:[%s5415_s8 + $0xe0] sm:$0xff]  ;;  %v308_v30 = vld [vmem:[%s5415_s8 + $0xe8] sm:$0xff] }
  0x1c   : > { %4979 = vmatmul.mubr.msk.f32.gmra.mrb[4].mxu0 %vm312_vm0, %v284_v6  ;;  %v309_v31 = vld [vmem:[%s5415_s8 + $0xf0] sm:$0xff]  ;;  %v310_v32 = vld [vmem:[%s5415_s8 + $0xf8] sm:$0xff] }
  0x1d   : > { %4981 = vmatprep.mubr.msk.f32.mxu0 %vm312_vm0, %v285_v7 }
  0x20   : > { %4982 = vmatmul.mubr.msk.f32.gmra.mrb[6].mxu0 %vm312_vm0, %v286_v8 }
  0x21   : > { %4984 = vmatprep.mubr.msk.f32.mxu0 %vm312_vm0, %v287_v9 }
  0x24   : > { %4985 = vmatmul.mubr.msk.f32.gmra.mrb[8].mxu0 %vm312_vm0, %v288_v10 }
  0x25   : > { %4987 = vmatprep.mubr.msk.f32.mxu0 %vm312_vm0, %v289_v11 }
  0x28   : > { %4988 = vmatmul.mubr.msk.f32.gmra.mrb[10].mxu0 %vm312_vm0, %v290_v12 }
  0x29   : > { %4990 = vmatprep.mubr.msk.f32.mxu0 %vm312_vm0, %v291_v13 }
  0x2c   : > { %4991 = vmatmul.mubr.msk.f32.gmra.mrb[12].mxu0 %vm312_vm0, %v292_v14 }
  0x2d   : > { %4993 = vmatprep.mubr.msk.f32.mxu0 %vm312_vm0, %v293_v15 }
  0x30   : > { %4994 = vmatmul.mubr.msk.f32.gmra.mrb[14].mxu0 %vm312_vm0, %v294_v16 }
  0x31   : > { %4996 = vmatprep.mubr.msk.f32.mxu0 %vm312_vm0, %v295_v17 }
  0x34   : > { %4997 = vmatmul.mubr.msk.f32.gmra.mrb[16].mxu0 %vm312_vm0, %v296_v18 }
  0x35   : > { %4999 = vmatprep.mubr.msk.f32.mxu0 %vm312_vm0, %v297_v19 }
  0x38   : > { %5000 = vmatmul.mubr.msk.f32.gmra.mrb[18].mxu0 %vm312_vm0, %v298_v20 }
  0x39   : > { %5002 = vmatprep.mubr.msk.f32.mxu0 %vm312_vm0, %v299_v21 }
  0x3c   : > { %5003 = vmatmul.mubr.msk.f32.gmra.mrb[20].mxu0 %vm312_vm0, %v300_v22 }
  0x3d   : > { %5005 = vmatprep.mubr.msk.f32.mxu0 %vm312_vm0, %v301_v23 }
  0x40   : > { %5006 = vmatmul.mubr.msk.f32.gmra.mrb[22].mxu0 %vm312_vm0, %v302_v24 }
  0x41   : > { %5008 = vmatprep.mubr.msk.f32.mxu0 %vm312_vm0, %v303_v25 }
  0x44   : > { %5009 = vmatmul.mubr.msk.f32.gmra.mrb[24].mxu0 %vm312_vm0, %v304_v26 }
  0x45   : > { %5011 = vmatprep.mubr.msk.f32.mxu0 %vm312_vm0, %v305_v27 }
  0x48   : > { %5012 = vmatmul.mubr.msk.f32.gmra.mrb[26].mxu0 %vm312_vm0, %v306_v28 }
  0x49   : > { %5014 = vmatprep.mubr.msk.f32.mxu0 %vm312_vm0, %v307_v29 }
  0x4c   : > { %5015 = vmatmul.mubr.msk.f32.gmra.mrb[28].mxu0 %vm312_vm0, %v308_v30 }
  0x4d   : > { %5017 = vmatprep.mubr.msk.f32.mxu0 %vm312_vm0, %v309_v31 }
  0x50   : > { %5018 = vmatmul.mubr.msk.f32.gmra.mrb[30].mxu0 %vm312_vm0, %v310_v32 }
  0xe7   : > { %v4974_v34 = vpop.f32.mrb[0].mxu0 }
  0xe8   : > { %v642_v36 = vmul.f32 %v4974_v34, %v5484_v33  ;;  %v475_v37 = vpop.f32.mrb[1].mxu0 }
  0xe9   : > { %v641_v38 = vmul.f32 %v5484_v33, %v475_v37 }
  0xea   : > { %v5494_v39 = vadd.f32 %v5489_v35, %v642_v36 }
  0xeb   : > { %v5497_v40 = vadd.f32 %v5489_v35, %v641_v38  ;;  %v4977_v41 = vpop.f32.mrb[2].mxu0 }
  0xec   : > { %v4802_v42 = vmul.f32 -1.442695, %v5494_v39  ;;  %v644_v43 = vmul.f32 %v4977_v41, %v5484_v33  ;;  %v485_v44 = vpop.f32.mrb[3].mxu0 }
  0xed   : > { %v4801_v45 = vmul.f32 -1.442695, %v5497_v40  ;;  %v643_v46 = vmul.f32 %v5484_v33, %v485_v44 }
  0xee   : > { %5087 = vpow2.f32 %v4802_v42  ;;  %v5504_v47 = vadd.f32 %v5489_v35, %v644_v43 }
  0xef   : > { %5089 = vpow2.f32 %v4801_v45  ;;  %v5507_v48 = vadd.f32 %v5489_v35, %v643_v46  ;;  %v4980_v49 = vpop.f32.mrb[4].mxu0 }
  0xf0   : > { %v4804_v50 = vmul.f32 -1.442695, %v5504_v47  ;;  %v646_v51 = vmul.f32 %v4980_v49, %v5484_v33  ;;  %v495_v52 = vpop.f32.mrb[5].mxu0 }
  0xf1   : > { %v4803_v53 = vmul.f32 -1.442695, %v5507_v48  ;;  %v645_v54 = vmul.f32 %v5484_v33, %v495_v52 }
  0xf2   : > { %5091 = vpow2.f32 %v4804_v50  ;;  %v5514_v55 = vadd.f32 %v5489_v35, %v646_v51 }
  0xf3   : > { %5093 = vpow2.f32 %v4803_v53  ;;  %v5517_v56 = vadd.f32 %v5489_v35, %v645_v54  ;;  %v4983_v57 = vpop.f32.mrb[6].mxu0 }
  0xf4   : > { %v4806_v58 = vmul.f32 -1.442695, %v5514_v55  ;;  %v648_v59 = vmul.f32 %v4983_v57, %v5484_v33  ;;  %v505_v60 = vpop.f32.mrb[7].mxu0 }
  0xf5   : > { %v4805_v61 = vmul.f32 -1.442695, %v5517_v56  ;;  %v647_v62 = vmul.f32 %v5484_v33, %v505_v60 }
  0xf6   : > { %5095 = vpow2.f32 %v4806_v58  ;;  %v5524_v63 = vadd.f32 %v5489_v35, %v648_v59 }
  0xf7   : > { %5097 = vpow2.f32 %v4805_v61  ;;  %v5527_v0 = vadd.f32 %v5489_v35, %v647_v62  ;;  %v4986_v1 = vpop.f32.mrb[8].mxu0 }
  0xf8   : > { %v5088_v2 = vpop.eup %5087  ;;  %v4808_v3 = vmul.f32 -1.442695, %v5524_v63  ;;  %v650_v4 = vmul.f32 %v4986_v1, %v5484_v33  ;;  %v515_v5 = vpop.f32.mrb[9].mxu0 }
  0xf9   : > { %v5090_v6 = vpop.eup %5089  ;;  %v809_v7 = vadd.f32 1.0, %v5088_v2  ;;  %v4807_v8 = vmul.f32 -1.442695, %v5527_v0  ;;  %v649_v9 = vmul.f32 %v5484_v33, %v515_v5 }
  0xfa   : > { %v808_v10 = vadd.f32 1.0, %v5090_v6  ;;  %5099 = vpow2.f32 %v4808_v3  ;;  %v5534_v11 = vadd.f32 %v5489_v35, %v650_v4 }
  0xfb   : > { %5101 = vrcp.f32 %v809_v7  ;;  %v5537_v12 = vadd.f32 %v5489_v35, %v649_v9  ;;  %v4989_v13 = vpop.f32.mrb[10].mxu0 }
  0xfc   : > { %v5092_v14 = vpop.eup %5091  ;;  %5103 = vrcp.f32 %v808_v10  ;;  %v4810_v15 = vmul.f32 -1.442695, %v5534_v11  ;;  %v652_v16 = vmul.f32 %v4989_v13, %v5484_v33  ;;  %v525_v17 = vpop.f32.mrb[11].mxu0 }
  0xfd   : > { %v5094_v18 = vpop.eup %5093  ;;  %v811_v19 = vadd.f32 1.0, %v5092_v14  ;;  %5105 = vpow2.f32 %v4807_v8  ;;  %v4809_v20 = vmul.f32 -1.442695, %v5537_v12  ;;  %v651_v21 = vmul.f32 %v5484_v33, %v525_v17 }
  0xfe   : > { %v810_v22 = vadd.f32 1.0, %v5094_v18  ;;  %5107 = vpow2.f32 %v4810_v15  ;;  %v5544_v23 = vadd.f32 %v5489_v35, %v652_v16 }
  0xff   : > { %5109 = vrcp.f32 %v811_v19  ;;  %v5547_v24 = vadd.f32 %v5489_v35, %v651_v21  ;;  %v4992_v25 = vpop.f32.mrb[12].mxu0 }
 0x100   : > { %v5096_v26 = vpop.eup %5095  ;;  %5111 = vrcp.f32 %v810_v22  ;;  %v4812_v27 = vmul.f32 -1.442695, %v5544_v23  ;;  %v654_v28 = vmul.f32 %v4992_v25, %v5484_v33  ;;  %v535_v29 = vpop.f32.mrb[13].mxu0 }
 0x101   : > { %v5098_v30 = vpop.eup %5097  ;;  %v813_v31 = vadd.f32 1.0, %v5096_v26  ;;  %5113 = vpow2.f32 %v4809_v20  ;;  %v4811_v32 = vmul.f32 -1.442695, %v5547_v24  ;;  %v653_v34 = vmul.f32 %v5484_v33, %v535_v29 }
 0x102   : > { %v812_v36 = vadd.f32 1.0, %v5098_v30  ;;  %5115 = vpow2.f32 %v4812_v27  ;;  %v5554_v37 = vadd.f32 %v5489_v35, %v654_v28 }
 0x103   : > { %5117 = vrcp.f32 %v813_v31  ;;  %v5557_v38 = vadd.f32 %v5489_v35, %v653_v34  ;;  %v4995_v41 = vpop.f32.mrb[14].mxu0 }
 0x104   : > { %v5100_v42 = vpop.eup %5099  ;;  %5119 = vrcp.f32 %v812_v36  ;;  %v4814_v43 = vmul.f32 -1.442695, %v5554_v37  ;;  %v656_v44 = vmul.f32 %v4995_v41, %v5484_v33  ;;  %v545_v45 = vpop.f32.mrb[15].mxu0 }
 0x105   : > { %v5102_v46 = vpop.eup %5101  ;;  %v815_v49 = vadd.f32 1.0, %v5100_v42  ;;  %5121 = vpow2.f32 %v4811_v32  ;;  %v4813_v50 = vmul.f32 -1.442695, %v5557_v38  ;;  %v655_v51 = vmul.f32 %v5484_v33, %v545_v45 }
 0x106   : > { %v5104_v52 = vpop.eup %5103  ;;  %5123 = vpow2.f32 %v4814_v43  ;;  %v5564_v53 = vadd.f32 %v5489_v35, %v656_v44  ;;  %v5592_v34 = vmul.f32 %v5102_v46, %v5494_v39 }
 0x107   : > { %v5106_v54 = vpop.eup %5105  ;;  %5125 = vrcp.f32 %v815_v49  ;;  %v5567_v57 = vadd.f32 %v5489_v35, %v655_v51  ;;  %v4998_v58 = vpop.f32.mrb[16].mxu0  ;;  %v5600_v43 = vmul.f32 %v5104_v52, %v5497_v40 }
 0x108   : > { %v5108_v59 = vpop.eup %5107  ;;  %v814_v60 = vadd.f32 1.0, %v5106_v54  ;;  %5127 = vpow2.f32 %v4813_v50  ;;  %v4816_v61 = vmul.f32 -1.442695, %v5564_v53  ;;  %v658_v62 = vmul.f32 %v4998_v58, %v5484_v33  ;;  %v555_v1 = vpop.f32.mrb[17].mxu0  ;;  %8751 = vst [vmem:[#allocation4_spill] sm:$0xff] %v5592_v34 }
 0x109   : > { %v5110_v2 = vpop.eup %5109  ;;  %v817_v3 = vadd.f32 1.0, %v5108_v59  ;;  %v4815_v4 = vmul.f32 -1.442695, %v5567_v57  ;;  %v657_v13 = vmul.f32 %v5484_v33, %v555_v1  ;;  %8753 = vst [vmem:[#allocation6_spill] sm:$0xff] %v5600_v43 }
 0x10a   : > { %v5112_v5 = vpop.eup %5111  ;;  %5129 = vrcp.f32 %v814_v60  ;;  %v5573_v10 = vadd.f32 %v5489_v35, %v658_v62  ;;  %v5585_v28 = vmul.f32 %v5110_v2, %v5504_v47 }
 0x10b   : > { %v5114_v6 = vpop.eup %5113  ;;  %5131 = vrcp.f32 %v817_v3  ;;  %v5001_v7 = vpop.f32.mrb[18].mxu0  ;;  %v5580_v25 = vadd.f32 %v5489_v35, %v657_v13  ;;  %v5589_v32 = vmul.f32 %v5112_v5, %v5507_v48 }
 0x10c   : > { %v5116_v8 = vpop.eup %5115  ;;  %v816_v9 = vadd.f32 1.0, %v5114_v6  ;;  %5133 = vpow2.f32 %v4816_v61  ;;  %v565_v14 = vpop.f32.mrb[19].mxu0  ;;  %v4818_v22 = vmul.f32 -1.442695, %v5573_v10  ;;  %8749 = vst [vmem:[#allocation2_spill] sm:$0xff] %v5585_v28  ;;  %v660_v30 = vmul.f32 %v5001_v7, %v5484_v33 }
 0x10d   : > { %v5118_v15 = vpop.eup %5117  ;;  %v819_v16 = vadd.f32 1.0, %v5116_v8  ;;  %5135 = vpow2.f32 %v4815_v4  ;;  %8750 = vst [vmem:[#allocation3_spill] sm:$0xff] %v5589_v32  ;;  %v4817_v48 = vmul.f32 -1.442695, %v5580_v25  ;;  %v659_v50 = vmul.f32 %v5484_v33, %v565_v14 }
 0x10e   : > { %v5120_v17 = vpop.eup %5119  ;;  %5137 = vrcp.f32 %v816_v9  ;;  %v5595_v36 = vmul.f32 %v5118_v15, %v5514_v55  ;;  %v937_v55 = vmax.f32 %v5592_v34, %v5585_v28  ;;  %v5614_v49 = vadd.f32 %v5489_v35, %v660_v30 }
 0x10f   : > { %v5122_v18 = vpop.eup %5121  ;;  %5139 = vrcp.f32 %v819_v16  ;;  %v5576_v19 = vpop.f32.mrb[20].mxu0  ;;  %v5603_v44 = vmul.f32 %v5120_v17, %v5517_v56  ;;  %v936_v56 = vmax.f32 %v5600_v43, %v5589_v32  ;;  %v5652_v7 = vadd.f32 %v5489_v35, %v659_v50 }
 0x110   : > { %v5124_v20 = vpop.eup %5123  ;;  %v818_v21 = vadd.f32 1.0, %v5122_v18  ;;  %v5582_v26 = vpop.f32.mrb[21].mxu0  ;;  %8752 = vst [vmem:[#allocation5_spill] sm:$0xff] %v5595_v36  ;;  %v939_v52 = vmax.f32 %v5585_v28, %v5595_v36  ;;  %v5622_v54 = vmax.f32 %v937_v55, %v5595_v36  ;;  %v4820_v4 = vmul.f32 -1.442695, %v5614_v49 }
 0x111   : > { %v5126_v27 = vpop.eup %5125  ;;  %v821_v29 = vadd.f32 1.0, %v5124_v20  ;;  %8754 = vst [vmem:[#allocation7_spill] sm:$0xff] %v5603_v44  ;;  %v5630_v61 = vmax.f32 %v936_v56, %v5603_v44  ;;  %v938_v3 = vmax.f32 %v5589_v32, %v5603_v44 }
 0x112   : > { %v5128_v31 = vpop.eup %5127  ;;  %5141 = vrcp.f32 %v818_v21  ;;  %v5611_v46 = vmul.f32 %v5126_v27, %v5524_v63  ;;  %8756 = vst [vmem:[#allocation9_spill] sm:$0xff] %v5622_v54  ;;  %v662_v27 = vmul.f32 %v5576_v19, %v5484_v33 }
 0x113   : > { %5143 = vrcp.f32 %v821_v29  ;;  %v820_v41 = vadd.f32 1.0, %v5128_v31  ;;  %v5597_v42 = vpop.f32.mrb[22].mxu0 }
 0x114   : > { %v5130_v47 = vpop.eup %5129  ;;  %5145 = vpow2.f32 %v4818_v22  ;;  %v5606_v45 = vpop.f32.mrb[23].mxu0  ;;  %8755 = vst [vmem:[#allocation8_spill] sm:$0xff] %v5611_v46  ;;  %v5643_v5 = vmax.f32 %v5622_v54, %v5611_v46 }
 0x115   : > { %v5132_v39 = vpop.eup %5131  ;;  %5147 = vrcp.f32 %v820_v41  ;;  %v5633_v62 = vmul.f32 %v5130_v47, %v5527_v0  ;;  %v4819_v47 = vmul.f32 -1.442695, %v5652_v7 }
 0x116   : > { %v5134_v40 = vpop.eup %5133  ;;  %v5625_v63 = vmul.f32 %v5132_v39, %v5534_v11  ;;  %5149 = vpow2.f32 %v4817_v48  ;;  %v967_v11 = vmax.f32 %v939_v52, %v5611_v46 }
 0x117   : > { %v5136_v51 = vpop.eup %5135  ;;  %v823_v58 = vadd.f32 1.0, %v5134_v40  ;;  %v5627_v59 = vpop.f32.mrb[24].mxu0  ;;  %8758 = vst [vmem:[#allocation11_spill] sm:$0xff] %v5633_v62  ;;  %v966_v17 = vmax.f32 %v938_v3, %v5633_v62  ;;  %v940_v40 = vmax.f32 %v5603_v44, %v5633_v62 }
 0x118   : > { %8757 = vst [vmem:[#allocation10_spill] sm:$0xff] %v5625_v63  ;;  %v5138_v60 = vpop.eup %5137  ;;  %v5635_v1 = vpop.f32.mrb[25].mxu0  ;;  %v995_v9 = vmax.f32 %v967_v11, %v5625_v63  ;;  %v822_v13 = vadd.f32 1.0, %v5136_v51  ;;  %v943_v56 = vmax.f32 %v5611_v46, %v5625_v63  ;;  %v661_v51 = vmul.f32 %v5484_v33, %v5582_v26 }
 0x119   : > { %v5140_v2 = vpop.eup %5139  ;;  %5151 = vrcp.f32 %v823_v58  ;;  %v5646_v6 = vmul.f32 %v5138_v60, %v5537_v12  ;;  %v941_v12 = vmax.f32 %v5595_v36, %v5611_v46 }
 0x11a   : > { %v5649_v0 = vmul.f32 %v5140_v2, %v5544_v23  ;;  %v5664_v23 = vmax.f32 %v5630_v61, %v5633_v62  ;;  %5153 = vpow2.f32 %v4820_v4  ;;  %v5698_v2 = vadd.f32 %v5489_v35, %v662_v27 }
 0x11b   : > { %8759 = vst [vmem:[#allocation12_spill] sm:$0xff] %v5646_v6  ;;  %v5656_v14 = vpop.f32.mrb[26].mxu0  ;;  %v994_v31 = vmax.f32 %v966_v17, %v5646_v6  ;;  %v969_v39 = vmax.f32 %v941_v12, %v5625_v63  ;;  %5155 = vrcp.f32 %v822_v13  ;;  %v968_v11 = vmax.f32 %v940_v40, %v5646_v6 }
 0x11c   : > { %8760 = vst [vmem:[#allocation13_spill] sm:$0xff] %v5649_v0  ;;  %v5142_v15 = vpop.eup %5141  ;;  %v5666_v18 = vpop.f32.mrb[27].mxu0  ;;  %v1021_v21 = vmax.f32 %v995_v9, %v5649_v0  ;;  %v1018_v41 = vmax.f32 %v5664_v23, %v5646_v6  ;;  %5157 = vpow2.f32 %v4819_v47  ;;  %v945_v27 = vmax.f32 %v5625_v63, %v5649_v0 }
 0x11d   : > { %v5144_v20 = vpop.eup %5143  ;;  %v5670_v22 = vmul.f32 %v5142_v15, %v5547_v24  ;;  %v1019_v24 = vmax.f32 %v5643_v5, %v5625_v63  ;;  %v997_v58 = vmax.f32 %v969_v39, %v5649_v0 }
 0x11e   : > { %v5146_v29 = vpop.eup %5145  ;;  %v5683_v55 = vmul.f32 %v5144_v20, %v5554_v37  ;;  %v1085_v37 = vrot.slane %v1021_v21, 6  ;;  %v5701_v4 = vrot.slane %v1018_v41, 6  ;;  %v942_v21 = vmax.f32 %v5633_v62, %v5646_v6 }
 0x11f   : > { %8761 = vst [vmem:[#allocation14_spill] sm:$0xff] %v5670_v22  ;;  %v5148_v48 = vpop.eup %5147  ;;  %v5685_v19 = vpop.f32.mrb[28].mxu0  ;;  %v1020_v50 = vmax.f32 %v994_v31, %v5670_v22  ;;  %v825_v60 = vadd.f32 1.0, %v5146_v29  ;;  %v5707_v12 = vrot.slane %v1019_v24, 6  ;;  %v996_v29 = vmax.f32 %v968_v11, %v5670_v22 }
 0x120   : > { %8762 = vst [vmem:[#allocation15_spill] sm:$0xff] %v5683_v55  ;;  %v5694_v52 = vpop.f32.mrb[29].mxu0  ;;  %v5150_v3 = vpop.eup %5149  ;;  %v5704_v13 = vmul.f32 %v5148_v48, %v5557_v38  ;;  %v1023_v17 = vmax.f32 %v997_v58, %v5683_v55  ;;  %v971_v38 = vmax.f32 %v943_v56, %v5649_v0  ;;  %v5721_v41 = vsel %vm1074_vm1, %v1085_v37, -inf }
 0x121   : > { %v1084_v9 = vrot.slane %v1020_v50, 6  ;;  %8764 = vst [vmem:[#allocation17_spill] sm:$0xff] %v5721_v41  ;;  %5159 = vrcp.f32 %v825_v60  ;;  %v824_v47 = vadd.f32 1.0, %v5150_v3  ;;  %v5728_v39 = vsel %vm1074_vm1, -inf, %v5701_v4 }
 0x122   : > { %8763 = vst [vmem:[#allocation16_spill] sm:$0xff] %v5704_v13  ;;  %v1022_v24 = vmax.f32 %v996_v29, %v5704_v13  ;;  %v5735_v56 = vmul.f32 -1.442695, %v5698_v2  ;;  %v944_v58 = vmax.f32 %v5646_v6, %v5670_v22  ;;  %v999_v60 = vmax.f32 %v971_v38, %v5683_v55 }
 0x123   : > { %v5152_v15 = vpop.eup %5151  ;;  %v5710_v20 = vpop.f32.mrb[30].mxu0  ;;  %v5724_v48 = vsel %vm1074_vm1, %v1084_v9, %v1085_v37  ;;  %v970_v37 = vmax.f32 %v942_v21, %v5670_v22  ;;  %v1088_v3 = vrot.slane %v1023_v17, 6  ;;  %v1254_v11 = vrot.slane %v5721_v41, 1 }
 0x124   : > { %v5718_v31 = vpop.f32.mrb[31].mxu0  ;;  %v5732_v40 = vmul.f32 %v5152_v15, %v5564_v53  ;;  %v5154_v50 = vpop.eup %5153  ;;  %v947_v53 = vmax.f32 %v5649_v0, %v5683_v55  ;;  %v1087_v15 = vrot.slane %v1022_v24, 6  ;;  %v973_v16 = vmax.f32 %v945_v27, %v5683_v55 }
 0x125   : > { %v5156_v29 = vpop.eup %5155  ;;  %5161 = vrcp.f32 %v824_v47  ;;  %v5751_v38 = vsel %vm1074_vm1, -inf, %v1084_v9  ;;  %v827_v26 = vadd.f32 1.0, %v5154_v50  ;;  %v5754_v63 = vsel %vm1074_vm1, %v1088_v3, -inf }
 0x126   : > { %8765 = vst [vmem:[#allocation18_spill] sm:$0xff] %v5732_v40  ;;  %v1025_v8 = vmax.f32 %v999_v60, %v5732_v40  ;;  %8766 = vst [vmem:[#allocation19_spill] sm:$0xff] %v5754_v63  ;;  %v5757_v24 = vsel %vm1074_vm1, %v1087_v15, %v1088_v3  ;;  %v5760_v30 = vsel %vm1074_vm1, -inf, %v1087_v15  ;;  %v5763_v27 = vadd.f32 %v5489_v35, %v661_v51  ;;  %v5158_v17 = vpop.eup %5157 }
 0x127   : > { %v8767_v47 = vrot.slane %v5724_v48, 1  ;;  %v5771_v50 = vmul.f32 %v5156_v29, %v5567_v57  ;;  %v5775_v3 = vmul.f32 %v5597_v42, %v5484_v33  ;;  %v972_v21 = vmax.f32 %v944_v58, %v5704_v13 }
 0x128   : > { %v1091_v9 = vrot.slane %v1025_v8, 6  ;;  %v998_v0 = vmax.f32 %v970_v37, %v5704_v13  ;;  %v1404_v8 = vrot.slane %v5754_v63, 2  ;;  %v1256_v57 = vrot.slane %v5760_v30, 1 }
 0x129   : > { %v5768_v60 = vsel %vm1235_vm2, %v8767_v47, %v1254_v11  ;;  %8769 = vst [vmem:[#allocation21_spill] sm:$0xff] %v5771_v50  ;;  %v1259_v11 = vrot.slane %v5754_v63, 1  ;;  %v1257_v29 = vrot.slane %v5757_v24, 1  ;;  %v1549_v15 = vrot.slane %v5754_v63, 3 }
 0x12a   : > { %8768 = vst [vmem:[#allocation20_spill] sm:$0xff] %v5768_v60  ;;  %v949_v58 = vmax.f32 %v5683_v55, %v5732_v40  ;;  %v5794_v6 = vmax.f32 %v947_v53, %v5732_v40  ;;  %v5797_v46 = vsel %vm1074_vm1, %v1091_v9, -inf  ;;  %v1024_v62 = vmax.f32 %v998_v0, %v5771_v50 }
 0x12b   : > { %v5160_v42 = vpop.eup %5159  ;;  %v1001_v44 = vmax.f32 %v973_v16, %v5732_v40  ;;  %5163 = vrcp.f32 %v827_v26  ;;  %v826_v51 = vadd.f32 1.0, %v5158_v17  ;;  %v5803_v36 = vsel %vm1235_vm2, %v1256_v57, %v1257_v29 }
 0x12c   : > { %v1260_v37 = vsel %vm1235_vm2, %v1257_v29, %v1259_v11  ;;  %v1090_v55 = vrot.slane %v1024_v62, 6  ;;  %v5807_v53 = vmul.f32 %v5160_v42, %v5573_v10  ;;  %v1264_v16 = vrot.slane %v5797_v46, 1 }
 0x12d   : > { %v8771_v26 = vrot.slane %v5757_v24, 2  ;;  %v948_v11 = vmax.f32 %v5704_v13, %v5771_v50  ;;  %v1357_v29 = vmax.f32 %v5757_v24, %v1260_v37  ;;  %v1409_v28 = vrot.slane %v5797_v46, 2 }
 0x12e   : > { %8770 = vst [vmem:[#allocation22_spill] sm:$0xff] %v5807_v53  ;;  %v1092_v62 = vsel %vm1074_vm1, %v1090_v55, %v1091_v9  ;;  %v1176_v10 = vsel %vm1074_vm1, -inf, %v1090_v55  ;;  %v1027_v0 = vmax.f32 %v1001_v44, %v5807_v53  ;;  %v1000_v57 = vmax.f32 %v972_v21, %v5771_v50 }
 0x12f   : > { %v5162_v32 = vpop.eup %5161  ;;  %v1405_v17 = vsel %vm1380_vm3, %v8771_v26, %v1404_v8  ;;  %v1261_v42 = vrot.slane %v1176_v10, 1  ;;  %v1262_v47 = vrot.slane %v1092_v62, 1  ;;  %v4821_v26 = vmul.f32 -1.442695, %v5763_v27 }
 0x130   : > { %v5826_v8 = vmul.f32 %v5162_v32, %v5580_v25  ;;  %v1406_v34 = vrot.slane %v1176_v10, 2  ;;  %v1407_v43 = vrot.slane %v1092_v62, 2  ;;  %5165 = vrcp.f32 %v826_v51 }
 0x131   : > { %v1263_v9 = vsel %vm1235_vm2, %v1261_v42, %v1262_v47  ;;  %v1265_v55 = vsel %vm1235_vm2, %v1262_v47, %v1264_v16  ;;  %v8773_v60 = vrot.slane %v5757_v24, 3  ;;  %v1554_v25 = vrot.slane %v5797_v46, 3 }
 0x132   : > { %8772 = vst [vmem:[#allocation23_spill] sm:$0xff] %v5826_v8  ;;  %v1358_v37 = vmax.f32 %v1176_v10, %v1263_v9  ;;  %v1359_v63 = vmax.f32 %v1092_v62, %v1265_v55  ;;  %v1699_v32 = vrot.slane %v5797_v46, 4  ;;  %5167 = vpow2.f32 %v5735_v56 }
 0x133   : > { %v5835_v44 = vsel %vm1525_vm4, %v8773_v60, %v1549_v15  ;;  %v5840_v47 = vmax.f32 %v1357_v29, %v1405_v17  ;;  %v1551_v16 = vrot.slane %v1176_v10, 3  ;;  %v1552_v42 = vrot.slane %v1092_v62, 3 }
 0x134   : > { %8774 = vst [vmem:[#allocation24_spill] sm:$0xff] %v5835_v44  ;;  %v1026_v21 = vmax.f32 %v1000_v57, %v5826_v8  ;;  %v1408_v51 = vsel %vm1380_vm3, %v1406_v34, %v1407_v43  ;;  %v1410_v55 = vsel %vm1380_vm3, %v1407_v43, %v1409_v28  ;;  %v1094_v41 = vrot.slane %v1027_v0, 6 }
 0x135   : > { %8775 = vst [vmem:[#allocation25_spill] sm:$0xff] %v5840_v47  ;;  %v5164_v9 = vpop.eup %5163  ;;  %5169 = vpow2.f32 %v4821_v26  ;;  %v8776_v60 = vmax.f32 %v5670_v22, %v5704_v13  ;;  %v1503_v56 = vmax.f32 %v1358_v37, %v1408_v51  ;;  %v1504_v15 = vmax.f32 %v1359_v63, %v1410_v55 }
 0x136   : > { %v5853_v17 = vadd.f32 %v5489_v35, %v5775_v3  ;;  %v1696_v57 = vrot.slane %v1176_v10, 4  ;;  %v1697_v29 = vrot.slane %v1092_v62, 4  ;;  %v1093_v47 = vrot.slane %v1026_v21, 6 }
 0x137   : > { %v5849_v46 = vmax.f32 %v8776_v60, %v5771_v50  ;;  %v663_v28 = vmul.f32 %v5484_v33, %v5606_v45  ;;  %v951_v34 = vmax.f32 %v5732_v40, %v5807_v53  ;;  %v5860_v43 = vmax.f32 %v949_v58, %v5807_v53 }
 0x138   : > { %v1003_v0 = vmax.f32 %v5794_v6, %v5807_v53  ;;  %v1553_v3 = vsel %vm1525_vm4, %v1551_v16, %v1552_v42  ;;  %v1555_v62 = vsel %vm1525_vm4, %v1552_v42, %v1554_v25  ;;  %v5869_v10 = vsel %vm1074_vm1, %v1094_v41, -inf }
 0x139   : > { %v5872_v45 = vmul.f32 %v5164_v9, %v5614_v49  ;;  %v1648_v26 = vmax.f32 %v1503_v56, %v1553_v3  ;;  %v1649_v37 = vmax.f32 %v1504_v15, %v1555_v62  ;;  %v5875_v58 = vsel %vm1074_vm1, %v1093_v47, %v1094_v41 }
 0x13a   : > { %v5878_v6 = vsel %vm1074_vm1, -inf, %v1093_v47  ;;  %v1698_v21 = vsel %vm1670_vm5, %v1696_v57, %v1697_v29  ;;  %v1700_v16 = vsel %vm1670_vm5, %v1697_v29, %v1699_v32  ;;  %v5883_v25 = vmax.f32 %v948_v11, %v5826_v8  ;;  %v5166_v49 = vpop.eup %5165 }
 0x13b   : > { %8777 = vst [vmem:[#allocation26_spill] sm:$0xff] %v5872_v45  ;;  %v1269_v9 = vrot.slane %v5869_v10, 1  ;;  %v4824_v41 = vmul.f32 -1.442695, %v5853_v17  ;;  %v5891_v47 = vadd.f32 %v5489_v35, %v663_v28  ;;  %v1266_v11 = vrot.slane %v5878_v6, 1 }
 0x13c   : > { %v5168_v55 = vpop.eup %5167  ;;  %v1267_v56 = vrot.slane %v5875_v58, 1  ;;  %v5897_v15 = vmax.f32 %v1648_v26, %v1698_v21  ;;  %v5899_v57 = vmax.f32 %v1649_v37, %v1700_v16  ;;  %v5904_v3 = vmax.f32 %v951_v34, %v5872_v45 }
 0x13d   : > { %v1411_v62 = vrot.slane %v5878_v6, 2  ;;  %v5910_v63 = vmax.f32 %v1003_v0, %v5872_v45  ;;  %v5913_v26 = vmul.f32 %v5166_v49, %v5652_v7  ;;  %v1412_v37 = vrot.slane %v5875_v58, 2 }
 0x13e   : > { %8778 = vst [vmem:[#allocation27_spill] sm:$0xff] %v5899_v57  ;;  %v1556_v21 = vrot.slane %v5878_v6, 3  ;;  %v829_v16 = vadd.f32 1.0, %v5168_v55  ;;  %v1268_v34 = vsel %vm1235_vm2, %v1266_v11, %v1267_v56  ;;  %v1557_v32 = vrot.slane %v5875_v58, 3 }
 0x13f   : > { %v5170_v28 = vpop.eup %5169  ;;  %8779 = vst [vmem:[#allocation28_spill] sm:$0xff] %v5913_v26  ;;  %5171 = vpow2.f32 %v4824_v41  ;;  %v4823_v60 = vmul.f32 -1.442695, %v5891_v47  ;;  %v1701_v42 = vrot.slane %v5878_v6, 4  ;;  %v666_v7 = vmul.f32 %v5627_v59, %v5484_v33 }
 0x140   : > { %v828_v29 = vadd.f32 1.0, %v5170_v28  ;;  %5173 = vrcp.f32 %v829_v16  ;;  %v665_v0 = vmul.f32 %v5484_v33, %v5635_v1  ;;  %v1270_v49 = vsel %vm1235_vm2, %v1267_v56, %v1269_v9 }
 0x141   : > { %v1702_v55 = vrot.slane %v5875_v58, 4  ;;  %v668_v11 = vmul.f32 %v5656_v14, %v5484_v33  ;;  %v1360_v41 = vmax.f32 %v5878_v6, %v1268_v34  ;;  %v1413_v28 = vsel %vm1380_vm3, %v1411_v62, %v1412_v37 }
 0x142   : > { %5175 = vrcp.f32 %v828_v29  ;;  %v5932_v16 = vadd.f32 %v5489_v35, %v666_v7  ;;  %v5935_v59 = vadd.f32 %v5489_v35, %v665_v0  ;;  %v667_v9 = vmul.f32 %v5484_v33, %v5666_v18 }
 0x143   : > { %5177 = vpow2.f32 %v4823_v60  ;;  %v5938_v1 = vadd.f32 %v5489_v35, %v668_v11  ;;  %v670_v14 = vmul.f32 %v5685_v19, %v5484_v33  ;;  %v669_v60 = vmul.f32 %v5484_v33, %v5694_v52 }
 0x144   : > { %v4826_v6 = vmul.f32 -1.442695, %v5932_v16  ;;  %v8780_v56 = vrot.slane %v5622_v54, 6  ;;  %v8781_v29 = vrot.slane %v5630_v61, 6  ;;  %v4825_v18 = vmul.f32 -1.442695, %v5935_v59 }
 0x145   : > { %v4828_v19 = vmul.f32 -1.442695, %v5938_v1  ;;  %v5960_v0 = vadd.f32 %v5489_v35, %v667_v9  ;;  %v5963_v33 = vadd.f32 %v5489_v35, %v670_v14  ;;  %v5966_v52 = vadd.f32 %v5489_v35, %v669_v60 }
 0x146   : > { %v5952_v62 = vsel %vm1074_vm1, %v8781_v29, %v8780_v56  ;;  %v8782_v34 = vmov %v8781_v29  ;;  %5179 = vpow2.f32 %v4826_v6  ;;  %v1361_v60 = vmax.f32 %v5875_v58, %v1270_v49 }
 0x147   : > { %v1171_v7 = vsel %vm1074_vm1, -inf, %v8782_v34  ;;  %v8689_v56 = vrot.slane %v5952_v62, 1  ;;  %5181 = vpow2.f32 %v4825_v18  ;;  %v4827_v61 = vmul.f32 -1.442695, %v5960_v0 }
 0x148   : > { %v1236_v11 = vrot.slane %v1171_v7, 1  ;;  %v4830_v29 = vmul.f32 -1.442695, %v5963_v33  ;;  %v1381_v34 = vrot.slane %v1171_v7, 2  ;;  %5183 = vpow2.f32 %v4828_v19 }
 0x149   : > { %v4829_v9 = vmul.f32 -1.442695, %v5966_v52  ;;  %v8690_v6 = vrot.slane %v5952_v62, 2  ;;  %v5172_v35 = vpop.eup %5171  ;;  %5185 = vpow2.f32 %v4827_v61  ;;  %v1526_v18 = vrot.slane %v1171_v7, 3 }
 0x14a   : > { %v1238_v14 = vsel %vm1235_vm2, %v1236_v11, %v8689_v56  ;;  %v5174_v40 = vpop.eup %5173  ;;  %v831_v13 = vadd.f32 1.0, %v5172_v35  ;;  %5187 = vpow2.f32 %v4830_v29  ;;  %v8783_v11 = vrot.slane %v5869_v10, 2 }
 0x14b   : > { %v1348_v51 = vmax.f32 %v1171_v7, %v1238_v14  ;;  %v1383_v19 = vsel %vm1380_vm3, %v1381_v34, %v8690_v6  ;;  %v1558_v44 = vsel %vm1525_vm4, %v1556_v21, %v1557_v32  ;;  %5189 = vpow2.f32 %v4829_v9 }
 0x14c   : > { %v5176_v57 = vpop.eup %5175  ;;  %v1415_v56 = vsel %vm1380_vm3, %v1412_v37, %v8783_v11  ;;  %v1505_v61 = vmax.f32 %v1360_v41, %v1413_v28  ;;  %5191 = vrcp.f32 %v831_v13  ;;  %v1671_v14 = vrot.slane %v1171_v7, 4 }
 0x14d   : > { %v1493_v58 = vmax.f32 %v1348_v51, %v1383_v19  ;;  %v5178_v49 = vpop.eup %5177  ;;  %v8693_v29 = vrot.slane %v5952_v62, 4  ;;  %v1506_v35 = vmax.f32 %v1361_v60, %v1415_v56  ;;  %v8784_v34 = vrot.slane %v5869_v10, 3 }
 0x14e   : > { %v1703_v22 = vsel %vm1670_vm5, %v1701_v42, %v1702_v55  ;;  %v8785_v54 = vrot.slane %v5869_v10, 4  ;;  %v1097_v21 = vrot.slane %v5910_v63, 6  ;;  %v952_v51 = vmax.f32 %v5826_v8, %v5913_v26 }
 0x14f   : > { %v1560_v6 = vsel %vm1525_vm4, %v1557_v32, %v8784_v34  ;;  %v5997_v13 = vmul.f32 %v5174_v40, %v5698_v2  ;;  %v8787_v41 = vrot.slane %v5952_v62, 3  ;;  %v8788_v42 = vmax.f32 %v5771_v50, %v5826_v8 }
 0x150   : > { %v1705_v37 = vsel %vm1670_vm5, %v1702_v55, %v8785_v54  ;;  %v6009_v54 = vmul.f32 %v5176_v57, %v5763_v27  ;;  %v830_v63 = vadd.f32 1.0, %v5178_v49  ;;  %v5180_v55 = vpop.eup %5179  ;;  %v1650_v7 = vmax.f32 %v1505_v61, %v1558_v44 }
 0x151   : > { %8786 = vst [vmem:[#allocation29_spill] sm:$0xff] %v5997_v13  ;;  %v1528_v28 = vsel %vm1525_vm4, %v1526_v18, %v8787_v41  ;;  %v6006_v32 = vmax.f32 %v8788_v42, %v5913_v26  ;;  %v1004_v2 = vmax.f32 %v5883_v25, %v5913_v26  ;;  %v8790_v40 = vmax.f32 %v5849_v46, %v5826_v8  ;;  %v5182_v60 = vpop.eup %5181 }
 0x152   : > { %8789 = vst [vmem:[#allocation30_spill] sm:$0xff] %v6009_v54  ;;  %v1638_v10 = vmax.f32 %v1493_v58, %v1528_v28  ;;  %v1673_v9 = vsel %vm1670_vm5, %v1671_v14, %v8693_v29  ;;  %v1651_v18 = vmax.f32 %v1506_v35, %v1560_v6  ;;  %5193 = vrcp.f32 %v830_v63  ;;  %v5184_v19 = vpop.eup %5183 }
 0x153   : > { %v1028_v56 = vmax.f32 %v8790_v40, %v5913_v26  ;;  %v833_v27 = vadd.f32 1.0, %v5180_v55  ;;  %v8791_v44 = vmax.f32 %v5860_v43, %v5872_v45  ;;  %v832_v11 = vadd.f32 1.0, %v5182_v60  ;;  %v5186_v14 = vpop.eup %5185 }
 0x154   : > { %v6020_v57 = vmax.f32 %v1638_v10, %v1673_v9  ;;  %v8792_v46 = vrot.slane %v5643_v5, 6  ;;  %v8793_v58 = vrot.slane %v5664_v23, 6  ;;  %v1030_v35 = vmax.f32 %v1004_v2, %v6009_v54  ;;  %v5188_v41 = vpop.eup %5187 }
 0x155   : > { %v1031_v25 = vmax.f32 %v8791_v44, %v5997_v13  ;;  %5195 = vrcp.f32 %v833_v27  ;;  %v835_v34 = vadd.f32 1.0, %v5184_v19  ;;  %v6044_v43 = vsel %vm1074_vm1, %v5701_v4, %v5707_v12  ;;  %v5190_v63 = vpop.eup %5189 }
 0x156   : > { %v6031_v49 = vsel %vm1074_vm1, %v8793_v58, %v8792_v46  ;;  %v8794_v6 = vmov %v8793_v58  ;;  %3595 = vrot.lane.b32.xlu0 %v6020_v57, %s5353_s13  ;;  %v6047_v23 = vsel %vm1074_vm1, %v1097_v21, -inf  ;;  %v1096_v28 = vrot.slane %v1028_v56, 6  ;;  %v5192_v9 = vpop.eup %5191 }
 0x157   : > { %v6036_v61 = vsel %vm1074_vm1, -inf, %v8794_v6  ;;  %5197 = vrcp.f32 %v832_v11  ;;  %v834_v42 = vadd.f32 1.0, %v5186_v14  ;;  %v6049_v10 = vmax.f32 %v1650_v7, %v1703_v22 }
 0x158   : > { %v837_v55 = vadd.f32 1.0, %v5188_v41  ;;  %v1241_v2 = vrot.slane %v6036_v61, 1  ;;  %v8694_v40 = vrot.slane %v6031_v49, 1  ;;  %5199 = vrcp.f32 %v835_v34 }
 0x159   : > { %v836_v60 = vadd.f32 1.0, %v5190_v63  ;;  %v1246_v4 = vrot.slane %v5728_v39, 1  ;;  %v8692_v27 = vrot.slane %v6044_v43, 1  ;;  %v6055_v19 = vmax.f32 %v1651_v18, %v1705_v37 }
 0x15a   : > { %v1100_v56 = vrot.slane %v1031_v25, 6  ;;  %v1099_v44 = vrot.slane %v1030_v35, 6  ;;  %5201 = vrcp.f32 %v834_v42  ;;  %v6058_v22 = vsel %vm1074_vm1, %v1096_v28, %v1097_v21 }
 0x15b   : > { %v6061_v7 = vsel %vm1074_vm1, -inf, %v1096_v28  ;;  %v955_v11 = vmax.f32 %v5872_v45, %v5997_v13  ;;  %5203 = vrcp.f32 %v837_v55  ;;  %v8795_v46 = vmax.f32 %v5807_v53, %v5872_v45 }
 0x15c   : > { %v1007_v37 = vmax.f32 %v5904_v3, %v5997_v13  ;;  %v954_v18 = vmax.f32 %v5913_v26, %v6009_v54  ;;  %v6074_v21 = vmul.f32 %v5192_v9, %v5853_v17  ;;  %v980_v25 = vmax.f32 %v952_v51, %v6009_v54  ;;  %v5194_v35 = vpop.eup %5193 }
 0x15d   : > { %v981_v58 = vmax.f32 %v8795_v46, %v5997_v13  ;;  %5205 = vrcp.f32 %v836_v60  ;;  %v1243_v6 = vsel %vm1235_vm2, %v1241_v2, %v8694_v40  ;;  %v1248_v14 = vsel %vm1235_vm2, %v1246_v4, %v8692_v27 }
 0x15e   : > { %8796 = vst [vmem:[#allocation31_spill] sm:$0xff] %v6074_v21  ;;  %v6084_v3 = vsel %vm1074_vm1, %v1100_v56, -inf  ;;  %v1006_v34 = vmax.f32 %v6006_v32, %v6009_v54  ;;  %v6089_v17 = vsel %vm1074_vm1, %v1099_v44, %v1100_v56  ;;  %v8797_v51 = vrot.slane %v5724_v48, 1 }
 0x15f   : > { %v8798_v41 = vrot.slane %v5751_v38, 1  ;;  %v1386_v42 = vrot.slane %v6036_v61, 2  ;;  %v8697_v63 = vrot.slane %v6031_v49, 2  ;;  %v1391_v55 = vrot.slane %v5728_v39, 2  ;;  %v5196_v9 = vpop.eup %5195 }
 0x160   : > { %v8698_v2 = vrot.slane %v6044_v43, 2  ;;  %v1033_v32 = vmax.f32 %v1007_v37, %v6074_v21  ;;  %v6102_v60 = vmul.f32 %v5194_v35, %v5891_v47  ;;  %v1350_v4 = vmax.f32 %v6036_v61, %v1243_v6 }
 0x161   : > { %v1253_v28 = vsel %vm1235_vm2, %v8798_v41, %v8797_v51  ;;  %v1352_v56 = vmax.f32 %v5728_v39, %v1248_v14  ;;  %v5198_v46 = vpop.eup %5197  ;;  %v6107_v51 = vsel %vm1074_vm1, -inf, %v1099_v44  ;;  %v1396_v27 = vrot.slane %v5751_v38, 2 }
 0x162   : > { %8799 = vst [vmem:[#allocation32_spill] sm:$0xff] %v6102_v60  ;;  %v1354_v41 = vmax.f32 %v5751_v38, %v1253_v28  ;;  %v957_v37 = vmax.f32 %v5997_v13, %v6074_v21  ;;  %v983_v47 = vmax.f32 %v955_v11, %v6074_v21  ;;  %v1009_v35 = vmax.f32 %v981_v58, %v6074_v21  ;;  %v5200_v14 = vpop.eup %5199 }
 0x163   : > { %v6117_v6 = vmul.f32 %v5196_v9, %v5932_v16  ;;  %v6120_v44 = vmul.f32 %v5198_v46, %v5935_v59  ;;  %v1388_v28 = vsel %vm1380_vm3, %v1386_v42, %v8697_v63  ;;  %v1393_v40 = vsel %vm1380_vm3, %v1391_v55, %v8698_v2 }
 0x164   : > { %v8802_v29 = vrot.slane %v5757_v24, 2  ;;  %v8803_v11 = vrot.slane %v5760_v30, 2  ;;  %v5202_v16 = vpop.eup %5201  ;;  %v1103_v9 = vrot.slane %v1033_v32, 6  ;;  %v1032_v13 = vmax.f32 %v1006_v34, %v6102_v60 }
 0x165   : > { %8800 = vst [vmem:[#allocation33_spill] sm:$0xff] %v6117_v6  ;;  %8801 = vst [vmem:[#allocation34_spill] sm:$0xff] %v6120_v44  ;;  %v6134_v59 = vmax.f32 %v1350_v4, %v1388_v28  ;;  %v6136_v46 = vmax.f32 %v1352_v56, %v1393_v40  ;;  %v5204_v45 = vpop.eup %5203  ;;  %v1008_v42 = vmax.f32 %v980_v25, %v6102_v60  ;;  %v8804_v63 = vrot.slane %v5724_v48, 2 }
 0x166   : > { %v1403_v58 = vsel %vm1380_vm3, %v8803_v11, %v8802_v29  ;;  %v8805_v2 = vmax.f32 %v5760_v30, %v5803_v36  ;;  %v1531_v29 = vrot.slane %v6036_v61, 3  ;;  %v1035_v34 = vmax.f32 %v1009_v35, %v6117_v6 }
 0x167   : > { %v1398_v55 = vsel %vm1380_vm3, %v1396_v27, %v8804_v63  ;;  %v6150_v32 = vmul.f32 %v5200_v14, %v5938_v1  ;;  %v8701_v40 = vrot.slane %v6031_v49, 3  ;;  %v1536_v25 = vrot.slane %v5728_v39, 3  ;;  %v5206_v4 = vpop.eup %5205 }
 0x168   : > { %v6145_v26 = vmax.f32 %v8805_v2, %v1403_v58  ;;  %v956_v27 = vmax.f32 %v6009_v54, %v6102_v60  ;;  %v982_v63 = vmax.f32 %v954_v18, %v6102_v60  ;;  %v1034_v36 = vmax.f32 %v1008_v42, %v6120_v44 }
 0x169   : > { %8806 = vst [vmem:[#allocation35_spill] sm:$0xff] %v6150_v32  ;;  %v1102_v56 = vrot.slane %v1032_v13, 6  ;;  %v6160_v35 = vmul.f32 %v5202_v16, %v5960_v0  ;;  %v6163_v1 = vmul.f32 %v5204_v45, %v5963_v33  ;;  %v985_v14 = vmax.f32 %v957_v37, %v6117_v6 }
 0x16a   : > { %v1011_v28 = vmax.f32 %v983_v47, %v6117_v6  ;;  %v1010_v11 = vmax.f32 %v982_v63, %v6120_v44  ;;  %v1541_v58 = vrot.slane %v5751_v38, 3  ;;  %v8700_v18 = vrot.slane %v5724_v48, 3 }
 0x16b   : > { %8807 = vst [vmem:[#allocation36_spill] sm:$0xff] %v6160_v35  ;;  %8808 = vst [vmem:[#allocation37_spill] sm:$0xff] %v6163_v1  ;;  %v1106_v42 = vrot.slane %v1035_v34, 6  ;;  %v1013_v2 = vmax.f32 %v985_v14, %v6150_v32  ;;  %v6172_v13 = vmul.f32 %v5206_v4, %v5966_v52  ;;  %v984_v0 = vmax.f32 %v956_v27, %v6120_v44 }
 0x16c   : > { %v6176_v45 = vsel %vm1074_vm1, %v1103_v9, -inf  ;;  %v1105_v33 = vrot.slane %v1034_v36, 6  ;;  %v1037_v37 = vmax.f32 %v1011_v28, %v6150_v32  ;;  %v1499_v47 = vmax.f32 %v1354_v41, %v1398_v55 }
 0x16d   : > { %8809 = vst [vmem:[#allocation38_spill] sm:$0xff] %v6172_v13  ;;  %v1036_v16 = vmax.f32 %v1010_v11, %v6160_v35  ;;  %v1039_v63 = vmax.f32 %v1013_v2, %v6163_v1  ;;  %v1012_v34 = vmax.f32 %v984_v0, %v6160_v35  ;;  %v1533_v52 = vsel %vm1525_vm4, %v1531_v29, %v8701_v40 }
 0x16e   : > { %v6186_v4 = vsel %vm1074_vm1, %v1102_v56, %v1103_v9  ;;  %v6189_v27 = vsel %vm1074_vm1, -inf, %v1102_v56  ;;  %v8810_v36 = vrot.slane %v6044_v43, 3  ;;  %v1543_v55 = vsel %vm1525_vm4, %v1541_v58, %v8700_v18 }
 0x16f   : > { %v6198_v2 = vsel %vm1074_vm1, %v1106_v42, -inf  ;;  %v1038_v14 = vmax.f32 %v1012_v34, %v6172_v13  ;;  %v1676_v29 = vrot.slane %v6036_v61, 4  ;;  %v6204_v56 = vsel %vm1074_vm1, %v1105_v33, %v1106_v42 }
 0x170   : > { %v1538_v41 = vsel %vm1525_vm4, %v1536_v25, %v8810_v36  ;;  %v1109_v28 = vrot.slane %v1037_v37, 6  ;;  %v1640_v11 = vmax.f32 %v6134_v59, %v1533_v52  ;;  %v5343_v25 = vld [vmem:[%s8663_s2] ss:$0 sm:$0xff]  ;;  %v1108_v0 = vrot.slane %v1036_v16, 6 }
 0x171   : > { %v672_v58 = vmul.f32 %v5343_v25, %v5710_v20  ;;  %v1112_v36 = vrot.slane %v1039_v63, 6  ;;  %v1681_v34 = vrot.slane %v5728_v39, 4  ;;  %v8811_v18 = vrot.slane %v5757_v24, 3 }
 0x172   : > { %v8812_v42 = vrot.slane %v5760_v30, 3  ;;  %v1642_v59 = vmax.f32 %v6136_v46, %v1538_v41  ;;  %v1686_v52 = vrot.slane %v5751_v38, 4  ;;  %v8704_v40 = vrot.slane %v5724_v48, 4  ;;  %v5344_v38 = vld [vmem:[%s8664_s3] ss:$0 sm:$0xff] }
 0x173   : > { %v1111_v9 = vrot.slane %v1038_v14, 6  ;;  %v1644_v20 = vmax.f32 %v1499_v47, %v1543_v55  ;;  %v8813_v16 = vrot.slane %v6031_v49, 4  ;;  %v8703_v63 = vrot.slane %v5757_v24, 4 }
 0x174   : > { %v1548_v37 = vsel %vm1525_vm4, %v8812_v42, %v8811_v18  ;;  %v6226_v61 = vsel %vm1074_vm1, -inf, %v1105_v33  ;;  %v6234_v46 = vadd.f32 %v5344_v38, %v672_v58  ;;  %v6237_v47 = vsel %vm1074_vm1, %v1109_v28, -inf }
 0x175   : > { %v1678_v39 = vsel %vm1670_vm5, %v1676_v29, %v8813_v16  ;;  %v1646_v54 = vmax.f32 %v6145_v26, %v1548_v37  ;;  %8814 = vst [vmem:[#allocation39_spill] sm:$0xff] %v6237_v47  ;;  %v6240_v41 = vsel %vm1074_vm1, %v1108_v0, %v1109_v28  ;;  %v6243_v55 = vsel %vm1074_vm1, %v1112_v36, -inf }
 0x176   : > { %v6229_v18 = vmax.f32 %v1640_v11, %v1678_v39  ;;  %8815 = vst [vmem:[#allocation40_spill] sm:$0xff] %v6240_v41  ;;  %8816 = vst [vmem:[#allocation41_spill] sm:$0xff] %v6243_v55  ;;  %v8817_v33 = vrot.slane %v6044_v43, 4  ;;  %v1688_v14 = vsel %vm1670_vm5, %v1686_v52, %v8704_v40  ;;  %v4832_v11 = vmul.f32 -1.442695, %v6234_v46 }
 0x177   : > { %v671_v58 = vmul.f32 %v5343_v25, %v5718_v31  ;;  %v6256_v28 = vsel %vm1074_vm1, %v1111_v9, %v1112_v36  ;;  %v6259_v42 = vsel %vm1074_vm1, -inf, %v1111_v9  ;;  %v6266_v16 = vmax.f32 %v1644_v20, %v1688_v14 }
 0x178   : > { %v1683_v26 = vsel %vm1670_vm5, %v1681_v34, %v8817_v33  ;;  %8818 = vst [vmem:[#allocation42_spill] sm:$0xff] %v6256_v28  ;;  %8819 = vst [vmem:[#allocation43_spill] sm:$0xff] %v6259_v42  ;;  %v8820_v34 = vrot.slane %v5760_v30, 4  ;;  %v1815_v52 = vmax.f32 %v6020_v57, %v6229_v18  ;;  %5207 = vpow2.f32 %v4832_v11 }
 0x179   : > { %v6251_v29 = vmax.f32 %v1642_v59, %v1683_v26  ;;  %v6272_v31 = vadd.f32 %v5344_v38, %v671_v58  ;;  %v6275_v25 = vsel %vm1074_vm1, -inf, %v1108_v0  ;;  %v959_v26 = vmax.f32 %v6074_v21, %v6117_v6 }
 0x17a   : > { %v1693_v37 = vsel %vm1670_vm5, %v8820_v34, %v8703_v63  ;;  %v961_v58 = vmax.f32 %v6117_v6, %v6150_v32  ;;  %v1189_v53 = vsel %vm1074_vm1, %v5707_v12, -inf  ;;  %v8826_v40 = vrot.slane %v5952_v62, 2 }
 0x17b   : > { %v6268_v59 = vmax.f32 %v1646_v54, %v1693_v37  ;;  %v6283_v39 = vmax.f32 %v1815_v52, %v6251_v29  ;;  %v4831_v57 = vmul.f32 -1.442695, %v6272_v31  ;;  %v1817_v0 = vmax.f32 %v6229_v18, %v6251_v29 }
 0x17c   : > { %v1819_v33 = vmax.f32 %v6251_v29, %v6266_v16  ;;  %v6306_v30 = vmax.f32 %v959_v26, %v6150_v32  ;;  %v6314_v38 = vmax.f32 %v961_v58, %v6163_v1  ;;  %v958_v26 = vmax.f32 %v6102_v60, %v6120_v44 }
 0x17d   : > { %8821 = vst [vmem:[#allocation44_spill] sm:$0xff] %v6268_v59  ;;  %v1821_v14 = vmax.f32 %v6266_v16, %v6268_v59  ;;  %v6297_v11 = vmax.f32 %v6283_v39, %v6266_v16  ;;  %5209 = vpow2.f32 %v4831_v57  ;;  %v1845_v34 = vmax.f32 %v1817_v0, %v6266_v16  ;;  %v8822_v57 = vld [vmem:[#allocation9_spill] sm:$0xff] }
 0x17e   : > { %v1847_v37 = vmax.f32 %v1819_v33, %v6268_v59  ;;  %v8823_v20 = vrot.slane %v8822_v57, 6  ;;  %v960_v58 = vmax.f32 %v6120_v44, %v6160_v35  ;;  %v8824_v57 = vrot.slane %v5643_v5, 6 }
 0x17f   : > { %v6309_v36 = vmax.f32 %v1821_v14, %v5897_v15  ;;  %v1897_v9 = vmax.f32 %v6297_v11, %v6268_v59  ;;  %v1873_v33 = vmax.f32 %v1845_v34, %v6268_v59  ;;  %v6340_v14 = vmax.f32 %v958_v26, %v6160_v35 }
 0x180   : > { %v1187_v0 = vsel %vm1074_vm1, %v8823_v20, -inf  ;;  %v1875_v54 = vmax.f32 %v1847_v37, %v5897_v15  ;;  %v1188_v20 = vsel %vm1074_vm1, %v8824_v57, -inf  ;;  %v8825_v44 = vrot.slane %v5952_v62, 1 }
 0x181   : > { %v1239_v52 = vrot.slane %v1187_v0, 1  ;;  %v6332_v34 = vmax.f32 %v1873_v33, %v5897_v15  ;;  %v6342_v6 = vrot.slane %v1897_v9, 6  ;;  %v1384_v57 = vrot.slane %v1187_v0, 2 }
 0x182   : > { %v6335_v37 = vmax.f32 %v1875_v54, %v6049_v10  ;;  %v5208_v63 = vpop.eup %5207  ;;  %v1529_v21 = vrot.slane %v1187_v0, 3  ;;  %v1244_v54 = vrot.slane %v1188_v20, 1  ;;  %v1674_v8 = vrot.slane %v1187_v0, 4 }
 0x183   : > { %v1240_v5 = vsel %vm1235_vm2, %v8825_v44, %v1239_v52  ;;  %v839_v33 = vadd.f32 1.0, %v5208_v63  ;;  %v1385_v26 = vsel %vm1380_vm3, %v8826_v40, %v1384_v57  ;;  %v1389_v9 = vrot.slane %v1188_v20, 2 }
 0x184   : > { %v1349_v60 = vmax.f32 %v5952_v62, %v1240_v5  ;;  %v1534_v50 = vrot.slane %v1188_v20, 3  ;;  %v8827_v52 = vrot.slane %v6031_v49, 1  ;;  %v8828_v42 = vrot.slane %v5952_v62, 3 }
 0x185   : > { %5211 = vrcp.f32 %v839_v33  ;;  %v8829_v40 = vrot.slane %v6031_v49, 2  ;;  %v1679_v57 = vrot.slane %v1188_v20, 4  ;;  %v1249_v33 = vrot.slane %v1189_v53, 1 }
 0x186   : > { %v1494_v44 = vmax.f32 %v1349_v60, %v1385_v26  ;;  %v1245_v63 = vsel %vm1235_vm2, %v8827_v52, %v1244_v54  ;;  %v1530_v12 = vsel %vm1525_vm4, %v8828_v42, %v1529_v21  ;;  %v1394_v60 = vrot.slane %v1189_v53, 2 }
 0x187   : > { %v5210_v5 = vpop.eup %5209  ;;  %v1351_v28 = vmax.f32 %v6031_v49, %v1245_v63  ;;  %v1390_v0 = vsel %vm1380_vm3, %v8829_v40, %v1389_v9  ;;  %v1965_v26 = vrot.slane %v6335_v37, 6  ;;  %v8830_v54 = vrot.slane %v5952_v62, 4  ;;  %v8833_v40 = vld [vmem:[#allocation17_spill] sm:$0xff] }
 0x188   : > { %v838_v47 = vadd.f32 1.0, %v5210_v5  ;;  %v1639_v55 = vmax.f32 %v1494_v44, %v1530_v12  ;;  %v8831_v21 = vrot.slane %v6031_v49, 3  ;;  %v8832_v20 = vrot.slane %v6044_v43, 1 }
 0x189   : > { %v1675_v52 = vsel %vm1670_vm5, %v8830_v54, %v1674_v8  ;;  %v1496_v41 = vmax.f32 %v1351_v28, %v1390_v0  ;;  %v1539_v44 = vrot.slane %v1189_v53, 3  ;;  %v8720_v5 = vrot.slane %v6297_v11, 6  ;;  %v8838_v54 = vld [vmem:[#allocation20_spill] sm:$0xff] }
 0x18a   : > { %v1535_v42 = vsel %vm1525_vm4, %v8831_v21, %v1534_v50  ;;  %5213 = vrcp.f32 %v838_v47  ;;  %v6371_v63 = vmax.f32 %v1639_v55, %v1675_v52  ;;  %v1250_v9 = vsel %vm1235_vm2, %v8832_v20, %v1249_v33 }
 0x18b   : > { %v1641_v12 = vmax.f32 %v1496_v41, %v1535_v42  ;;  %v1353_v62 = vmax.f32 %v6044_v43, %v1250_v9  ;;  %v8834_v8 = vrot.slane %v8833_v40, 2  ;;  %v8835_v28 = vrot.slane %v5724_v48, 2 }
 0x18c   : > { %3597 = vrot.lane.b32.xlu0 %v6371_v63, %s5353_s13  ;;  %v8836_v50 = vrot.slane %v6031_v49, 4  ;;  %v8837_v55 = vrot.slane %v6044_v43, 2  ;;  %v1684_v41 = vrot.slane %v1189_v53, 4  ;;  %v8839_v52 = vmax.f32 %v5724_v48, %v8838_v54 }
 0x18d   : > { %v1400_v0 = vsel %vm1380_vm3, %v8835_v28, %v8834_v8  ;;  %v6396_v42 = vsel %vm1074_vm1, -inf, %v6342_v6  ;;  %v8840_v20 = vrot.slane %v6332_v34, 6  ;;  %v8841_v8 = vrot.slane %v6283_v39, 6 }
 0x18e   : > { %v1680_v47 = vsel %vm1670_vm5, %v8836_v50, %v1679_v57  ;;  %v1395_v33 = vsel %vm1380_vm3, %v8837_v55, %v1394_v60  ;;  %v1500_v21 = vmax.f32 %v8839_v52, %v1400_v0  ;;  %v6411_v53 = vsel %vm1074_vm1, -inf, %v1965_v26 }
 0x18f   : > { %v6401_v9 = vsel %vm1074_vm1, -inf, %v8840_v20  ;;  %v1786_v49 = vmax.f32 %v1641_v12, %v1680_v47  ;;  %v1498_v57 = vmax.f32 %v1353_v62, %v1395_v33  ;;  %v6406_v60 = vsel %vm1074_vm1, -inf, %v8841_v8  ;;  %v5212_v52 = vpop.eup %5211 }
 0x190   : > { %v8842_v28 = vrot.slane %v6044_v43, 3  ;;  %v8843_v50 = vrot.slane %v8833_v40, 3  ;;  %v8844_v55 = vrot.slane %v5724_v48, 3  ;;  %v6422_v62 = vmax.f32 %v960_v58, %v6172_v13  ;;  %3599 = vrot.lane.b32.xlu0 %v6229_v18, %s5353_s13 }
 0x191   : > { %v1014_v47 = vmax.f32 %v6340_v14, %v6172_v13  ;;  %3601 = vrot.lane.b32.xlu1 %v1786_v49, %s5353_s13  ;;  %v8845_v58 = vrot.slane %v6044_v43, 4  ;;  %v8849_v18 = vrot.slane %v8833_v40, 4  ;;  %v8850_v43 = vrot.slane %v5724_v48, 4 }
 0x192   : > { %v1540_v0 = vsel %vm1525_vm4, %v8842_v28, %v1539_v44  ;;  %v1545_v12 = vsel %vm1525_vm4, %v8844_v55, %v8843_v50  ;;  %v6430_v44 = vsel %vm1074_vm1, -inf, %v8720_v5  ;;  %v8848_v50 = vld [vmem:[#allocation25_spill] sm:$0xff] }
 0x193   : > { %v1643_v33 = vmax.f32 %v1498_v57, %v1540_v0  ;;  %v1645_v54 = vmax.f32 %v1500_v21, %v1545_v12  ;;  %v1685_v14 = vsel %vm1670_vm5, %v8845_v58, %v1684_v41  ;;  %v6441_v21 = vmul.f32 %v5212_v52, %v6234_v46  ;;  %v8847_v0 = vld [vmem:[#allocation24_spill] sm:$0xff] }
 0x194   : > { %v1647_v55 = vmax.f32 %v8848_v50, %v8847_v0  ;;  %v1690_v41 = vsel %vm1670_vm5, %v8850_v43, %v8849_v18  ;;  %v5214_v0 = vpop.eup %5213  ;;  %v8852_v50 = vld [vmem:[#allocation19_spill] sm:$0xff]  ;;  %v8854_v43 = vrot.slane %v5757_v24, 4  ;;  %3603 = vrot.lane.b32.xlu0 %v6251_v29, %s5353_s13  ;;  %v1416_v12 = vrot.slane %v6061_v7, 2 }
 0x195   : > { %8846 = vst [vmem:[#allocation9_spill] sm:$0xff] %v6441_v21  ;;  %v1788_v28 = vmax.f32 %v1643_v33, %v1685_v14  ;;  %v8851_v33 = vmax.f32 %v6306_v30, %v6163_v1  ;;  %v6460_v14 = vmax.f32 %v1645_v54, %v1690_v41  ;;  %v1017_v48 = vmax.f32 %v6314_v38, %v6441_v21 }
 0x196   : > { %v8853_v18 = vrot.slane %v8852_v50, 4  ;;  %v1816_v54 = vmax.f32 %v6371_v63, %v1786_v49  ;;  %v8855_v38 = vmax.f32 %v6150_v32, %v6163_v1  ;;  %v6485_v50 = vmul.f32 %v5214_v0, %v6272_v31 }
 0x197   : > { %v1041_v52 = vmax.f32 %v8851_v33, %v6441_v21  ;;  %3605 = vrot.lane.b32.xlu1 %v1788_v28, %s5353_s13  ;;  %v1818_v29 = vmax.f32 %v1786_v49, %v1788_v28  ;;  %v1820_v63 = vmax.f32 %v1788_v28, %v6460_v14  ;;  %v1118_v20 = vrot.slane %v1017_v48, 6 }
 0x198   : > { %v1695_v46 = vsel %vm1670_vm5, %v8854_v43, %v8853_v18  ;;  %v6482_v24 = vmax.f32 %v8855_v38, %v6441_v21  ;;  %8856 = vst [vmem:[#allocation17_spill] sm:$0xff] %v6485_v50  ;;  %3607 = vrot.lane.b32.xlu0 %v6266_v16, %s5353_s13  ;;  %v1271_v49 = vrot.slane %v6061_v7, 1  ;;  %v8721_v0 = vrot.slane %v6058_v22, 1 }
 0x199   : > { %v6474_v41 = vmax.f32 %v1647_v55, %v1695_v46  ;;  %v1115_v43 = vrot.slane %v1041_v52, 6  ;;  %v1846_v38 = vmax.f32 %v1818_v29, %v6460_v14  ;;  %v8722_v58 = vrot.slane %v6058_v22, 2  ;;  %v8858_v46 = vld [vmem:[#allocation27_spill] sm:$0xff] }
 0x19a   : > { %v1121_v8 = vrot.slane %v6482_v24, 6  ;;  %v1040_v48 = vmax.f32 %v1014_v47, %v6485_v50  ;;  %v6504_v29 = vmax.f32 %v1816_v54, %v1788_v28  ;;  %v6516_v24 = vsel %vm1074_vm1, %v1118_v20, -inf }
 0x19b   : > { %3609 = vrot.lane.b32.xlu1 %v6460_v14, %s5353_s13  ;;  %v1848_v52 = vmax.f32 %v1820_v63, %v6474_v41  ;;  %v1874_v16 = vmax.f32 %v1846_v38, %v6474_v41  ;;  %v6508_v31 = vsel %vm1074_vm1, %v1115_v43, -inf  ;;  %8859 = vst [vmem:[#allocation24_spill] sm:$0xff] %v6516_v24  ;;  %v1016_v47 = vmax.f32 %v6422_v62, %v6485_v50 }
 0x19c   : > { %8857 = vst [vmem:[#allocation20_spill] sm:$0xff] %v6508_v31  ;;  %v1114_v28 = vrot.slane %v1040_v48, 6  ;;  %3611 = vrot.lane.b32.xlu0 %v6268_v59, %s5353_s13  ;;  %v8860_v38 = vmax.f32 %v6160_v35, %v6172_v13  ;;  %v6531_v5 = vsel %vm1235_vm2, %v1271_v49, %v8721_v0  ;;  %v6535_v48 = vsel %vm1074_vm1, %v1121_v8, -inf }
 0x19d   : > { %v1876_v55 = vmax.f32 %v1848_v52, %v8858_v46  ;;  %v1900_v54 = vmax.f32 %v1874_v16, %v8858_v46  ;;  %8861 = vst [vmem:[#allocation25_spill] sm:$0xff] %v6535_v48  ;;  %v6539_v16 = vmax.f32 %v6504_v29, %v6460_v14  ;;  %v1954_v18 = vrot.slane %v6504_v29, 6 }
 0x19e   : > { %v990_v52 = vmax.f32 %v8860_v38, %v6485_v50  ;;  %v6550_v0 = vsel %vm1074_vm1, %v1114_v28, %v1115_v43  ;;  %v6553_v62 = vsel %vm1074_vm1, -inf, %v1114_v28  ;;  %v1117_v33 = vrot.slane %v1016_v47, 6 }
 0x19f   : > { %3613 = vrot.lane.b32.xlu1 %v6474_v41, %s5353_s13  ;;  %v1902_v63 = vmax.f32 %v1876_v55, %v6055_v19  ;;  %v6545_v55 = vsel %vm1380_vm3, %v1416_v12, %v8722_v58  ;;  %8862 = vst [vmem:[#allocation19_spill] sm:$0xff] %v6550_v0  ;;  %8863 = vst [vmem:[#allocation27_spill] sm:$0xff] %v6553_v62  ;;  %v1963_v12 = vrot.slane %v1900_v54, 6  ;;  %v1301_v58 = vrot.slane %v6553_v62, 1 }
 0x1a0   : > { %3615 = vrot.lane.b32.xlu0 %v5897_v15, %s5353_s13  ;;  %v1120_v38 = vrot.slane %v990_v52, 6  ;;  %v1898_v43 = vmax.f32 %v6539_v16, %v6474_v41  ;;  %v8725_v30 = vrot.slane %v6550_v0, 1  ;;  %v8864_v29 = vrot.slane %v6332_v34, 6 }
 0x1a1   : > { %v1966_v28 = vrot.slane %v1902_v63, 6  ;;  %v6572_v47 = vsel %vm1074_vm1, %v1963_v12, -inf  ;;  %v6585_v34 = vsel %vm1074_vm1, -inf, %v1117_v33  ;;  %v8866_v57 = vrot.slane %v6283_v39, 6 }
 0x1a2   : > { %v6569_v40 = vsel %vm1074_vm1, %v8864_v29, %v1963_v12  ;;  %8865 = vst [vmem:[#allocation45_spill] sm:$0xff] %v6585_v34  ;;  %v2131_v12 = vrot.slane %v6572_v47, 1  ;;  %v6595_v37 = vsel %vm1074_vm1, %v1117_v33, %v1118_v20  ;;  %v1957_v52 = vrot.slane %v6539_v16, 6 }
 0x1a3   : > { %3617 = vrot.lane.b32.xlu1 %v8858_v46, %s5353_s13  ;;  %v6579_v63 = vsel %vm1074_vm1, %v1965_v26, %v1966_v28  ;;  %v6582_v49 = vsel %vm1074_vm1, %v1966_v28, -inf  ;;  %v1955_v54 = vsel %vm1074_vm1, %v8866_v57, %v1954_v18  ;;  %8867 = vst [vmem:[#allocation46_spill] sm:$0xff] %v6595_v37  ;;  %v6598_v26 = vsel %vm1074_vm1, %v1120_v38, %v1121_v8 }
 0x1a4   : > { %3619 = vrot.lane.b32.xlu0 %v6049_v10, %s5353_s13  ;;  %8868 = vst [vmem:[#allocation47_spill] sm:$0xff] %v6598_v26  ;;  %v6601_v28 = vsel %vm1074_vm1, -inf, %v1120_v38  ;;  %v6607_v39 = vsel %vm1235_vm2, %v1301_v58, %v8725_v30  ;;  %v6609_v57 = vrot.slane %v1898_v43, 6  ;;  %v2134_v29 = vrot.slane %v6579_v63, 1 }
 0x1a5   : > { %8869 = vst [vmem:[#allocation48_spill] sm:$0xff] %v6601_v28  ;;  %8870 = vst [vmem:[#allocation49_spill] sm:$0xff] %v6607_v39  ;;  %v2136_v20 = vrot.slane %v6582_v49, 1  ;;  %v2114_v21 = vrot.slane %v1955_v54, 1  ;;  %v8871_v50 = vrot.slane %v6569_v40, 1  ;;  %v2275_v30 = vrot.slane %v6572_v47, 2 }
 0x1a6   : > { %v2258_v38 = vrot.slane %v1955_v54, 2  ;;  %v8872_v43 = vrot.slane %v6411_v53, 1  ;;  %v8873_v8 = vrot.slane %v6406_v60, 1  ;;  %v8874_v35 = vrot.slane %v6569_v40, 2 }
 0x1a7   : > { %v6620_v58 = vsel %vm1235_vm2, %v8871_v50, %v2131_v12  ;;  %v6629_v13 = vsel %vm1235_vm2, %v2134_v29, %v2136_v20  ;;  %v2402_v12 = vrot.slane %v1955_v54, 3  ;;  %v2546_v48 = vrot.slane %v1955_v54, 4 }
 0x1a8   : > { %v6636_v32 = vsel %vm1235_vm2, %v8872_v43, %v2134_v29  ;;  %v2115_v20 = vsel %vm1235_vm2, %v8873_v8, %v2114_v21  ;;  %v6647_v16 = vsel %vm1380_vm3, %v8874_v35, %v2275_v30  ;;  %v2065_v29 = vsel %vm1074_vm1, %v1954_v18, -inf }
 0x1a9   : > { %v2225_v50 = vmax.f32 %v6406_v60, %v2115_v20  ;;  %v8875_v1 = vrot.slane %v6406_v60, 2  ;;  %v2116_v26 = vrot.slane %v2065_v29, 1  ;;  %v2260_v28 = vrot.slane %v2065_v29, 2 }
 0x1aa   : > { %v8876_v35 = vrot.slane %v6406_v60, 3  ;;  %v2404_v20 = vrot.slane %v2065_v29, 3  ;;  %v8877_v34 = vrot.slane %v6406_v60, 4  ;;  %v2548_v37 = vrot.slane %v2065_v29, 4 }
 0x1ab   : > { %v2259_v33 = vsel %vm1380_vm3, %v8875_v1, %v2258_v38  ;;  %v2117_v43 = vsel %vm1235_vm2, %v2114_v21, %v2116_v26  ;;  %v8878_v31 = vrot.slane %v6297_v11, 6  ;;  %v2066_v59 = vsel %vm1074_vm1, %v1957_v52, -inf }
 0x1ac   : > { %v2369_v24 = vmax.f32 %v2225_v50, %v2259_v33  ;;  %v2403_v30 = vsel %vm1525_vm4, %v8876_v35, %v2402_v12  ;;  %v2547_v18 = vsel %vm1670_vm5, %v8877_v34, %v2546_v48  ;;  %v2226_v0 = vmax.f32 %v1955_v54, %v2117_v43 }
 0x1ad   : > { %v1958_v1 = vsel %vm1074_vm1, %v8878_v31, %v1957_v52  ;;  %v2261_v33 = vsel %vm1380_vm3, %v2258_v38, %v2260_v28  ;;  %v8879_v21 = vrot.slane %v6430_v44, 1  ;;  %v2121_v11 = vrot.slane %v2066_v59, 1 }
 0x1ae   : > { %v2513_v39 = vmax.f32 %v2369_v24, %v2403_v30  ;;  %v2119_v50 = vrot.slane %v1958_v1, 1  ;;  %v2263_v8 = vrot.slane %v1958_v1, 2  ;;  %v2407_v62 = vrot.slane %v1958_v1, 3 }
 0x1af   : > { %v2551_v35 = vrot.slane %v1958_v1, 4  ;;  %v2370_v34 = vmax.f32 %v2226_v0, %v2261_v33  ;;  %v2424_v31 = vrot.slane %v6582_v49, 3  ;;  %v2405_v24 = vsel %vm1525_vm4, %v2402_v12, %v2404_v20 }
 0x1b0   : > { %v6669_v60 = vmax.f32 %v2513_v39, %v2547_v18  ;;  %v2120_v26 = vsel %vm1235_vm2, %v8879_v21, %v2119_v50  ;;  %v2549_v54 = vsel %vm1670_vm5, %v2546_v48, %v2548_v37  ;;  %v8880_v0 = vrot.slane %v6430_v44, 2 }
 0x1b1   : > { %v2227_v28 = vmax.f32 %v6430_v44, %v2120_v26  ;;  %v2514_v52 = vmax.f32 %v2370_v34, %v2405_v24  ;;  %v2122_v38 = vsel %vm1235_vm2, %v2119_v50, %v2121_v11  ;;  %v2265_v29 = vrot.slane %v2066_v59, 2 }
 0x1b2   : > { %3723 = vrot.lane.b32.xlu1 %v6669_v60, %s5354_s18  ;;  %v2264_v39 = vsel %vm1380_vm3, %v8880_v0, %v2263_v8  ;;  %v2228_v30 = vmax.f32 %v1958_v1, %v2122_v38  ;;  %v2409_v18 = vrot.slane %v2066_v59, 3  ;;  %v1362_v48 = vmax.f32 %v6061_v7, %v6531_v5 }
 0x1b3   : > { %v2371_v43 = vmax.f32 %v2227_v28, %v2264_v39  ;;  %v6686_v37 = vmax.f32 %v2514_v52, %v2549_v54  ;;  %v8881_v12 = vrot.slane %v6430_v44, 3  ;;  %v8882_v33 = vrot.slane %v6430_v44, 4 }
 0x1b4   : > { %v2266_v21 = vsel %vm1380_vm3, %v2263_v8, %v2265_v29  ;;  %v2553_v11 = vrot.slane %v2066_v59, 4  ;;  %v1507_v1 = vmax.f32 %v1362_v48, %v6545_v55  ;;  %v8883_v5 = vrot.slane %v6058_v22, 3 }
 0x1b5   : > { %v2408_v20 = vsel %vm1525_vm4, %v8881_v12, %v2407_v62  ;;  %v2552_v34 = vsel %vm1670_vm5, %v8882_v33, %v2551_v35  ;;  %v2372_v26 = vmax.f32 %v2228_v30, %v2266_v21  ;;  %v8884_v24 = vrot.slane %v6061_v7, 3 }
 0x1b6   : > { %v2515_v50 = vmax.f32 %v2371_v43, %v2408_v20  ;;  %3725 = vrot.lane.b32.xlu1 %v6686_v37, %s5354_s18  ;;  %v1706_v44 = vrot.slane %v6061_v7, 4  ;;  %v1707_v28 = vrot.slane %v6058_v22, 4  ;;  %v1274_v8 = vrot.slane %v6047_v23, 1 }
 0x1b7   : > { %v1563_v54 = vsel %vm1525_vm4, %v8884_v24, %v8883_v5  ;;  %v2410_v59 = vsel %vm1525_vm4, %v2407_v62, %v2409_v18  ;;  %v1419_v0 = vrot.slane %v6047_v23, 2  ;;  %v2233_v39 = vmax.f32 %v6411_v53, %v6636_v32 }
 0x1b8   : > { %v6706_v52 = vmax.f32 %v2515_v50, %v2552_v34  ;;  %v1652_v55 = vmax.f32 %v1507_v1, %v1563_v54  ;;  %v2516_v38 = vmax.f32 %v2372_v26, %v2410_v59  ;;  %v8885_v29 = vrot.slane %v6058_v22, 1 }
 0x1b9   : > { %v1564_v7 = vrot.slane %v6047_v23, 3  ;;  %v8886_v30 = vrot.slane %v6579_v63, 2  ;;  %v8887_v48 = vrot.slane %v6411_v53, 2  ;;  %v8888_v62 = vrot.slane %v6582_v49, 2 }
 0x1ba   : > { %v1275_v43 = vsel %vm1235_vm2, %v8885_v29, %v1274_v8  ;;  %v2419_v32 = vrot.slane %v6572_v47, 3  ;;  %3727 = vrot.lane.b32.xlu0 %v6706_v52, %s5354_s18  ;;  %v8890_v34 = vmax.f32 %v6579_v63, %v6629_v13  ;;  %v8891_v50 = vrot.slane %v6579_v63, 3  ;;  %3621 = vrot.lane.b32.xlu1 %v6055_v19, %s5353_s13 }
 0x1bb   : > { %v2279_v12 = vsel %vm1380_vm3, %v8887_v48, %v8886_v30  ;;  %v8889_v18 = vmov %v8886_v30  ;;  %v1363_v33 = vmax.f32 %v6058_v22, %v1275_v43  ;;  %v1708_v1 = vsel %vm1670_vm5, %v1706_v44, %v1707_v28 }
 0x1bc   : > { %v2281_v20 = vsel %vm1380_vm3, %v8889_v18, %v8888_v62  ;;  %v2425_v26 = vsel %vm1525_vm4, %v8891_v50, %v2424_v31  ;;  %v8892_v5 = vrot.slane %v6058_v22, 2  ;;  %v2554_v54 = vsel %vm1670_vm5, %v2551_v35, %v2553_v11 }
 0x1bd   : > { %v2378_v21 = vmax.f32 %v8890_v34, %v2281_v20  ;;  %v6743_v8 = vmax.f32 %v1652_v55, %v1708_v1  ;;  %v1709_v13 = vrot.slane %v6047_v23, 4  ;;  %v2566_v29 = vrot.slane %v6579_v63, 4 }
 0x1be   : > { %v1420_v24 = vsel %vm1380_vm3, %v8892_v5, %v1419_v0  ;;  %v6747_v43 = vmax.f32 %v2516_v38, %v2554_v54  ;;  %v8893_v31 = vrot.slane %v6058_v22, 3  ;;  %v6755_v44 = vsel %vm1074_vm1, %v6342_v6, %v6609_v57 }
 0x1bf   : > { %v1508_v59 = vmax.f32 %v1363_v33, %v1420_v24  ;;  %v2568_v35 = vrot.slane %v6582_v49, 4  ;;  %3623 = vrot.lane.b32.xlu0 %v6743_v8, %s5353_s13  ;;  %v2124_v23 = vrot.slane %v6755_v44, 1  ;;  %v2267_v55 = vrot.slane %v6396_v42, 2 }
 0x1c0   : > { %v1565_v30 = vsel %vm1525_vm4, %v8893_v31, %v1564_v7  ;;  %v8894_v22 = vmax.f32 %v6569_v40, %v6620_v58  ;;  %v6768_v38 = vmax.f32 %v2233_v39, %v2279_v12  ;;  %v2522_v6 = vmax.f32 %v2378_v21, %v2425_v26  ;;  %3729 = vrot.lane.b32.xlu1 %v6747_v43, %s5354_s18 }
 0x1c1   : > { %v1653_v11 = vmax.f32 %v1508_v59, %v1565_v30  ;;  %v2268_v49 = vrot.slane %v6755_v44, 2  ;;  %v1710_v7 = vsel %vm1670_vm5, %v1707_v28, %v1709_v13  ;;  %v8895_v48 = vrot.slane %v6396_v42, 1 }
 0x1c2   : > { %v6766_v0 = vmax.f32 %v8894_v22, %v6647_v16  ;;  %v2411_v18 = vrot.slane %v6396_v42, 3  ;;  %v2412_v58 = vrot.slane %v6755_v44, 3  ;;  %v2561_v16 = vrot.slane %v6569_v40, 4 }
 0x1c3   : > { %v2125_v62 = vsel %vm1235_vm2, %v8895_v48, %v2124_v23  ;;  %v2563_v39 = vrot.slane %v6572_v47, 4  ;;  %v6781_v12 = vmax.f32 %v1653_v11, %v1710_v7  ;;  %v8896_v33 = vrot.slane %v6569_v40, 3 }
 0x1c4   : > { %v2229_v20 = vmax.f32 %v6396_v42, %v2125_v62  ;;  %v8897_v34 = vmov %v8891_v50  ;;  %v8898_v21 = vrot.slane %v6411_v53, 3  ;;  %v2569_v26 = vsel %vm1670_vm5, %v2566_v29, %v2568_v35 }
 0x1c5   : > { %v6787_v28 = vsel %vm1525_vm4, %v8896_v33, %v2419_v32  ;;  %v2269_v1 = vsel %vm1380_vm3, %v2267_v55, %v2268_v49  ;;  %v6800_v5 = vmax.f32 %v2522_v6, %v2569_v26  ;;  %3625 = vrot.lane.b32.xlu1 %v6781_v12, %s5353_s13  ;;  %v2555_v24 = vrot.slane %v6396_v42, 4 }
 0x1c6   : > { %v6794_v50 = vsel %vm1525_vm4, %v8898_v21, %v8897_v34  ;;  %v2373_v32 = vmax.f32 %v2229_v20, %v2269_v1  ;;  %v2556_v54 = vrot.slane %v6755_v44, 4  ;;  %v1825_v59 = vmax.f32 %v5897_v15, %v6049_v10 }
 0x1c7   : > { %v8899_v13 = vrot.slane %v6569_v40, 1  ;;  %v8900_v31 = vrot.slane %v6401_v9, 1  ;;  %v2413_v35 = vsel %vm1525_vm4, %v2411_v18, %v2412_v58  ;;  %v2067_v11 = vsel %vm1074_vm1, %v6609_v57, -inf }
 0x1c8   : > { %v2689_v55 = vmax.f32 %v6669_v60, %v6706_v52  ;;  %v1824_v42 = vmax.f32 %v6474_v41, %v8858_v46  ;;  %v2517_v22 = vmax.f32 %v2373_v32, %v2413_v35  ;;  %v2126_v6 = vrot.slane %v2067_v11, 1 }
 0x1c9   : > { %v2130_v30 = vsel %vm1235_vm2, %v8900_v31, %v8899_v13  ;;  %v2557_v62 = vsel %vm1670_vm5, %v2555_v24, %v2556_v54  ;;  %v2270_v18 = vrot.slane %v2067_v11, 2  ;;  %v2414_v34 = vrot.slane %v2067_v11, 3 }
 0x1ca   : > { %v2231_v20 = vmax.f32 %v6401_v9, %v2130_v30  ;;  %v6826_v57 = vmax.f32 %v2517_v22, %v2557_v62  ;;  %v2127_v33 = vsel %vm1235_vm2, %v2124_v23, %v2126_v6  ;;  %v6830_v21 = vmax.f32 %v1825_v59, %v6743_v8 }
 0x1cb   : > { %v1826_v26 = vmax.f32 %v8858_v46, %v6055_v19  ;;  %v2230_v1 = vmax.f32 %v6755_v44, %v2127_v33  ;;  %v1276_v32 = vrot.slane %v6107_v51, 1  ;;  %v2271_v13 = vsel %vm1380_vm3, %v2268_v49, %v2270_v18 }
 0x1cc   : > { %3731 = vrot.lane.b32.xlu0 %v6826_v57, %s5354_s18  ;;  %v2558_v23 = vrot.slane %v2067_v11, 4  ;;  %v1277_v31 = vrot.slane %v6089_v17, 1  ;;  %v8901_v59 = vrot.slane %v6569_v40, 2  ;;  %v8902_v30 = vrot.slane %v6401_v9, 2 }
 0x1cd   : > { %v2374_v44 = vmax.f32 %v2230_v1, %v2271_v13  ;;  %v1421_v22 = vrot.slane %v6107_v51, 2  ;;  %v1422_v6 = vrot.slane %v6089_v17, 2  ;;  %v6850_v62 = vmax.f32 %v1824_v42, %v6055_v19 }
 0x1ce   : > { %v2274_v35 = vsel %vm1380_vm3, %v8902_v30, %v8901_v59  ;;  %v8903_v49 = vrot.slane %v6569_v40, 3  ;;  %v8904_v11 = vrot.slane %v6401_v9, 3  ;;  %v2415_v48 = vsel %vm1525_vm4, %v2412_v58, %v2414_v34 }
 0x1cf   : > { %v2375_v33 = vmax.f32 %v2231_v20, %v2274_v35  ;;  %v2518_v7 = vmax.f32 %v2374_v44, %v2415_v48  ;;  %v1278_v59 = vsel %vm1235_vm2, %v1276_v32, %v1277_v31  ;;  %v1566_v1 = vrot.slane %v6107_v51, 3 }
 0x1d0   : > { %v2418_v18 = vsel %vm1525_vm4, %v8904_v11, %v8903_v49  ;;  %v1567_v13 = vrot.slane %v6089_v17, 3  ;;  %v2559_v30 = vsel %vm1670_vm5, %v2556_v54, %v2558_v23  ;;  %v1364_v42 = vmax.f32 %v6107_v51, %v1278_v59 }
 0x1d1   : > { %v1423_v20 = vsel %vm1380_vm3, %v1421_v22, %v1422_v6  ;;  %v1711_v35 = vrot.slane %v6107_v51, 4  ;;  %v6865_v24 = vmax.f32 %v2518_v7, %v2559_v30  ;;  %v1712_v49 = vrot.slane %v6089_v17, 4 }
 0x1d2   : > { %v1279_v58 = vrot.slane %v6084_v3, 1  ;;  %v1424_v48 = vrot.slane %v6084_v3, 2  ;;  %v1828_v34 = vmax.f32 %v6055_v19, %v6781_v12  ;;  %v2519_v32 = vmax.f32 %v2375_v33, %v2418_v18 }
 0x1d3   : > { %v2521_v54 = vmax.f32 %v6768_v38, %v6794_v50  ;;  %v1509_v23 = vmax.f32 %v1364_v42, %v1423_v20  ;;  %v2692_v44 = vmax.f32 %v6747_v43, %v6865_v24  ;;  %3733 = vrot.lane.b32.xlu1 %v6865_v24, %s5354_s18  ;;  %v1568_v51 = vsel %vm1525_vm4, %v1566_v1, %v1567_v13 }
 0x1d4   : > { %v1280_v7 = vsel %vm1235_vm2, %v1277_v31, %v1279_v58  ;;  %v1569_v22 = vrot.slane %v6084_v3, 3  ;;  %v6882_v11 = vmax.f32 %v1826_v26, %v6781_v12  ;;  %v1880_v33 = vmax.f32 %v6850_v62, %v6781_v12 }
 0x1d5   : > { %v1654_v38 = vmax.f32 %v1509_v23, %v1568_v51  ;;  %v1365_v50 = vmax.f32 %v6089_v17, %v1280_v7  ;;  %v2520_v18 = vmax.f32 %v6766_v0, %v6787_v28  ;;  %v1713_v59 = vsel %vm1670_vm5, %v1711_v35, %v1712_v49 }
 0x1d6   : > { %v1425_v1 = vsel %vm1380_vm3, %v1422_v6, %v1424_v48  ;;  %v1714_v31 = vrot.slane %v6084_v3, 4  ;;  %v8905_v26 = vrot.slane %v6401_v9, 4  ;;  %v1281_v17 = vrot.slane %v6189_v27, 1 }
 0x1d7   : > { %v6897_v42 = vmax.f32 %v1654_v38, %v1713_v59  ;;  %v1510_v20 = vmax.f32 %v1365_v50, %v1425_v1  ;;  %v8906_v0 = vrot.slane %v6411_v53, 4  ;;  %v1570_v3 = vsel %vm1525_vm4, %v1567_v13, %v1569_v22 }
 0x1d8   : > { %v2562_v30 = vsel %vm1670_vm5, %v8905_v26, %v2561_v16  ;;  %v1282_v35 = vrot.slane %v6186_v4, 1  ;;  %v2564_v58 = vsel %vm1670_vm5, %v2561_v16, %v2563_v39  ;;  %v1426_v63 = vrot.slane %v6189_v27, 2 }
 0x1d9   : > { %v2567_v28 = vsel %vm1670_vm5, %v8906_v0, %v2566_v29  ;;  %v6905_v6 = vmax.f32 %v2519_v32, %v2562_v30  ;;  %3627 = vrot.lane.b32.xlu0 %v6897_v42, %s5353_s13  ;;  %v1655_v53 = vmax.f32 %v1510_v20, %v1570_v3  ;;  %v6919_v29 = vmax.f32 %v2520_v18, %v2564_v58 }
 0x1da   : > { %v6909_v9 = vmax.f32 %v2521_v54, %v2567_v28  ;;  %v1715_v13 = vsel %vm1670_vm5, %v1712_v49, %v1714_v31  ;;  %v1283_v48 = vsel %vm1235_vm2, %v1281_v17, %v1282_v35  ;;  %v1427_v32 = vrot.slane %v6186_v4, 2 }
 0x1db   : > { %v6924_v54 = vmax.f32 %v1655_v53, %v1715_v13  ;;  %v1366_v40 = vmax.f32 %v6189_v27, %v1283_v48  ;;  %v1571_v47 = vrot.slane %v6189_v27, 3  ;;  %v1572_v16 = vrot.slane %v6186_v4, 3 }
 0x1dc   : > { %v1428_v39 = vsel %vm1380_vm3, %v1426_v63, %v1427_v32  ;;  %v1716_v23 = vrot.slane %v6189_v27, 4  ;;  %v1284_v51 = vrot.slane %v6176_v45, 1  ;;  %v1429_v49 = vrot.slane %v6176_v45, 2 }
 0x1dd   : > { %3629 = vrot.lane.b32.xlu1 %v6924_v54, %s5353_s13  ;;  %v1830_v7 = vmax.f32 %v6781_v12, %v6924_v54  ;;  %v6938_v22 = vmax.f32 %v1828_v34, %v6924_v54  ;;  %3735 = vrot.lane.b32.xlu0 %v6905_v6, %s5354_s18  ;;  %v1717_v38 = vrot.slane %v6186_v4, 4  ;;  %v1574_v27 = vrot.slane %v6176_v45, 3 }
 0x1de   : > { %v2693_v50 = vmax.f32 %v6826_v57, %v6905_v6  ;;  %v6950_v18 = vmax.f32 %v2689_v55, %v6826_v57  ;;  %v1511_v59 = vmax.f32 %v1366_v40, %v1428_v39  ;;  %v1285_v34 = vsel %vm1235_vm2, %v1282_v35, %v1284_v51 }
 0x1df   : > { %v1573_v1 = vsel %vm1525_vm4, %v1571_v47, %v1572_v16  ;;  %v1367_v31 = vmax.f32 %v6186_v4, %v1285_v34  ;;  %v1430_v26 = vsel %vm1380_vm3, %v1427_v32, %v1429_v49  ;;  %v1719_v30 = vrot.slane %v6176_v45, 4 }
 0x1e0   : > { %v1656_v20 = vmax.f32 %v1511_v59, %v1573_v1  ;;  %v1286_v17 = vrot.slane %v6226_v61, 1  ;;  %v1287_v0 = vrot.slane %v6204_v56, 1  ;;  %v1431_v60 = vrot.slane %v6226_v61, 2 }
 0x1e1   : > { %3737 = vrot.lane.b32.xlu1 %v6919_v29, %s5354_s18  ;;  %v1718_v55 = vsel %vm1670_vm5, %v1716_v23, %v1717_v38  ;;  %v1512_v28 = vmax.f32 %v1367_v31, %v1430_v26  ;;  %v1575_v3 = vsel %vm1525_vm4, %v1572_v16, %v1574_v27  ;;  %v1432_v4 = vrot.slane %v6204_v56, 2 }
 0x1e2   : > { %v6965_v35 = vmax.f32 %v1656_v20, %v1718_v55  ;;  %v1288_v45 = vsel %vm1235_vm2, %v1286_v17, %v1287_v0  ;;  %v1576_v58 = vrot.slane %v6226_v61, 3  ;;  %v1577_v53 = vrot.slane %v6204_v56, 3 }
 0x1e3   : > { %v8907_v63 = vmax.f32 %v6706_v52, %v6826_v57  ;;  %v1657_v48 = vmax.f32 %v1512_v28, %v1575_v3  ;;  %v1720_v32 = vsel %vm1670_vm5, %v1717_v38, %v1719_v30  ;;  %v1368_v40 = vmax.f32 %v6226_v61, %v1288_v45  ;;  %v8908_v3 = vld [vmem:[#allocation40_spill] sm:$0xff] }
 0x1e4   : > { %3631 = vrot.lane.b32.xlu0 %v6965_v35, %s5353_s13  ;;  %v1433_v47 = vsel %vm1380_vm3, %v1431_v60, %v1432_v4  ;;  %v1721_v16 = vrot.slane %v6226_v61, 4  ;;  %v1722_v39 = vrot.slane %v6204_v56, 4  ;;  %v1289_v23 = vrot.slane %v6198_v2, 1 }
 0x1e5   : > { %v6974_v13 = vmax.f32 %v8907_v63, %v6905_v6  ;;  %v6985_v52 = vmax.f32 %v2693_v50, %v6909_v9  ;;  %v6987_v57 = vmax.f32 %v1657_v48, %v1720_v32  ;;  %v1513_v51 = vmax.f32 %v1368_v40, %v1433_v47 }
 0x1e6   : > { %v1434_v49 = vrot.slane %v6198_v2, 2  ;;  %v1578_v38 = vsel %vm1525_vm4, %v1576_v58, %v1577_v53  ;;  %v1290_v27 = vsel %vm1235_vm2, %v1287_v0, %v1289_v23  ;;  %v1579_v59 = vrot.slane %v6198_v2, 3 }
 0x1e7   : > { %v1822_v61 = vmax.f32 %v6460_v14, %v6474_v41  ;;  %3633 = vrot.lane.b32.xlu1 %v6987_v57, %s5353_s13  ;;  %v1832_v50 = vmax.f32 %v6924_v54, %v6987_v57  ;;  %v7000_v34 = vmax.f32 %v1830_v7, %v6987_v57  ;;  %v1658_v31 = vmax.f32 %v1513_v51, %v1578_v38 }
 0x1e8   : > { %v7006_v26 = vmax.f32 %v6950_v18, %v6905_v6  ;;  %3739 = vrot.lane.b32.xlu0 %v6909_v9, %s5354_s18  ;;  %v1723_v14 = vsel %vm1670_vm5, %v1721_v16, %v1722_v39  ;;  %v1369_v41 = vmax.f32 %v6204_v56, %v1290_v27  ;;  %v1724_v30 = vrot.slane %v6198_v2, 4  ;;  %v8909_v27 = vld [vmem:[#allocation39_spill] sm:$0xff] }
 0x1e9   : > { %v1435_v7 = vsel %vm1380_vm3, %v1432_v4, %v1434_v49  ;;  %v1850_v20 = vmax.f32 %v1822_v61, %v8858_v46  ;;  %v1877_v17 = vmax.f32 %v6309_v36, %v6049_v10  ;;  %v1291_v0 = vrot.slane %v6275_v25, 1 }
 0x1ea   : > { %v7018_v60 = vmax.f32 %v1658_v31, %v1723_v14  ;;  %v1514_v55 = vmax.f32 %v1369_v41, %v1435_v7  ;;  %v1580_v28 = vsel %vm1525_vm4, %v1577_v53, %v1579_v59  ;;  %v1292_v45 = vrot.slane %v8908_v3, 1 }
 0x1eb   : > { %3741 = vrot.lane.b32.xlu1 %v6800_v5, %s5354_s18  ;;  %v1878_v2 = vmax.f32 %v1850_v20, %v6055_v19  ;;  %v1903_v56 = vmax.f32 %v1877_v17, %v6743_v8  ;;  %v1436_v46 = vrot.slane %v6275_v25, 2  ;;  %v1437_v36 = vrot.slane %v8908_v3, 2 }
 0x1ec   : > { %3635 = vrot.lane.b32.xlu0 %v7018_v60, %s5353_s13  ;;  %v1659_v4 = vmax.f32 %v1514_v55, %v1580_v28  ;;  %v1725_v58 = vsel %vm1670_vm5, %v1722_v39, %v1724_v30  ;;  %v1293_v53 = vsel %vm1235_vm2, %v1291_v0, %v1292_v45  ;;  %v1581_v63 = vrot.slane %v6275_v25, 3 }
 0x1ed   : > { %v1904_v48 = vmax.f32 %v1878_v2, %v6781_v12  ;;  %v1968_v32 = vrot.slane %v1903_v56, 6  ;;  %v1370_v19 = vmax.f32 %v6275_v25, %v1293_v53  ;;  %v1582_v40 = vrot.slane %v8908_v3, 3 }
 0x1ee   : > { %v2827_v16 = vrot.slane %v6950_v18, 6  ;;  %v2694_v23 = vmax.f32 %v6865_v24, %v6919_v29  ;;  %v7041_v39 = vmax.f32 %v1659_v4, %v1725_v58  ;;  %v1438_v38 = vsel %vm1380_vm3, %v1436_v46, %v1437_v36 }
 0x1ef   : > { %v1969_v51 = vrot.slane %v1904_v48, 6  ;;  %v2054_v49 = vsel %vm1074_vm1, -inf, %v1968_v32  ;;  %v1294_v59 = vrot.slane %v8909_v27, 1  ;;  %v8910_v61 = vmax.f32 %v6686_v37, %v6747_v43 }
 0x1f0   : > { %3637 = vrot.lane.b32.xlu1 %v7041_v39, %s5353_s13  ;;  %v2138_v18 = vrot.slane %v2054_v49, 1  ;;  %v1515_v14 = vmax.f32 %v1370_v19, %v1438_v38  ;;  %v1726_v41 = vrot.slane %v6275_v25, 4  ;;  %v2282_v7 = vrot.slane %v2054_v49, 2 }
 0x1f1   : > { %v7050_v31 = vmax.f32 %v8910_v61, %v6865_v24  ;;  %v1970_v30 = vsel %vm1074_vm1, %v1968_v32, %v1969_v51  ;;  %v1583_v20 = vsel %vm1525_vm4, %v1581_v63, %v1582_v40  ;;  %v1727_v17 = vrot.slane %v8908_v3, 4 }
 0x1f2   : > { %v2139_v0 = vrot.slane %v1970_v30, 1  ;;  %v2283_v55 = vrot.slane %v1970_v30, 2  ;;  %v2426_v28 = vrot.slane %v2054_v49, 3  ;;  %v2570_v37 = vrot.slane %v2054_v49, 4 }
 0x1f3   : > { %v2427_v2 = vrot.slane %v1970_v30, 3  ;;  %v2571_v56 = vrot.slane %v1970_v30, 4  ;;  %v2070_v46 = vsel %vm1074_vm1, %v1969_v51, -inf  ;;  %v1295_v4 = vsel %vm1235_vm2, %v1292_v45, %v1294_v59 }
 0x1f4   : > { %v7064_v25 = vmax.f32 %v2692_v44, %v6919_v29  ;;  %v2828_v58 = vrot.slane %v7050_v31, 6  ;;  %v2140_v53 = vsel %vm1235_vm2, %v2138_v18, %v2139_v0  ;;  %v1660_v63 = vmax.f32 %v1515_v14, %v1583_v20 }
 0x1f5   : > { %v2235_v48 = vmax.f32 %v2054_v49, %v2140_v53  ;;  %v2141_v32 = vrot.slane %v2070_v46, 1  ;;  %v2285_v19 = vrot.slane %v2070_v46, 2  ;;  %v2429_v38 = vrot.slane %v2070_v46, 3 }
 0x1f6   : > { %v2284_v61 = vsel %vm1380_vm3, %v2282_v7, %v2283_v55  ;;  %v1728_v51 = vsel %vm1670_vm5, %v1726_v41, %v1727_v17  ;;  %v1371_v45 = vmax.f32 %v8908_v3, %v1295_v4  ;;  %v1439_v59 = vrot.slane %v8909_v27, 2 }
 0x1f7   : > { %v2379_v43 = vmax.f32 %v2235_v48, %v2284_v61  ;;  %v2428_v44 = vsel %vm1525_vm4, %v2426_v28, %v2427_v2  ;;  %v2572_v47 = vsel %vm1670_vm5, %v2570_v37, %v2571_v56  ;;  %v2142_v18 = vsel %vm1235_vm2, %v2139_v0, %v2141_v32 }
 0x1f8   : > { %v2236_v14 = vmax.f32 %v1970_v30, %v2142_v18  ;;  %v2286_v49 = vsel %vm1380_vm3, %v2283_v55, %v2285_v19  ;;  %v2573_v20 = vrot.slane %v2070_v46, 4  ;;  %v1440_v53 = vsel %vm1380_vm3, %v1437_v36, %v1439_v59 }
 0x1f9   : > { %v2523_v7 = vmax.f32 %v2379_v43, %v2428_v44  ;;  %v2430_v41 = vsel %vm1525_vm4, %v2427_v2, %v2429_v38  ;;  %v1516_v1 = vmax.f32 %v1371_v45, %v1440_v53  ;;  %v1584_v3 = vrot.slane %v8909_v27, 3 }
 0x1fa   : > { %v2380_v4 = vmax.f32 %v2236_v14, %v2286_v49  ;;  %v1729_v48 = vrot.slane %v8909_v27, 4  ;;  %v2829_v28 = vsel %vm1074_vm1, %v2827_v16, %v2828_v58  ;;  %v2923_v37 = vsel %vm1074_vm1, -inf, %v2827_v16 }
 0x1fb   : > { %v7082_v0 = vmax.f32 %v2523_v7, %v2572_v47  ;;  %v1585_v30 = vsel %vm1525_vm4, %v1582_v40, %v1584_v3  ;;  %v2987_v55 = vrot.slane %v2923_v37, 1  ;;  %v2939_v36 = vsel %vm1074_vm1, %v2828_v58, -inf  ;;  %v8911_v7 = vld [vmem:[#allocation44_spill] sm:$0xff] }
 0x1fc   : > { %v2524_v46 = vmax.f32 %v2380_v4, %v2430_v41  ;;  %v1661_v32 = vmax.f32 %v1516_v1, %v1585_v30  ;;  %v2988_v2 = vrot.slane %v2829_v28, 1  ;;  %v3131_v19 = vrot.slane %v2923_v37, 2  ;;  %v8912_v30 = vld [vmem:[#allocation42_spill] sm:$0xff] }
 0x1fd   : > { %3743 = vrot.lane.b32.xlu0 %v7082_v0, %s5354_s18  ;;  %v2574_v27 = vsel %vm1670_vm5, %v2571_v56, %v2573_v20  ;;  %v3132_v38 = vrot.slane %v2829_v28, 2  ;;  %v3275_v61 = vrot.slane %v2923_v37, 3  ;;  %v3276_v45 = vrot.slane %v2829_v28, 3 }
 0x1fe   : > { %v7089_v16 = vmax.f32 %v2524_v46, %v2574_v27  ;;  %v2989_v47 = vsel %vm1235_vm2, %v2987_v55, %v2988_v2  ;;  %v3419_v40 = vrot.slane %v2923_v37, 4  ;;  %v3420_v59 = vrot.slane %v2829_v28, 4  ;;  %v8914_v46 = vld [vmem:[#allocation43_spill] sm:$0xff] }
 0x1ff   : > { %v7092_v43 = vmax.f32 %v1660_v63, %v1728_v51  ;;  %v1730_v1 = vsel %vm1670_vm5, %v1727_v17, %v1729_v48  ;;  %v3099_v58 = vmax.f32 %v2923_v37, %v2989_v47  ;;  %v2990_v44 = vrot.slane %v2939_v36, 1 }
 0x200   : > { %v7097_v18 = vmax.f32 %v7050_v31, %v6919_v29  ;;  %3745 = vrot.lane.b32.xlu1 %v7089_v16, %s5354_s18  ;;  %v7101_v56 = vmax.f32 %v1661_v32, %v1730_v1  ;;  %v3133_v14 = vsel %vm1380_vm3, %v3131_v19, %v3132_v38  ;;  %v3134_v49 = vrot.slane %v2939_v36, 2 }
 0x201   : > { %3639 = vrot.lane.b32.xlu0 %v7092_v43, %s5353_s13  ;;  %v3243_v63 = vmax.f32 %v3099_v58, %v3133_v14  ;;  %v3277_v17 = vsel %vm1525_vm4, %v3275_v61, %v3276_v45  ;;  %v2991_v51 = vsel %vm1235_vm2, %v2988_v2, %v2990_v44  ;;  %v3278_v20 = vrot.slane %v2939_v36, 3 }
 0x202   : > { %v3421_v31 = vsel %vm1670_vm5, %v3419_v40, %v3420_v59  ;;  %v3100_v53 = vmax.f32 %v2829_v28, %v2991_v51  ;;  %v1823_v41 = vmax.f32 %v8911_v7, %v5897_v15  ;;  %v1906_v3 = vmax.f32 %v1880_v33, %v6924_v54 }
 0x203   : > { %v3387_v4 = vmax.f32 %v3243_v63, %v3277_v17  ;;  %v3135_v48 = vsel %vm1380_vm3, %v3132_v38, %v3134_v49  ;;  %v3422_v37 = vrot.slane %v2939_v36, 4  ;;  %v8913_v55 = vrot.slane %v8912_v30, 1 }
 0x204   : > { %v8915_v32 = vrot.slane %v8914_v46, 1  ;;  %3641 = vrot.lane.b32.xlu1 %v7101_v56, %s5353_s13  ;;  %v3244_v28 = vmax.f32 %v3100_v53, %v3135_v48  ;;  %v3279_v15 = vsel %vm1525_vm4, %v3276_v45, %v3278_v20  ;;  %v1851_v19 = vmax.f32 %v1823_v41, %v6049_v10 }
 0x205   : > { %v1972_v12 = vrot.slane %v1906_v3, 6  ;;  %v3531_v62 = vmax.f32 %v3387_v4, %v3421_v31  ;;  %v1442_v36 = vrot.slane %v8912_v30, 2  ;;  %v1586_v27 = vrot.slane %v8914_v46, 3  ;;  %v8917_v31 = vld [vmem:[#allocation41_spill] sm:$0xff] }
 0x206   : > { %v1298_v2 = vsel %vm1235_vm2, %v8915_v32, %v8913_v55  ;;  %v3388_v38 = vmax.f32 %v3244_v28, %v3279_v15  ;;  %v1879_v61 = vmax.f32 %v1851_v19, %v6743_v8  ;;  %v1587_v40 = vrot.slane %v8912_v30, 3 }
 0x207   : > { %v1372_v33 = vmax.f32 %v8914_v46, %v1298_v2  ;;  %v2071_v47 = vsel %vm1074_vm1, %v1972_v12, -inf  ;;  %v7135_v45 = vmax.f32 %v2694_v23, %v6800_v5  ;;  %v2831_v1 = vrot.slane %v7097_v18, 6  ;;  %3851 = vrot.lane.b32.xlu0 %v3531_v62, %s5355_s19 }
 0x208   : > { %v1882_v58 = vmax.f32 %v6882_v11, %v6924_v54  ;;  %v3423_v44 = vsel %vm1670_vm5, %v3420_v59, %v3422_v37  ;;  %v1905_v49 = vmax.f32 %v1879_v61, %v6897_v42  ;;  %v2146_v63 = vrot.slane %v2071_v47, 1 }
 0x209   : > { %v3532_v14 = vmax.f32 %v3388_v38, %v3423_v44  ;;  %v1731_v17 = vrot.slane %v8914_v46, 4  ;;  %v2290_v51 = vrot.slane %v2071_v47, 2  ;;  %v2434_v24 = vrot.slane %v2071_v47, 3 }
 0x20a   : > { %v8916_v23 = vrot.slane %v8914_v46, 2  ;;  %v8918_v53 = vrot.slane %v8917_v31, 1  ;;  %v8919_v7 = vmov %v8913_v55  ;;  %v1971_v59 = vrot.slane %v1905_v49, 6 }
 0x20b   : > { %3853 = vrot.lane.b32.xlu1 %v3532_v14, %s5355_s19  ;;  %v2578_v3 = vrot.slane %v2071_v47, 4  ;;  %v7156_v48 = vsel %vm1525_vm4, %v1586_v27, %v1587_v40  ;;  %v1732_v37 = vrot.slane %v8912_v30, 4  ;;  %v8920_v46 = vrot.slane %v8917_v31, 2 }
 0x20c   : > { %v1443_v20 = vsel %vm1380_vm3, %v8916_v23, %v1442_v36  ;;  %v1300_v41 = vsel %vm1235_vm2, %v8919_v7, %v8918_v53  ;;  %v8921_v2 = vrot.slane %v8917_v31, 3  ;;  %v1973_v15 = vsel %vm1074_vm1, %v1971_v59, %v1972_v12 }
 0x20d   : > { %v7153_v4 = vmax.f32 %v1372_v33, %v1443_v20  ;;  %v1373_v55 = vmax.f32 %v8912_v30, %v1300_v41  ;;  %v1445_v32 = vsel %vm1380_vm3, %v1442_v36, %v8920_v46  ;;  %v2055_v19 = vsel %vm1074_vm1, -inf, %v1971_v59 }
 0x20e   : > { %v1590_v28 = vsel %vm1525_vm4, %v1587_v40, %v8921_v2  ;;  %v1734_v62 = vrot.slane %v8917_v31, 4  ;;  %v2830_v33 = vrot.slane %v7006_v26, 6  ;;  %v2143_v27 = vrot.slane %v2055_v19, 1 }
 0x20f   : > { %v2144_v38 = vrot.slane %v1973_v15, 1  ;;  %v2287_v61 = vrot.slane %v2055_v19, 2  ;;  %v2288_v30 = vrot.slane %v1973_v15, 2  ;;  %v2431_v47 = vrot.slane %v2055_v19, 3 }
 0x210   : > { %v2432_v44 = vrot.slane %v1973_v15, 3  ;;  %v2575_v14 = vrot.slane %v2055_v19, 4  ;;  %v2576_v36 = vrot.slane %v1973_v15, 4  ;;  %v1662_v12 = vmax.f32 %v7153_v4, %v7156_v48 }
 0x211   : > { %v2145_v49 = vsel %vm1235_vm2, %v2143_v27, %v2144_v38  ;;  %v2147_v40 = vsel %vm1235_vm2, %v2144_v38, %v2146_v63  ;;  %v1733_v23 = vsel %vm1670_vm5, %v1731_v17, %v1732_v37  ;;  %v1518_v53 = vmax.f32 %v1373_v55, %v1445_v32 }
 0x212   : > { %v2237_v20 = vmax.f32 %v2055_v19, %v2145_v49  ;;  %v2238_v31 = vmax.f32 %v1973_v15, %v2147_v40  ;;  %v2940_v7 = vsel %vm1074_vm1, %v2831_v1, -inf  ;;  %v2289_v41 = vsel %vm1380_vm3, %v2287_v61, %v2288_v30 }
 0x213   : > { %v2433_v59 = vsel %vm1525_vm4, %v2431_v47, %v2432_v44  ;;  %v2577_v46 = vsel %vm1670_vm5, %v2575_v14, %v2576_v36  ;;  %v2291_v2 = vsel %vm1380_vm3, %v2288_v30, %v2290_v51  ;;  %v2832_v38 = vsel %vm1074_vm1, %v2830_v33, %v2831_v1 }
 0x214   : > { %v2381_v27 = vmax.f32 %v2237_v20, %v2289_v41  ;;  %v2382_v63 = vmax.f32 %v2238_v31, %v2291_v2  ;;  %v2924_v4 = vsel %vm1074_vm1, -inf, %v2830_v33  ;;  %v2435_v17 = vsel %vm1525_vm4, %v2432_v44, %v2434_v24 }
 0x215   : > { %v2992_v48 = vrot.slane %v2924_v4, 1  ;;  %v2993_v55 = vrot.slane %v2832_v38, 1  ;;  %v3136_v32 = vrot.slane %v2924_v4, 2  ;;  %v2579_v61 = vsel %vm1670_vm5, %v2576_v36, %v2578_v3 }
 0x216   : > { %v2525_v15 = vmax.f32 %v2381_v27, %v2433_v59  ;;  %v2526_v19 = vmax.f32 %v2382_v63, %v2435_v17  ;;  %v3137_v47 = vrot.slane %v2832_v38, 2  ;;  %v1663_v49 = vmax.f32 %v1518_v53, %v1590_v28 }
 0x217   : > { %v2994_v14 = vsel %vm1235_vm2, %v2992_v48, %v2993_v55  ;;  %v3280_v51 = vrot.slane %v2924_v4, 3  ;;  %v3281_v30 = vrot.slane %v2832_v38, 3  ;;  %v3424_v20 = vrot.slane %v2924_v4, 4 }
 0x218   : > { %v7185_v40 = vmax.f32 %v2525_v15, %v2577_v46  ;;  %v7187_v1 = vmax.f32 %v2526_v19, %v2579_v61  ;;  %v3101_v33 = vmax.f32 %v2924_v4, %v2994_v14  ;;  %v3138_v24 = vsel %vm1380_vm3, %v3136_v32, %v3137_v47  ;;  %v8922_v32 = vld [vmem:[#allocation27_spill] sm:$0xff] }
 0x219   : > { %v3425_v44 = vrot.slane %v2832_v38, 4  ;;  %v2995_v31 = vrot.slane %v2940_v7, 1  ;;  %v3139_v41 = vrot.slane %v2940_v7, 2  ;;  %v1735_v3 = vsel %vm1670_vm5, %v1732_v37, %v1734_v62  ;;  %v8923_v19 = vld [vmem:[#allocation19_spill] sm:$0xff] }
 0x21a   : > { %3747 = vrot.lane.b32.xlu0 %v7185_v40, %s5354_s18  ;;  %3749 = vrot.lane.b32.xlu1 %v7187_v1, %s5354_s18  ;;  %v3245_v28 = vmax.f32 %v3101_v33, %v3138_v24  ;;  %v3283_v36 = vrot.slane %v2940_v7, 3  ;;  %v3427_v53 = vrot.slane %v2940_v7, 4  ;;  %v3282_v59 = vsel %vm1525_vm4, %v3280_v51, %v3281_v30 }
 0x21b   : > { %v2996_v46 = vsel %vm1235_vm2, %v2993_v55, %v2995_v31  ;;  %v1881_v2 = vmax.f32 %v6830_v21, %v6897_v42  ;;  %v1908_v27 = vmax.f32 %v1882_v58, %v6987_v57  ;;  %v7203_v63 = vmax.f32 %v1662_v12, %v1733_v23 }
 0x21c   : > { %v7205_v4 = vmax.f32 %v1663_v49, %v1735_v3  ;;  %v3389_v37 = vmax.f32 %v3245_v28, %v3282_v59  ;;  %v3102_v62 = vmax.f32 %v2832_v38, %v2996_v46  ;;  %v3426_v7 = vsel %vm1670_vm5, %v3424_v20, %v3425_v44  ;;  %v8926_v20 = vld [vmem:[#allocation49_spill] sm:$0xff] }
 0x21d   : > { %v3140_v17 = vsel %vm1380_vm3, %v3137_v47, %v3139_v41  ;;  %v1907_v48 = vmax.f32 %v1881_v2, %v6965_v35  ;;  %v1975_v55 = vrot.slane %v1908_v27, 6  ;;  %v1736_v21 = vrot.slane %v8922_v32, 4 }
 0x21e   : > { %3643 = vrot.lane.b32.xlu0 %v7203_v63, %s5353_s13  ;;  %3645 = vrot.lane.b32.xlu1 %v7205_v4, %s5353_s13  ;;  %v3246_v11 = vmax.f32 %v3102_v62, %v3140_v17  ;;  %v3284_v58 = vsel %vm1525_vm4, %v3281_v30, %v3283_v36  ;;  %v3428_v12 = vsel %vm1670_vm5, %v3425_v44, %v3427_v53  ;;  %v8924_v61 = vrot.slane %v8923_v19, 2 }
 0x21f   : > { %v3533_v23 = vmax.f32 %v3389_v37, %v3426_v7  ;;  %v1974_v38 = vrot.slane %v1907_v48, 6  ;;  %v2072_v15 = vsel %vm1074_vm1, %v1975_v55, -inf  ;;  %v8925_v47 = vrot.slane %v8922_v32, 2  ;;  %v8928_v48 = vld [vmem:[#allocation20_spill] sm:$0xff] }
 0x220   : > { %v3390_v14 = vmax.f32 %v3246_v11, %v3284_v58  ;;  %v2151_v51 = vrot.slane %v2072_v15, 1  ;;  %v2295_v33 = vrot.slane %v2072_v15, 2  ;;  %v8927_v24 = vmax.f32 %v8922_v32, %v8926_v20 }
 0x221   : > { %v1448_v49 = vsel %vm1380_vm3, %v8925_v47, %v8924_v61  ;;  %v1976_v30 = vsel %vm1074_vm1, %v1974_v38, %v1975_v55  ;;  %v2056_v44 = vsel %vm1074_vm1, -inf, %v1974_v38  ;;  %v2439_v41 = vrot.slane %v2072_v15, 3 }
 0x222   : > { %v1519_v31 = vmax.f32 %v8927_v24, %v1448_v49  ;;  %v2583_v3 = vrot.slane %v2072_v15, 4  ;;  %3855 = vrot.lane.b32.xlu0 %v3533_v23, %s5355_s19  ;;  %v3534_v28 = vmax.f32 %v3390_v14, %v3428_v12  ;;  %v2148_v36 = vrot.slane %v2056_v44, 1 }
 0x223   : > { %v2149_v53 = vrot.slane %v1976_v30, 1  ;;  %v2292_v59 = vrot.slane %v2056_v44, 2  ;;  %v2293_v46 = vrot.slane %v1976_v30, 2  ;;  %v2436_v2 = vrot.slane %v2056_v44, 3 }
 0x224   : > { %v2437_v27 = vrot.slane %v1976_v30, 3  ;;  %v2580_v37 = vrot.slane %v2056_v44, 4  ;;  %3857 = vrot.lane.b32.xlu1 %v3534_v28, %s5355_s19  ;;  %v2581_v7 = vrot.slane %v1976_v30, 4  ;;  %v8929_v55 = vrot.slane %v8928_v48, 1 }
 0x225   : > { %v2150_v62 = vsel %vm1235_vm2, %v2148_v36, %v2149_v53  ;;  %v2152_v17 = vsel %vm1235_vm2, %v2149_v53, %v2151_v51  ;;  %v8930_v11 = vrot.slane %v8923_v19, 1  ;;  %v2294_v23 = vsel %vm1380_vm3, %v2292_v59, %v2293_v46  ;;  %v8935_v59 = vld [vmem:[#allocation46_spill] sm:$0xff] }
 0x226   : > { %v2239_v12 = vmax.f32 %v2056_v44, %v2150_v62  ;;  %v2438_v38 = vsel %vm1525_vm4, %v2436_v2, %v2437_v27  ;;  %v2240_v15 = vmax.f32 %v1976_v30, %v2152_v17  ;;  %v2582_v61 = vsel %vm1670_vm5, %v2580_v37, %v2581_v7 }
 0x227   : > { %v1305_v58 = vsel %vm1235_vm2, %v8930_v11, %v8929_v55  ;;  %v2296_v47 = vsel %vm1380_vm3, %v2293_v46, %v2295_v33  ;;  %v2440_v49 = vsel %vm1525_vm4, %v2437_v27, %v2439_v41  ;;  %v2584_v14 = vsel %vm1670_vm5, %v2581_v7, %v2583_v3  ;;  %v8938_v55 = vld [vmem:[#allocation45_spill] sm:$0xff] }
 0x228   : > { %v2383_v51 = vmax.f32 %v2239_v12, %v2294_v23  ;;  %v2384_v20 = vmax.f32 %v2240_v15, %v2296_v47  ;;  %v8931_v24 = vrot.slane %v8923_v19, 3  ;;  %v8932_v28 = vrot.slane %v8922_v32, 3 }
 0x229   : > { %v1375_v36 = vmax.f32 %v8923_v19, %v1305_v58  ;;  %v1737_v30 = vrot.slane %v8923_v19, 4  ;;  %v8933_v53 = vrot.slane %v8928_v48, 2  ;;  %v8934_v33 = vrot.slane %v8923_v19, 2 }
 0x22a   : > { %v1593_v44 = vsel %vm1525_vm4, %v8932_v28, %v8931_v24  ;;  %v1307_v3 = vrot.slane %v8935_v59, 1  ;;  %v1452_v46 = vrot.slane %v8935_v59, 2  ;;  %v2527_v2 = vmax.f32 %v2383_v51, %v2438_v38 }
 0x22b   : > { %v1450_v41 = vsel %vm1380_vm3, %v8934_v33, %v8933_v53  ;;  %v2528_v27 = vmax.f32 %v2384_v20, %v2440_v49  ;;  %v1664_v37 = vmax.f32 %v1519_v31, %v1593_v44  ;;  %v8936_v62 = vrot.slane %v8928_v48, 3 }
 0x22c   : > { %v1520_v32 = vmax.f32 %v1375_v36, %v1450_v41  ;;  %v8937_v7 = vmov %v8931_v24  ;;  %v8939_v11 = vrot.slane %v8938_v55, 1  ;;  %v1596_v12 = vrot.slane %v8938_v55, 3  ;;  %v8941_v24 = vld [vmem:[#allocation24_spill] sm:$0xff] }
 0x22d   : > { %v1595_v17 = vsel %vm1525_vm4, %v8937_v7, %v8936_v62  ;;  %v1597_v23 = vrot.slane %v8935_v59, 3  ;;  %v7267_v15 = vmax.f32 %v2527_v2, %v2582_v61  ;;  %v7269_v38 = vmax.f32 %v2528_v27, %v2584_v14 }
 0x22e   : > { %v1308_v58 = vsel %vm1235_vm2, %v8939_v11, %v1307_v3  ;;  %v1665_v31 = vmax.f32 %v1520_v32, %v1595_v17  ;;  %v1738_v49 = vsel %vm1670_vm5, %v1736_v21, %v1737_v30  ;;  %v8940_v51 = vrot.slane %v8938_v55, 2  ;;  %v8947_v11 = vld [vmem:[#allocation47_spill] sm:$0xff] }
 0x22f   : > { %v1376_v47 = vmax.f32 %v8938_v55, %v1308_v58  ;;  %v8942_v28 = vrot.slane %v8941_v24, 1  ;;  %3751 = vrot.lane.b32.xlu0 %v7267_v15, %s5354_s18  ;;  %3753 = vrot.lane.b32.xlu1 %v7269_v38, %s5354_s18  ;;  %v1741_v14 = vrot.slane %v8938_v55, 4  ;;  %v1742_v36 = vrot.slane %v8935_v59, 4  ;;  %v8946_v55 = vld [vmem:[#allocation48_spill] sm:$0xff] }
 0x230   : > { %v1453_v20 = vsel %vm1380_vm3, %v8940_v51, %v1452_v46  ;;  %v8943_v53 = vrot.slane %v8928_v48, 4  ;;  %v1598_v41 = vsel %vm1525_vm4, %v1596_v12, %v1597_v23  ;;  %v1744_v27 = vrot.slane %v8941_v24, 4 }
 0x231   : > { %v1310_v44 = vsel %vm1235_vm2, %v1307_v3, %v8942_v28  ;;  %v1521_v61 = vmax.f32 %v1376_v47, %v1453_v20  ;;  %v8944_v3 = vrot.slane %v8941_v24, 2  ;;  %v7296_v32 = vmax.f32 %v1664_v37, %v1738_v49 }
 0x232   : > { %v1377_v21 = vmax.f32 %v8935_v59, %v1310_v44  ;;  %v1740_v33 = vsel %vm1670_vm5, %v1737_v30, %v8943_v53  ;;  %v8945_v59 = vrot.slane %v8941_v24, 3  ;;  %v1311_v30 = vrot.slane %v8946_v55, 1 }
 0x233   : > { %v1455_v2 = vsel %vm1380_vm3, %v1452_v46, %v8944_v3  ;;  %v7298_v62 = vmax.f32 %v1665_v31, %v1740_v33  ;;  %v1666_v7 = vmax.f32 %v1521_v61, %v1598_v41  ;;  %v1312_v58 = vrot.slane %v8947_v11, 1  ;;  %3647 = vrot.lane.b32.xlu0 %v7296_v32, %s5353_s13 }
 0x234   : > { %v1522_v17 = vmax.f32 %v1377_v21, %v1455_v2  ;;  %v1600_v48 = vsel %vm1525_vm4, %v1597_v23, %v8945_v59  ;;  %v1456_v12 = vrot.slane %v8946_v55, 2  ;;  %v2772_v46 = vmax.f32 %v7097_v18, %v6800_v5 }
 0x235   : > { %3649 = vrot.lane.b32.xlu1 %v7298_v62, %s5353_s13  ;;  %v1743_v37 = vsel %vm1670_vm5, %v1741_v14, %v1742_v36  ;;  %v1457_v23 = vrot.slane %v8947_v11, 2  ;;  %v1745_v47 = vsel %vm1670_vm5, %v1742_v36, %v1744_v27  ;;  %v1313_v49 = vsel %vm1235_vm2, %v1311_v30, %v1312_v58 }
 0x236   : > { %v1667_v31 = vmax.f32 %v1522_v17, %v1600_v48  ;;  %v1601_v51 = vrot.slane %v8946_v55, 3  ;;  %v1602_v20 = vrot.slane %v8947_v11, 3  ;;  %v7318_v18 = vmax.f32 %v1666_v7, %v1743_v37 }
 0x237   : > { %v1378_v28 = vmax.f32 %v8946_v55, %v1313_v49  ;;  %v1746_v44 = vrot.slane %v8946_v55, 4  ;;  %v1829_v61 = vmax.f32 %v6743_v8, %v6897_v42  ;;  %v1458_v14 = vsel %vm1380_vm3, %v1456_v12, %v1457_v23 }
 0x238   : > { %v7320_v24 = vmax.f32 %v1667_v31, %v1745_v47  ;;  %v1747_v36 = vrot.slane %v8947_v11, 4  ;;  %v1837_v21 = vmax.f32 %v7092_v43, %v7203_v63  ;;  %v7330_v53 = vrot.slane %v2772_v46, 6  ;;  %3651 = vrot.lane.b32.xlu0 %v7318_v18, %s5353_s13 }
 0x239   : > { %v8948_v33 = vmax.f32 %v6049_v10, %v6743_v8  ;;  %v1523_v3 = vmax.f32 %v1378_v28, %v1458_v14  ;;  %v1839_v2 = vmax.f32 %v7203_v63, %v7296_v32  ;;  %v1831_v27 = vmax.f32 %v6897_v42, %v6965_v35  ;;  %v8949_v10 = vld [vmem:[#allocation25_spill] sm:$0xff] }
 0x23a   : > { %3653 = vrot.lane.b32.xlu1 %v7320_v24, %s5353_s13  ;;  %v1603_v7 = vsel %vm1525_vm4, %v1601_v51, %v1602_v20  ;;  %v1865_v17 = vmax.f32 %v1837_v21, %v7296_v32  ;;  %v1314_v8 = vrot.slane %v8949_v10, 1  ;;  %v1748_v48 = vsel %vm1670_vm5, %v1746_v44, %v1747_v36 }
 0x23b   : > { %v7336_v41 = vmax.f32 %v8948_v33, %v6897_v42  ;;  %v1668_v59 = vmax.f32 %v1523_v3, %v1603_v7  ;;  %v1841_v55 = vmax.f32 %v7296_v32, %v7318_v18  ;;  %v1867_v30 = vmax.f32 %v1839_v2, %v7318_v18 }
 0x23c   : > { %v1893_v12 = vmax.f32 %v1865_v17, %v7318_v18  ;;  %v1315_v46 = vsel %vm1235_vm2, %v1312_v58, %v1314_v8  ;;  %v1459_v42 = vrot.slane %v8949_v10, 2  ;;  %v1604_v37 = vrot.slane %v8949_v10, 3 }
 0x23d   : > { %v7358_v31 = vmax.f32 %v1829_v61, %v6965_v35  ;;  %v1835_v47 = vmax.f32 %v7018_v60, %v7092_v43  ;;  %v1813_v49 = vmax.f32 %v1668_v59, %v1748_v48  ;;  %v1379_v51 = vmax.f32 %v8947_v11, %v1315_v46 }
 0x23e   : > { %v1460_v28 = vsel %vm1380_vm3, %v1457_v23, %v1459_v42  ;;  %v1749_v44 = vrot.slane %v8949_v10, 4  ;;  %v1838_v58 = vmax.f32 %v7101_v56, %v7205_v4  ;;  %v1840_v14 = vmax.f32 %v7205_v4, %v7298_v62 }
 0x23f   : > { %3655 = vrot.lane.b32.xlu0 %v1813_v49, %s5353_s13  ;;  %v7370_v61 = vmax.f32 %v1841_v55, %v1813_v49  ;;  %v1895_v21 = vmax.f32 %v1867_v30, %v1813_v49  ;;  %v7372_v33 = vmax.f32 %v1893_v12, %v1813_v49  ;;  %v1524_v3 = vmax.f32 %v1379_v51, %v1460_v28 }
 0x240   : > { %v1833_v11 = vmax.f32 %v6965_v35, %v7018_v60  ;;  %v1605_v23 = vsel %vm1525_vm4, %v1602_v20, %v1604_v37  ;;  %v1866_v2 = vmax.f32 %v1838_v58, %v7298_v62  ;;  %v2771_v7 = vmax.f32 %v7006_v26, %v6909_v9 }
 0x241   : > { %v1863_v17 = vmax.f32 %v1835_v47, %v7203_v63  ;;  %v1669_v10 = vmax.f32 %v1524_v3, %v1605_v23  ;;  %v1842_v8 = vmax.f32 %v7298_v62, %v7320_v24  ;;  %v1868_v59 = vmax.f32 %v1840_v14, %v7320_v24 }
 0x242   : > { %v7385_v48 = vmax.f32 %v1831_v27, %v7018_v60  ;;  %v1750_v55 = vsel %vm1670_vm5, %v1747_v36, %v1749_v44  ;;  %v1894_v20 = vmax.f32 %v1866_v2, %v7320_v24  ;;  %v2833_v30 = vrot.slane %v2771_v7, 6 }
 0x243   : > { %v1834_v12 = vmax.f32 %v6987_v57, %v7041_v39  ;;  %v7395_v26 = vmax.f32 %v1832_v50, %v7041_v39  ;;  %v1891_v46 = vmax.f32 %v1863_v17, %v7296_v32  ;;  %v1814_v42 = vmax.f32 %v1669_v10, %v1750_v55 }
 0x244   : > { %v8747_v36 = vrot.slane %v7372_v33, 6  ;;  %v7401_v37 = vrot.slane %v1895_v21, 6  ;;  %v2835_v47 = vsel %vm1074_vm1, %v2833_v30, %v7330_v53  ;;  %v2925_v51 = vsel %vm1074_vm1, -inf, %v2833_v30 }
 0x245   : > { %3657 = vrot.lane.b32.xlu1 %v1814_v42, %s5353_s13  ;;  %v7406_v49 = vmax.f32 %v1842_v8, %v1814_v42  ;;  %v1896_v54 = vmax.f32 %v1868_v59, %v1814_v42  ;;  %v7408_v50 = vmax.f32 %v1894_v20, %v1814_v42  ;;  %v7412_v28 = vmax.f32 %v1833_v11, %v7092_v43 }
 0x246   : > { %v1836_v44 = vmax.f32 %v7041_v39, %v7101_v56  ;;  %v2997_v58 = vrot.slane %v2925_v51, 1  ;;  %v2998_v14 = vrot.slane %v2835_v47, 1  ;;  %v7417_v21 = vmax.f32 %v1834_v12, %v7101_v56 }
 0x247   : > { %v7420_v3 = vmax.f32 %v1891_v46, %v7318_v18  ;;  %v8746_v23 = vrot.slane %v7408_v50, 6  ;;  %v7423_v2 = vrot.slane %v1896_v54, 6  ;;  %v3141_v17 = vrot.slane %v2925_v51, 2 }
 0x248   : > { %v1864_v7 = vmax.f32 %v1836_v44, %v7205_v4  ;;  %v2999_v11 = vsel %vm1235_vm2, %v2997_v58, %v2998_v14  ;;  %v3142_v10 = vrot.slane %v2835_v47, 2  ;;  %v2941_v55 = vsel %vm1074_vm1, %v7330_v53, -inf }
 0x249   : > { %v7434_v18 = vsel %vm1074_vm1, %v8747_v36, %v8746_v23  ;;  %v7439_v59 = vsel %vm1074_vm1, %v7401_v37, %v7423_v2  ;;  %v3285_v12 = vrot.slane %v2925_v51, 3  ;;  %v3286_v46 = vrot.slane %v2835_v47, 3 }
 0x24a   : > { %8950 = vst [vmem:[#allocation40_spill] sm:$0xff] %v7439_v59  ;;  %v1892_v30 = vmax.f32 %v1864_v7, %v7298_v62  ;;  %v3103_v54 = vmax.f32 %v2925_v51, %v2999_v11  ;;  %v3429_v44 = vrot.slane %v2925_v51, 4  ;;  %v1883_v58 = vmax.f32 %v7336_v41, %v6965_v35 }
 0x24b   : > { %v3143_v23 = vsel %vm1380_vm3, %v3141_v17, %v3142_v10  ;;  %v3430_v8 = vrot.slane %v2835_v47, 4  ;;  %v3000_v36 = vrot.slane %v2941_v55, 1  ;;  %v3144_v27 = vrot.slane %v2941_v55, 2 }
 0x24c   : > { %v3247_v53 = vmax.f32 %v3103_v54, %v3143_v23  ;;  %v3288_v19 = vrot.slane %v2941_v55, 3  ;;  %v3432_v59 = vrot.slane %v2941_v55, 4  ;;  %v1909_v20 = vmax.f32 %v1883_v58, %v7018_v60 }
 0x24d   : > { %v7452_v7 = vmax.f32 %v1892_v30, %v7320_v24  ;;  %v3287_v42 = vsel %vm1525_vm4, %v3285_v12, %v3286_v46  ;;  %v3001_v51 = vsel %vm1235_vm2, %v2998_v14, %v3000_v36  ;;  %v8951_v35 = vmax.f32 %v6938_v22, %v6987_v57 }
 0x24e   : > { %v3391_v11 = vmax.f32 %v3247_v53, %v3287_v42  ;;  %v3431_v17 = vsel %vm1670_vm5, %v3429_v44, %v3430_v8  ;;  %v3104_v23 = vmax.f32 %v2835_v47, %v3001_v51  ;;  %v3145_v55 = vsel %vm1380_vm3, %v3142_v10, %v3144_v27  ;;  %v7472_v42 = vpop.permute.xlu0 %3595 }
 0x24f   : > { %v1910_v41 = vmax.f32 %v8951_v35, %v7041_v39  ;;  %v3289_v54 = vsel %vm1525_vm4, %v3286_v46, %v3288_v19  ;;  %v1977_v58 = vrot.slane %v1909_v20, 6  ;;  %v8952_v30 = vmax.f32 %v6974_v13, %v6909_v9 }
 0x250   : > { %v3535_v14 = vmax.f32 %v3391_v11, %v3431_v17  ;;  %v3248_v12 = vmax.f32 %v3104_v23, %v3145_v55  ;;  %v3433_v22 = vsel %vm1670_vm5, %v3430_v8, %v3432_v59  ;;  %v8953_v57 = vmax.f32 %v7064_v25, %v6800_v5  ;;  %v7478_v59 = vpop.permute.xlu1 %3601 }
 0x251   : > { %v1978_v24 = vrot.slane %v1910_v41, 6  ;;  %v2773_v36 = vmax.f32 %v8952_v30, %v7082_v0  ;;  %v2057_v27 = vsel %vm1074_vm1, -inf, %v1977_v58 }
 0x252   : > { %v2774_v47 = vmax.f32 %v8953_v57, %v7089_v16  ;;  %3859 = vrot.lane.b32.xlu0 %v3535_v14, %s5355_s19  ;;  %v3392_v13 = vmax.f32 %v3248_v12, %v3289_v54  ;;  %v2153_v46 = vrot.slane %v2057_v27, 1  ;;  %v2297_v8 = vrot.slane %v2057_v27, 2  ;;  %v7486_v57 = vpop.permute.xlu0 %3597 }
 0x253   : > { %v1979_v19 = vsel %vm1074_vm1, %v1977_v58, %v1978_v24  ;;  %v2073_v10 = vsel %vm1074_vm1, %v1978_v24, -inf  ;;  %v2836_v20 = vrot.slane %v2773_v36, 6  ;;  %v2441_v25 = vrot.slane %v2057_v27, 3 }
 0x254   : > { %v2154_v44 = vrot.slane %v1979_v19, 1  ;;  %v2298_v53 = vrot.slane %v1979_v19, 2  ;;  %v2442_v51 = vrot.slane %v1979_v19, 3  ;;  %v2585_v35 = vrot.slane %v2057_v27, 4 }
 0x255   : > { %v3536_v41 = vmax.f32 %v3392_v13, %v3433_v22  ;;  %v2586_v17 = vrot.slane %v1979_v19, 4  ;;  %v2156_v23 = vrot.slane %v2073_v10, 1  ;;  %v2300_v54 = vrot.slane %v2073_v10, 2 }
 0x256   : > { %v2155_v11 = vsel %vm1235_vm2, %v2153_v46, %v2154_v44  ;;  %v2299_v58 = vsel %vm1380_vm3, %v2297_v8, %v2298_v53  ;;  %v2443_v24 = vsel %vm1525_vm4, %v2441_v25, %v2442_v51  ;;  %v2444_v14 = vrot.slane %v2073_v10, 3 }
 0x257   : > { %v2241_v55 = vmax.f32 %v2057_v27, %v2155_v11  ;;  %3861 = vrot.lane.b32.xlu1 %v3536_v41, %s5355_s19  ;;  %v2587_v30 = vsel %vm1670_vm5, %v2585_v35, %v2586_v17  ;;  %v2157_v36 = vsel %vm1235_vm2, %v2154_v44, %v2156_v23  ;;  %v2588_v12 = vrot.slane %v2073_v10, 4  ;;  %v7494_v41 = vpop.permute.xlu1 %3605 }
 0x258   : > { %v2242_v13 = vmax.f32 %v1979_v19, %v2157_v36  ;;  %v2301_v46 = vsel %vm1380_vm3, %v2298_v53, %v2300_v54  ;;  %v2837_v27 = vrot.slane %v2774_v47, 6  ;;  %v2445_v8 = vsel %vm1525_vm4, %v2442_v51, %v2444_v14  ;;  %8954 = vst [vmem:[#allocation39_spill] sm:$0xff] %v7494_v41 }
 0x259   : > { %v2385_v22 = vmax.f32 %v2241_v55, %v2299_v58  ;;  %v2589_v25 = vsel %vm1670_vm5, %v2586_v17, %v2588_v12  ;;  %v2926_v11 = vsel %vm1074_vm1, -inf, %v2836_v20  ;;  %v1885_v35 = vmax.f32 %v7358_v31, %v7018_v60  ;;  %v7502_v12 = vpop.permute.xlu0 %3599 }
 0x25a   : > { %v2386_v10 = vmax.f32 %v2242_v13, %v2301_v46  ;;  %v2838_v23 = vsel %vm1074_vm1, %v2836_v20, %v2837_v27  ;;  %v3002_v55 = vrot.slane %v2926_v11, 1  ;;  %v3146_v58 = vrot.slane %v2926_v11, 2  ;;  %8955 = vst [vmem:[#allocation44_spill] sm:$0xff] %v7502_v12 }
 0x25b   : > { %v2529_v44 = vmax.f32 %v2385_v22, %v2443_v24  ;;  %v3003_v19 = vrot.slane %v2838_v23, 1  ;;  %v3147_v53 = vrot.slane %v2838_v23, 2  ;;  %v3290_v47 = vrot.slane %v2926_v11, 3 }
 0x25c   : > { %v2530_v51 = vmax.f32 %v2386_v10, %v2445_v8  ;;  %v3291_v17 = vrot.slane %v2838_v23, 3  ;;  %v3434_v36 = vrot.slane %v2926_v11, 4  ;;  %v3435_v31 = vrot.slane %v2838_v23, 4 }
 0x25d   : > { %v7497_v54 = vmax.f32 %v2529_v44, %v2587_v30  ;;  %v3004_v14 = vsel %vm1235_vm2, %v3002_v55, %v3003_v19  ;;  %v3148_v60 = vsel %vm1380_vm3, %v3146_v58, %v3147_v53  ;;  %v2942_v24 = vsel %vm1074_vm1, %v2837_v27, -inf  ;;  %v7510_v55 = vpop.permute.xlu1 %3609 }
 0x25e   : > { %v7506_v20 = vmax.f32 %v2530_v51, %v2589_v25  ;;  %v3105_v22 = vmax.f32 %v2926_v11, %v3004_v14  ;;  %v3292_v30 = vsel %vm1525_vm4, %v3290_v47, %v3291_v17  ;;  %v3005_v13 = vrot.slane %v2942_v24, 1  ;;  %8956 = vst [vmem:[#allocation42_spill] sm:$0xff] %v7510_v55 }
 0x25f   : > { %3755 = vrot.lane.b32.xlu0 %v7497_v54, %s5354_s18  ;;  %v3436_v46 = vsel %vm1670_vm5, %v3434_v36, %v3435_v31  ;;  %v3149_v8 = vrot.slane %v2942_v24, 2  ;;  %v3293_v44 = vrot.slane %v2942_v24, 3  ;;  %v3437_v10 = vrot.slane %v2942_v24, 4 }
 0x260   : > { %3757 = vrot.lane.b32.xlu1 %v7506_v20, %s5354_s18  ;;  %v3249_v27 = vmax.f32 %v3105_v22, %v3148_v60  ;;  %v3006_v58 = vsel %vm1235_vm2, %v3003_v19, %v3005_v13  ;;  %v1911_v25 = vmax.f32 %v1885_v35, %v7092_v43  ;;  %v8957_v11 = vmax.f32 %v7000_v34, %v7041_v39 }
 0x261   : > { %v3106_v51 = vmax.f32 %v2838_v23, %v3006_v58  ;;  %v3150_v36 = vsel %vm1380_vm3, %v3147_v53, %v3149_v8  ;;  %v3294_v14 = vsel %vm1525_vm4, %v3291_v17, %v3293_v44  ;;  %v3438_v24 = vsel %vm1670_vm5, %v3435_v31, %v3437_v10  ;;  %v7533_v23 = vpop.permute.xlu0 %3603 }
 0x262   : > { %v1912_v47 = vmax.f32 %v8957_v11, %v7101_v56  ;;  %v3393_v41 = vmax.f32 %v3249_v27, %v3292_v30  ;;  %v1980_v60 = vrot.slane %v1911_v25, 6  ;;  %v8958_v19 = vrot.slane %v7372_v33, 6  ;;  %8959 = vst [vmem:[#allocation43_spill] sm:$0xff] %v7533_v23  ;;  %v7538_v27 = vpop.permute.xlu1 %3613 }
 0x263   : > { %v3250_v13 = vmax.f32 %v3106_v51, %v3150_v36  ;;  %v2749_v34 = vmax.f32 %v6985_v52, %v7082_v0  ;;  %v2750_v39 = vmax.f32 %v7135_v45, %v7089_v16  ;;  %8960 = vst [vmem:[#allocation41_spill] sm:$0xff] %v7538_v27 }
 0x264   : > { %v1981_v22 = vrot.slane %v1912_v47, 6  ;;  %v7527_v35 = vsel %vm1074_vm1, -inf, %v8958_v19  ;;  %v3537_v53 = vmax.f32 %v3393_v41, %v3436_v46  ;;  %v2058_v31 = vsel %vm1074_vm1, -inf, %v1980_v60 }
 0x265   : > { %v3394_v33 = vmax.f32 %v3250_v13, %v3294_v14  ;;  %v2158_v8 = vrot.slane %v2058_v31, 1  ;;  %v2302_v10 = vrot.slane %v2058_v31, 2  ;;  %v2446_v58 = vrot.slane %v2058_v31, 3  ;;  %v7547_v55 = vpop.permute.xlu0 %3607 }
 0x266   : > { %v1982_v17 = vsel %vm1074_vm1, %v1980_v60, %v1981_v22  ;;  %v2074_v30 = vsel %vm1074_vm1, %v1981_v22, -inf  ;;  %3863 = vrot.lane.b32.xlu0 %v3537_v53, %s5355_s19  ;;  %v2590_v25 = vrot.slane %v2058_v31, 4  ;;  %8961 = vst [vmem:[#allocation27_spill] sm:$0xff] %v7547_v55 }
 0x267   : > { %v2159_v44 = vrot.slane %v1982_v17, 1  ;;  %v2303_v52 = vrot.slane %v1982_v17, 2  ;;  %v2447_v45 = vrot.slane %v1982_v17, 3  ;;  %v3538_v11 = vmax.f32 %v3394_v33, %v3438_v24 }
 0x268   : > { %v2591_v46 = vrot.slane %v1982_v17, 4  ;;  %v2161_v47 = vrot.slane %v2074_v30, 1  ;;  %v2305_v60 = vrot.slane %v2074_v30, 2  ;;  %v2449_v13 = vrot.slane %v2074_v30, 3 }
 0x269   : > { %v2160_v41 = vsel %vm1235_vm2, %v2158_v8, %v2159_v44  ;;  %v2304_v36 = vsel %vm1380_vm3, %v2302_v10, %v2303_v52  ;;  %v2448_v14 = vsel %vm1525_vm4, %v2446_v58, %v2447_v45  ;;  %3865 = vrot.lane.b32.xlu1 %v3538_v11, %s5355_s19  ;;  %v2593_v53 = vrot.slane %v2074_v30, 4  ;;  %v7559_v30 = vpop.permute.xlu1 %3617 }
 0x26a   : > { %v2243_v51 = vmax.f32 %v2058_v31, %v2160_v41  ;;  %v2592_v22 = vsel %vm1670_vm5, %v2590_v25, %v2591_v46  ;;  %v2162_v19 = vsel %vm1235_vm2, %v2159_v44, %v2161_v47  ;;  %v2306_v8 = vsel %vm1380_vm3, %v2303_v52, %v2305_v60  ;;  %8963 = vst [vmem:[#allocation19_spill] sm:$0xff] %v7559_v30 }
 0x26b   : > { %v2244_v33 = vmax.f32 %v1982_v17, %v2162_v19  ;;  %v2775_v31 = vmax.f32 %v2749_v34, %v7185_v40  ;;  %v8962_v10 = vrot.slane %v7420_v3, 6  ;;  %v2450_v11 = vsel %vm1525_vm4, %v2447_v45, %v2449_v13 }
 0x26c   : > { %v2387_v24 = vmax.f32 %v2243_v51, %v2304_v36  ;;  %v2594_v25 = vsel %vm1670_vm5, %v2591_v46, %v2593_v53  ;;  %v2776_v44 = vmax.f32 %v2750_v39, %v7187_v1  ;;  %v8964_v34 = vrot.slane %v7370_v61, 6 }
 0x26d   : > { %v7554_v58 = vsel %vm1074_vm1, -inf, %v8962_v10  ;;  %v2388_v47 = vmax.f32 %v2244_v33, %v2306_v8  ;;  %v2839_v52 = vrot.slane %v2775_v31, 6  ;;  %v1887_v45 = vmax.f32 %v7385_v48, %v7092_v43  ;;  %v7578_v31 = vpop.permute.xlu0 %3611 }
 0x26e   : > { %v2531_v17 = vmax.f32 %v2387_v24, %v2448_v14  ;;  %v7565_v51 = vsel %vm1074_vm1, -inf, %v8964_v34  ;;  %v2840_v60 = vrot.slane %v2776_v44, 6  ;;  %v8965_v14 = vmax.f32 %v7395_v26, %v7101_v56  ;;  %8966 = vst [vmem:[#allocation49_spill] sm:$0xff] %v7578_v31 }
 0x26f   : > { %v2532_v39 = vmax.f32 %v2388_v47, %v2450_v11  ;;  %v2927_v19 = vsel %vm1074_vm1, -inf, %v2839_v52  ;;  %v1913_v26 = vmax.f32 %v1887_v45, %v7203_v63 }
 0x270   : > { %v7570_v46 = vmax.f32 %v2531_v17, %v2592_v22  ;;  %v1914_v13 = vmax.f32 %v8965_v14, %v7205_v4  ;;  %v2841_v53 = vsel %vm1074_vm1, %v2839_v52, %v2840_v60  ;;  %v3007_v24 = vrot.slane %v2927_v19, 1  ;;  %v7586_v17 = vpop.permute.xlu1 %3723 }
 0x271   : > { %v3151_v33 = vrot.slane %v2927_v19, 2  ;;  %v3295_v8 = vrot.slane %v2927_v19, 3  ;;  %v7582_v43 = vmax.f32 %v2532_v39, %v2594_v25  ;;  %v3008_v48 = vrot.slane %v2841_v53, 1  ;;  %8967 = vst [vmem:[#allocation20_spill] sm:$0xff] %v7586_v17 }
 0x272   : > { %3759 = vrot.lane.b32.xlu0 %v7570_v46, %s5354_s18  ;;  %v3152_v22 = vrot.slane %v2841_v53, 2  ;;  %v3296_v10 = vrot.slane %v2841_v53, 3  ;;  %v3439_v11 = vrot.slane %v2927_v19, 4  ;;  %v3440_v44 = vrot.slane %v2841_v53, 4 }
 0x273   : > { %v2943_v56 = vsel %vm1074_vm1, %v2840_v60, -inf  ;;  %3761 = vrot.lane.b32.xlu1 %v7582_v43, %s5354_s18  ;;  %v3009_v47 = vsel %vm1235_vm2, %v3007_v24, %v3008_v48  ;;  %v1983_v30 = vrot.slane %v1913_v26, 6  ;;  %v1984_v27 = vrot.slane %v1914_v13, 6 }
 0x274   : > { %v3153_v52 = vsel %vm1380_vm3, %v3151_v33, %v3152_v22  ;;  %v3297_v25 = vsel %vm1525_vm4, %v3295_v8, %v3296_v10  ;;  %v3010_v34 = vrot.slane %v2943_v56, 1  ;;  %v3107_v39 = vmax.f32 %v2927_v19, %v3009_v47  ;;  %v7597_v33 = vpop.permute.xlu0 %3615 }
 0x275   : > { %v3441_v14 = vsel %vm1670_vm5, %v3439_v11, %v3440_v44  ;;  %v3154_v36 = vrot.slane %v2943_v56, 2  ;;  %v3298_v41 = vrot.slane %v2943_v56, 3  ;;  %v3442_v45 = vrot.slane %v2943_v56, 4  ;;  %8968 = vst [vmem:[#allocation46_spill] sm:$0xff] %v7597_v33 }
 0x276   : > { %v3011_v60 = vsel %vm1235_vm2, %v3008_v48, %v3010_v34  ;;  %v3251_v31 = vmax.f32 %v3107_v39, %v3153_v52  ;;  %v1985_v19 = vsel %vm1074_vm1, %v1983_v30, %v1984_v27  ;;  %v2059_v11 = vsel %vm1074_vm1, -inf, %v1983_v30  ;;  %v7603_v52 = vpop.permute.xlu1 %3725 }
 0x277   : > { %v3108_v55 = vmax.f32 %v2841_v53, %v3011_v60  ;;  %v3155_v23 = vsel %vm1380_vm3, %v3152_v22, %v3154_v36  ;;  %v3299_v24 = vsel %vm1525_vm4, %v3296_v10, %v3298_v41  ;;  %v3443_v8 = vsel %vm1670_vm5, %v3440_v44, %v3442_v45  ;;  %8969 = vst [vmem:[#allocation45_spill] sm:$0xff] %v7603_v52 }
 0x278   : > { %v2075_v47 = vsel %vm1074_vm1, %v1984_v27, -inf  ;;  %v3395_v48 = vmax.f32 %v3251_v31, %v3297_v25  ;;  %v2163_v26 = vrot.slane %v2059_v11, 1  ;;  %v2164_v13 = vrot.slane %v1985_v19, 1  ;;  %v7609_v33 = vpop.permute.xlu0 %3619 }
 0x279   : > { %v3252_v56 = vmax.f32 %v3108_v55, %v3155_v23  ;;  %v2307_v53 = vrot.slane %v2059_v11, 2  ;;  %v2308_v36 = vrot.slane %v1985_v19, 2  ;;  %v2451_v22 = vrot.slane %v2059_v11, 3  ;;  %8970 = vst [vmem:[#allocation24_spill] sm:$0xff] %v7609_v33 }
 0x27a   : > { %v2452_v41 = vrot.slane %v1985_v19, 3  ;;  %v3539_v10 = vmax.f32 %v3395_v48, %v3441_v14  ;;  %v2165_v44 = vsel %vm1235_vm2, %v2163_v26, %v2164_v13  ;;  %v2595_v39 = vrot.slane %v2059_v11, 4 }
 0x27b   : > { %v3396_v34 = vmax.f32 %v3252_v56, %v3299_v24  ;;  %v2245_v60 = vmax.f32 %v2059_v11, %v2165_v44  ;;  %v2309_v30 = vsel %vm1380_vm3, %v2307_v53, %v2308_v36  ;;  %v2596_v31 = vrot.slane %v1985_v19, 4  ;;  %v7620_v53 = vpop.permute.xlu1 %3621 }
 0x27c   : > { %v2453_v27 = vsel %vm1525_vm4, %v2451_v22, %v2452_v41  ;;  %3867 = vrot.lane.b32.xlu0 %v3539_v10, %s5355_s19  ;;  %v2166_v23 = vrot.slane %v2075_v47, 1  ;;  %v2310_v25 = vrot.slane %v2075_v47, 2  ;;  %v2454_v45 = vrot.slane %v2075_v47, 3  ;;  %8971 = vst [vmem:[#allocation48_spill] sm:$0xff] %v7620_v53 }
 0x27d   : > { %v3540_v55 = vmax.f32 %v3396_v34, %v3443_v8  ;;  %v2389_v12 = vmax.f32 %v2245_v60, %v2309_v30  ;;  %v2597_v14 = vsel %vm1670_vm5, %v2595_v39, %v2596_v31  ;;  %v2598_v24 = vrot.slane %v2075_v47, 4 }
 0x27e   : > { %v2695_v11 = vmax.f32 %v6905_v6, %v6909_v9  ;;  %v2167_v48 = vsel %vm1235_vm2, %v2164_v13, %v2166_v23  ;;  %v2311_v56 = vsel %vm1380_vm3, %v2308_v36, %v2310_v25  ;;  %v2455_v8 = vsel %vm1525_vm4, %v2452_v41, %v2454_v45 }
 0x27f   : > { %3869 = vrot.lane.b32.xlu1 %v3540_v55, %s5355_s19  ;;  %v2696_v26 = vmax.f32 %v6919_v29, %v6800_v5  ;;  %v2533_v22 = vmax.f32 %v2389_v12, %v2453_v27  ;;  %v2246_v10 = vmax.f32 %v1985_v19, %v2167_v48  ;;  %v2599_v47 = vsel %vm1670_vm5, %v2596_v31, %v2598_v24  ;;  %v7662_v24 = vpop.permute.xlu1 %3729 }
 0x280   : > { %v2723_v34 = vmax.f32 %v2695_v11, %v7082_v0  ;;  %v1889_v36 = vmax.f32 %v7412_v28, %v7203_v63  ;;  %v8972_v12 = vmax.f32 %v7417_v21, %v7205_v4  ;;  %v8973_v30 = vrot.slane %v7408_v50, 6  ;;  %v7644_v28 = vpop.permute.xlu0 %3727  ;;  %8977 = vst [vmem:[#allocation25_spill] sm:$0xff] %v7662_v24 }
 0x281   : > { %v2724_v13 = vmax.f32 %v2696_v26, %v7089_v16  ;;  %v7629_v41 = vmax.f32 %v2533_v22, %v2597_v14  ;;  %v2390_v29 = vmax.f32 %v2246_v10, %v2311_v56  ;;  %8974 = vst [vmem:[#allocation47_spill] sm:$0xff] %v7644_v28  ;;  %v8975_v21 = vrot.slane %v7452_v7, 6 }
 0x282   : > { %v2751_v39 = vmax.f32 %v2723_v34, %v7185_v40  ;;  %v1916_v19 = vmax.f32 %v8972_v12, %v7298_v62  ;;  %v7640_v27 = vsel %vm1074_vm1, %v8973_v30, -inf  ;;  %v1915_v63 = vmax.f32 %v1889_v36, %v7296_v32 }
 0x283   : > { %v2752_v31 = vmax.f32 %v2724_v13, %v7187_v1  ;;  %3763 = vrot.lane.b32.xlu0 %v7629_v41, %s5354_s18  ;;  %v2534_v55 = vmax.f32 %v2390_v29, %v2455_v8  ;;  %v8976_v50 = vrot.slane %v7420_v3, 6  ;;  %v7658_v25 = vsel %vm1074_vm1, %v7423_v2, -inf }
 0x284   : > { %v2777_v4 = vmax.f32 %v2751_v39, %v7267_v15  ;;  %v1987_v62 = vrot.slane %v1916_v19, 6  ;;  %v1986_v45 = vrot.slane %v1915_v63, 6  ;;  %v7680_v19 = vpop.permute.xlu0 %3623 }
 0x285   : > { %v7654_v23 = vsel %vm1074_vm1, %v8976_v50, %v8975_v21  ;;  %v2778_v32 = vmax.f32 %v2752_v31, %v7269_v38  ;;  %v7664_v11 = vmax.f32 %v2534_v55, %v2599_v47  ;;  %8978 = vst [vmem:[#allocation50_spill] sm:$0xff] %v7680_v19 }
 0x286   : > { %v2842_v48 = vrot.slane %v2777_v4, 6  ;;  %v7667_v56 = vsel %vm1074_vm1, %v1987_v62, -inf  ;;  %v7671_v26 = vsel %vm1074_vm1, %v1986_v45, %v1987_v62  ;;  %v2060_v2 = vsel %vm1074_vm1, -inf, %v1986_v45 }
 0x287   : > { %v2843_v8 = vrot.slane %v2778_v32, 6  ;;  %3765 = vrot.lane.b32.xlu1 %v7664_v11, %s5354_s18  ;;  %v2168_v47 = vrot.slane %v2060_v2, 1  ;;  %v2169_v34 = vrot.slane %v7671_v26, 1  ;;  %v2312_v13 = vrot.slane %v2060_v2, 2  ;;  %v7685_v32 = vpop.permute.xlu1 %3625 }
 0x288   : > { %v2928_v10 = vsel %vm1074_vm1, -inf, %v2842_v48  ;;  %v2313_v50 = vrot.slane %v7671_v26, 2  ;;  %8979 = vst [vmem:[#allocation51_spill] sm:$0xff] %v7685_v32  ;;  %v2171_v6 = vrot.slane %v7667_v56, 1  ;;  %v7695_v24 = vpop.permute.xlu0 %3731  ;;  %v2457_v28 = vrot.slane %v7671_v26, 3 }
 0x289   : > { %v2844_v36 = vsel %vm1074_vm1, %v2842_v48, %v2843_v8  ;;  %v3012_v29 = vrot.slane %v2928_v10, 1  ;;  %v3156_v39 = vrot.slane %v2928_v10, 2  ;;  %v3300_v12 = vrot.slane %v2928_v10, 3 }
 0x28a   : > { %v3013_v30 = vrot.slane %v2844_v36, 1  ;;  %v3157_v31 = vrot.slane %v2844_v36, 2  ;;  %v3301_v63 = vrot.slane %v2844_v36, 3  ;;  %v3444_v55 = vrot.slane %v2928_v10, 4 }
 0x28b   : > { %v3445_v4 = vrot.slane %v2844_v36, 4  ;;  %v2944_v62 = vsel %vm1074_vm1, %v2843_v8, -inf  ;;  %v2170_v21 = vsel %vm1235_vm2, %v2168_v47, %v2169_v34  ;;  %v2600_v17 = vrot.slane %v2060_v2, 4 }
 0x28c   : > { %v3014_v45 = vsel %vm1235_vm2, %v3012_v29, %v3013_v30  ;;  %v3158_v48 = vsel %vm1380_vm3, %v3156_v39, %v3157_v31  ;;  %v3015_v44 = vrot.slane %v2944_v62, 1  ;;  %v3302_v22 = vsel %vm1525_vm4, %v3300_v12, %v3301_v63 }
 0x28d   : > { %v3109_v60 = vmax.f32 %v2928_v10, %v3014_v45  ;;  %v3159_v14 = vrot.slane %v2944_v62, 2  ;;  %v3303_v3 = vrot.slane %v2944_v62, 3  ;;  %v3446_v8 = vsel %vm1670_vm5, %v3444_v55, %v3445_v4 }
 0x28e   : > { %v3016_v47 = vsel %vm1235_vm2, %v3013_v30, %v3015_v44  ;;  %v3447_v19 = vrot.slane %v2944_v62, 4  ;;  %v2247_v53 = vmax.f32 %v2060_v2, %v2170_v21  ;;  %v2314_v39 = vsel %vm1380_vm3, %v2312_v13, %v2313_v50  ;;  %v7700_v30 = vpop.permute.xlu1 %3733 }
 0x28f   : > { %v3253_v33 = vmax.f32 %v3109_v60, %v3158_v48  ;;  %v3110_v32 = vmax.f32 %v2844_v36, %v3016_v47  ;;  %v3160_v29 = vsel %vm1380_vm3, %v3157_v31, %v3159_v14  ;;  %v3304_v10 = vsel %vm1525_vm4, %v3301_v63, %v3303_v3 }
 0x290   : > { %v2391_v45 = vmax.f32 %v2247_v53, %v2314_v39  ;;  %v2456_v12 = vrot.slane %v2060_v2, 3  ;;  %v2601_v44 = vrot.slane %v7671_v26, 4  ;;  %v2172_v14 = vsel %vm1235_vm2, %v2169_v34, %v2171_v6 }
 0x291   : > { %v3397_v52 = vmax.f32 %v3253_v33, %v3302_v22  ;;  %v3254_v55 = vmax.f32 %v3110_v32, %v3160_v29  ;;  %v2315_v13 = vrot.slane %v7667_v56, 2  ;;  %v2459_v36 = vrot.slane %v7667_v56, 3 }
 0x292   : > { %v2458_v60 = vsel %vm1525_vm4, %v2456_v12, %v2457_v28  ;;  %v3448_v31 = vsel %vm1670_vm5, %v3445_v4, %v3447_v19  ;;  %v2602_v33 = vsel %vm1670_vm5, %v2600_v17, %v2601_v44  ;;  %v2248_v2 = vmax.f32 %v7671_v26, %v2172_v14  ;;  %v7719_v17 = vpop.permute.xlu0 %3627  ;;  %v7732_v39 = vpop.permute.xlu1 %3629 }
 0x293   : > { %v3541_v3 = vmax.f32 %v3397_v52, %v3446_v8  ;;  %v3398_v53 = vmax.f32 %v3254_v55, %v3304_v10  ;;  %v2535_v63 = vmax.f32 %v2391_v45, %v2458_v60  ;;  %v2316_v22 = vsel %vm1380_vm3, %v2313_v50, %v2315_v13  ;;  %8982 = vst [vmem:[#allocation52_spill] sm:$0xff] %v7719_v17 }
 0x294   : > { %v2603_v62 = vrot.slane %v7667_v56, 4  ;;  %v2460_v34 = vsel %vm1525_vm4, %v2457_v28, %v2459_v36  ;;  %v8980_v21 = vrot.slane %v7654_v23, 1  ;;  %v8981_v52 = vrot.slane %v7554_v58, 1  ;;  %8984 = vst [vmem:[#allocation53_spill] sm:$0xff] %v7732_v39 }
 0x295   : > { %3871 = vrot.lane.b32.xlu0 %v3541_v3, %s5355_s19  ;;  %v3542_v6 = vmax.f32 %v3398_v53, %v3448_v31  ;;  %v2318_v4 = vrot.slane %v7654_v23, 2  ;;  %v7721_v26 = vmax.f32 %v2535_v63, %v2602_v33  ;;  %v2392_v50 = vmax.f32 %v2248_v2, %v2316_v22 }
 0x296   : > { %v2175_v19 = vsel %vm1235_vm2, %v8981_v52, %v8980_v21  ;;  %v2461_v32 = vrot.slane %v7554_v58, 3  ;;  %v8983_v28 = vrot.slane %v7554_v58, 2  ;;  %v2462_v8 = vrot.slane %v7654_v23, 3 }
 0x297   : > { %v2249_v56 = vmax.f32 %v7554_v58, %v2175_v19  ;;  %3873 = vrot.lane.b32.xlu1 %v3542_v6, %s5355_s19  ;;  %v2605_v47 = vrot.slane %v7554_v58, 4  ;;  %v2606_v29 = vrot.slane %v7654_v23, 4  ;;  %v2179_v10 = vrot.slane %v7434_v18, 1 }
 0x298   : > { %v2319_v48 = vsel %vm1380_vm3, %v8983_v28, %v2318_v4  ;;  %v2536_v45 = vmax.f32 %v2392_v50, %v2460_v34  ;;  %v2604_v12 = vsel %vm1670_vm5, %v2601_v44, %v2603_v62  ;;  %v2463_v60 = vsel %vm1525_vm4, %v2461_v32, %v2462_v8  ;;  %v7751_v34 = vpop.permute.xlu0 %3735 }
 0x299   : > { %v2393_v55 = vmax.f32 %v2249_v56, %v2319_v48  ;;  %3767 = vrot.lane.b32.xlu0 %v7721_v26, %s5354_s18  ;;  %v2607_v14 = vsel %vm1670_vm5, %v2605_v47, %v2606_v29  ;;  %v8985_v13 = vrot.slane %v7452_v7, 6  ;;  %v8986_v36 = vrot.slane %v7406_v49, 6  ;;  %v7766_v48 = vpop.permute.xlu1 %3737 }
 0x29a   : > { %v8987_v3 = vrot.slane %v7370_v61, 6  ;;  %v7748_v31 = vmax.f32 %v2536_v45, %v2604_v12  ;;  %v2188_v62 = vrot.slane %v7565_v51, 1  ;;  %v8988_v61 = vmov %v8980_v21 }
 0x29b   : > { %v2077_v58 = vsel %vm1074_vm1, %v8985_v13, -inf  ;;  %v2537_v44 = vmax.f32 %v2393_v55, %v2463_v60  ;;  %v2332_v19 = vrot.slane %v7565_v51, 2  ;;  %v2181_v55 = vrot.slane %v7640_v27, 1 }
 0x29c   : > { %v2000_v53 = vsel %vm1074_vm1, %v8987_v3, %v8986_v36  ;;  %v2176_v63 = vrot.slane %v2077_v58, 1  ;;  %v2320_v33 = vrot.slane %v2077_v58, 2  ;;  %v2464_v2 = vrot.slane %v2077_v58, 3  ;;  %3769 = vrot.lane.b32.xlu1 %v7748_v31, %s5354_s18 }
 0x29d   : > { %v2608_v22 = vrot.slane %v2077_v58, 4  ;;  %v2189_v6 = vrot.slane %v2000_v53, 1  ;;  %v7755_v7 = vmax.f32 %v2537_v44, %v2607_v14  ;;  %v2333_v45 = vrot.slane %v2000_v53, 2 }
 0x29e   : > { %v2177_v21 = vsel %vm1235_vm2, %v8988_v61, %v2176_v63  ;;  %v2321_v52 = vsel %vm1380_vm3, %v2318_v4, %v2320_v33  ;;  %v2465_v56 = vsel %vm1525_vm4, %v2462_v8, %v2464_v2  ;;  %v2476_v4 = vrot.slane %v7565_v51, 3  ;;  %v7781_v2 = vpop.permute.xlu0 %3631 }
 0x29f   : > { %v2250_v50 = vmax.f32 %v7654_v23, %v2177_v21  ;;  %v2609_v32 = vsel %vm1670_vm5, %v2606_v29, %v2608_v22  ;;  %v2190_v28 = vsel %vm1235_vm2, %v2188_v62, %v2189_v6  ;;  %3771 = vrot.lane.b32.xlu0 %v7755_v7, %s5354_s18  ;;  %v2477_v12 = vrot.slane %v2000_v53, 3  ;;  %8990 = vst [vmem:[#allocation54_spill] sm:$0xff] %v7781_v2 }
 0x2a0   : > { %v2255_v47 = vmax.f32 %v7565_v51, %v2190_v28  ;;  %v2620_v8 = vrot.slane %v7565_v51, 4  ;;  %v2621_v60 = vrot.slane %v2000_v53, 4  ;;  %v2323_v29 = vrot.slane %v7434_v18, 2 }
 0x2a1   : > { %v2394_v23 = vmax.f32 %v2250_v50, %v2321_v52  ;;  %v2334_v14 = vsel %vm1380_vm3, %v2332_v19, %v2333_v45  ;;  %v2478_v13 = vsel %vm1525_vm4, %v2476_v4, %v2477_v12  ;;  %v8989_v58 = vmov %v8986_v36  ;;  %v7790_v50 = vpop.permute.xlu1 %3633 }
 0x2a2   : > { %v2080_v36 = vsel %vm1074_vm1, %v8989_v58, -inf  ;;  %v2399_v44 = vmax.f32 %v2255_v47, %v2334_v14  ;;  %v2622_v63 = vsel %vm1670_vm5, %v2620_v8, %v2621_v60  ;;  %v2697_v61 = vmax.f32 %v6909_v9, %v7082_v0  ;;  %8991 = vst [vmem:[#allocation55_spill] sm:$0xff] %v7790_v50  ;;  %v8997_v50 = vld [vmem:[#allocation40_spill] sm:$0xff] }
 0x2a3   : > { %v2538_v3 = vmax.f32 %v2394_v23, %v2465_v56  ;;  %v2191_v33 = vrot.slane %v2080_v36, 1  ;;  %v2335_v22 = vrot.slane %v2080_v36, 2  ;;  %v2479_v51 = vrot.slane %v2080_v36, 3 }
 0x2a4   : > { %v2623_v62 = vrot.slane %v2080_v36, 4  ;;  %v2543_v52 = vmax.f32 %v2399_v44, %v2478_v13  ;;  %v2698_v19 = vmax.f32 %v6800_v5, %v7089_v16  ;;  %v2325_v23 = vrot.slane %v7640_v27, 2 }
 0x2a5   : > { %v7785_v21 = vmax.f32 %v2538_v3, %v2609_v32  ;;  %v2192_v49 = vsel %vm1235_vm2, %v2189_v6, %v2191_v33  ;;  %v2336_v28 = vsel %vm1380_vm3, %v2333_v45, %v2335_v22  ;;  %v2480_v47 = vsel %vm1525_vm4, %v2477_v12, %v2479_v51  ;;  %v7817_v3 = vpop.permute.xlu0 %3739 }
 0x2a6   : > { %v2256_v56 = vmax.f32 %v2000_v53, %v2192_v49  ;;  %v2624_v4 = vsel %vm1670_vm5, %v2621_v60, %v2623_v62  ;;  %v7798_v9 = vmax.f32 %v2543_v52, %v2622_v63  ;;  %v2725_v6 = vmax.f32 %v2697_v61, %v7185_v40 }
 0x2a7   : > { %3773 = vrot.lane.b32.xlu1 %v7785_v21, %s5354_s18  ;;  %v2726_v5 = vmax.f32 %v2698_v19, %v7187_v1  ;;  %v2469_v32 = vrot.slane %v7640_v27, 3  ;;  %v8992_v45 = vrot.slane %v7527_v35, 1  ;;  %v8993_v8 = vrot.slane %v7527_v35, 2  ;;  %v7827_v19 = vpop.permute.xlu1 %3741 }
 0x2a8   : > { %v2400_v53 = vmax.f32 %v2256_v56, %v2336_v28  ;;  %3783 = vrot.lane.b32.xlu0 %v7798_v9, %s5354_s18  ;;  %v2753_v14 = vmax.f32 %v2725_v6, %v7267_v15  ;;  %v2467_v36 = vrot.slane %v7434_v18, 3  ;;  %v2613_v44 = vrot.slane %v7640_v27, 4 }
 0x2a9   : > { %v2180_v12 = vsel %vm1235_vm2, %v8992_v45, %v2179_v10  ;;  %v2324_v60 = vsel %vm1380_vm3, %v8993_v8, %v2323_v29  ;;  %v2754_v13 = vmax.f32 %v2726_v5, %v7269_v38  ;;  %v2610_v33 = vrot.slane %v7527_v35, 4 }
 0x2aa   : > { %v2251_v58 = vmax.f32 %v7527_v35, %v2180_v12  ;;  %v2544_v63 = vmax.f32 %v2400_v53, %v2480_v47  ;;  %v2611_v22 = vrot.slane %v7434_v18, 4  ;;  %v2779_v51 = vmax.f32 %v2753_v14, %v7497_v54 }
 0x2ab   : > { %v2780_v62 = vmax.f32 %v2754_v13, %v7506_v20  ;;  %v8994_v52 = vrot.slane %v7527_v35, 3  ;;  %v7831_v56 = vsel %vm1074_vm1, -inf, %v7401_v37  ;;  %v2182_v47 = vsel %vm1235_vm2, %v2179_v10, %v2181_v55 }
 0x2ac   : > { %v2395_v61 = vmax.f32 %v2251_v58, %v2324_v60  ;;  %v7833_v27 = vmax.f32 %v2544_v63, %v2624_v4  ;;  %v2612_v28 = vsel %vm1670_vm5, %v2610_v33, %v2611_v22  ;;  %v2845_v6 = vrot.slane %v2779_v51, 6 }
 0x2ad   : > { %v2468_v49 = vsel %vm1525_vm4, %v8994_v52, %v2467_v36  ;;  %v2846_v5 = vrot.slane %v2780_v62, 6  ;;  %v2252_v35 = vmax.f32 %v7434_v18, %v2182_v47  ;;  %v2186_v45 = vrot.slane %v7658_v25, 1  ;;  %v7851_v18 = vpop.permute.xlu0 %3635 }
 0x2ae   : > { %v2539_v53 = vmax.f32 %v2395_v61, %v2468_v49  ;;  %3785 = vrot.lane.b32.xlu1 %v7833_v27, %s5354_s18  ;;  %v2326_v37 = vsel %vm1380_vm3, %v2323_v29, %v2325_v23  ;;  %v2470_v4 = vsel %vm1525_vm4, %v2467_v36, %v2469_v32  ;;  %v2614_v12 = vsel %vm1670_vm5, %v2611_v22, %v2613_v44  ;;  %v7853_v36 = vpop.permute.xlu1 %3637 }
 0x2af   : > { %v2847_v8 = vsel %vm1074_vm1, %v2845_v6, %v2846_v5  ;;  %v2929_v10 = vsel %vm1074_vm1, -inf, %v2845_v6  ;;  %v2945_v55 = vsel %vm1074_vm1, %v2846_v5, -inf  ;;  %8995 = vst [vmem:[#allocation56_spill] sm:$0xff] %v7851_v18  ;;  %8996 = vst [vmem:[#allocation57_spill] sm:$0xff] %v7853_v36  ;;  %v2183_v62 = vrot.slane %v7831_v56, 1 }
 0x2b0   : > { %v7849_v60 = vmax.f32 %v2539_v53, %v2612_v28  ;;  %v3017_v14 = vrot.slane %v2929_v10, 1  ;;  %v3018_v13 = vrot.slane %v2847_v8, 1  ;;  %v3161_v58 = vrot.slane %v2929_v10, 2 }
 0x2b1   : > { %v3162_v63 = vrot.slane %v2847_v8, 2  ;;  %v3305_v33 = vrot.slane %v2929_v10, 3  ;;  %v3306_v29 = vrot.slane %v2847_v8, 3  ;;  %v3449_v23 = vrot.slane %v2929_v10, 4  ;;  %v7863_v39 = vpop.permute.xlu0 %3743 }
 0x2b2   : > { %v3450_v32 = vrot.slane %v2847_v8, 4  ;;  %v3019_v44 = vsel %vm1235_vm2, %v3017_v14, %v3018_v13  ;;  %v3020_v22 = vrot.slane %v2945_v55, 1  ;;  %v3164_v51 = vrot.slane %v2945_v55, 2 }
 0x2b3   : > { %v3111_v61 = vmax.f32 %v2929_v10, %v3019_v44  ;;  %v3163_v52 = vsel %vm1380_vm3, %v3161_v58, %v3162_v63  ;;  %v3307_v49 = vsel %vm1525_vm4, %v3305_v33, %v3306_v29  ;;  %v3308_v28 = vrot.slane %v2945_v55, 3 }
 0x2b4   : > { %v3451_v47 = vsel %vm1670_vm5, %v3449_v23, %v3450_v32  ;;  %v3021_v6 = vsel %vm1235_vm2, %v3018_v13, %v3020_v22  ;;  %v3165_v5 = vsel %vm1380_vm3, %v3162_v63, %v3164_v51  ;;  %v2396_v53 = vmax.f32 %v2252_v35, %v2326_v37  ;;  %v7870_v37 = vpop.permute.xlu1 %3745 }
 0x2b5   : > { %v3255_v36 = vmax.f32 %v3111_v61, %v3163_v52  ;;  %v3112_v18 = vmax.f32 %v2847_v8, %v3021_v6  ;;  %v3452_v14 = vrot.slane %v2945_v55, 4  ;;  %v2184_v2 = vrot.slane %v8997_v50, 1 }
 0x2b6   : > { %v3309_v10 = vsel %vm1525_vm4, %v3306_v29, %v3308_v28  ;;  %v2540_v58 = vmax.f32 %v2396_v53, %v2470_v4  ;;  %v2327_v33 = vrot.slane %v7831_v56, 2  ;;  %v2328_v44 = vrot.slane %v8997_v50, 2 }
 0x2b7   : > { %v3399_v23 = vmax.f32 %v3255_v36, %v3307_v49  ;;  %v3256_v17 = vmax.f32 %v3112_v18, %v3165_v5  ;;  %v2185_v13 = vsel %vm1235_vm2, %v2183_v62, %v2184_v2  ;;  %v2471_v35 = vrot.slane %v7831_v56, 3 }
 0x2b8   : > { %v7872_v8 = vmax.f32 %v2540_v58, %v2614_v12  ;;  %v2253_v55 = vmax.f32 %v7831_v56, %v2185_v13  ;;  %v2329_v63 = vsel %vm1380_vm3, %v2327_v33, %v2328_v44  ;;  %v2472_v4 = vrot.slane %v8997_v50, 3 }
 0x2b9   : > { %v3543_v29 = vmax.f32 %v3399_v23, %v3451_v47  ;;  %v3400_v22 = vmax.f32 %v3256_v17, %v3309_v10  ;;  %v2615_v51 = vrot.slane %v7831_v56, 4  ;;  %v2616_v18 = vrot.slane %v8997_v50, 4  ;;  %v7885_v47 = vpop.permute.xlu0 %3639 }
 0x2ba   : > { %v3453_v36 = vsel %vm1670_vm5, %v3450_v32, %v3452_v14  ;;  %v2397_v62 = vmax.f32 %v2253_v55, %v2329_v63  ;;  %v2473_v61 = vsel %vm1525_vm4, %v2471_v35, %v2472_v4  ;;  %v2187_v49 = vsel %vm1235_vm2, %v2184_v2, %v2186_v45  ;;  %v7896_v45 = vpop.permute.xlu1 %3641 }
 0x2bb   : > { %3875 = vrot.lane.b32.xlu0 %v3543_v29, %s5355_s19  ;;  %v3544_v12 = vmax.f32 %v3400_v22, %v3453_v36  ;;  %v2617_v52 = vsel %vm1670_vm5, %v2615_v51, %v2616_v18  ;;  %v2330_v28 = vrot.slane %v7658_v25, 2  ;;  %v2254_v56 = vmax.f32 %v8997_v50, %v2187_v49  ;;  %8998 = vst [vmem:[#allocation40_spill] sm:$0xff] %v7896_v45 }
 0x2bc   : > { %v2541_v17 = vmax.f32 %v2397_v62, %v2473_v61  ;;  %v2474_v6 = vrot.slane %v7658_v25, 3  ;;  %v2618_v32 = vrot.slane %v7658_v25, 4  ;;  %v2699_v53 = vmax.f32 %v7082_v0, %v7185_v40 }
 0x2bd   : > { %3877 = vrot.lane.b32.xlu1 %v3544_v12, %s5355_s19  ;;  %v2331_v5 = vsel %vm1380_vm3, %v2328_v44, %v2330_v28  ;;  %v2700_v2 = vmax.f32 %v7089_v16, %v7187_v1  ;;  %v2701_v0 = vmax.f32 %v7185_v40, %v7267_v15  ;;  %v2702_v44 = vmax.f32 %v7187_v1, %v7269_v38  ;;  %v7915_v55 = vpop.permute.xlu0 %3851 }
 0x2be   : > { %v7898_v14 = vmax.f32 %v2541_v17, %v2617_v52  ;;  %v2398_v10 = vmax.f32 %v2254_v56, %v2331_v5  ;;  %v2475_v50 = vsel %vm1525_vm4, %v2472_v4, %v2474_v6  ;;  %v2619_v58 = vsel %vm1670_vm5, %v2616_v18, %v2618_v32  ;;  %v7929_v18 = vpop.permute.xlu1 %3853 }
 0x2bf   : > { %3775 = vrot.lane.b32.xlu0 %v7849_v60, %s5354_s18  ;;  %v2727_v25 = vmax.f32 %v2699_v53, %v7267_v15  ;;  %v2728_v33 = vmax.f32 %v2700_v2, %v7269_v38  ;;  %v2729_v35 = vmax.f32 %v2701_v0, %v7497_v54  ;;  %v2730_v4 = vmax.f32 %v2702_v44, %v7506_v20 }
 0x2c0   : > { %v2542_v16 = vmax.f32 %v2398_v10, %v2475_v50  ;;  %v2703_v40 = vmax.f32 %v7267_v15, %v7497_v54  ;;  %v2704_v1 = vmax.f32 %v7269_v38, %v7506_v20  ;;  %v2705_v17 = vmax.f32 %v7497_v54, %v7570_v46 }
 0x2c1   : > { %3777 = vrot.lane.b32.xlu1 %v7872_v8, %s5354_s18  ;;  %v2755_v23 = vmax.f32 %v2727_v25, %v7497_v54  ;;  %v2756_v13 = vmax.f32 %v2728_v33, %v7506_v20  ;;  %v2757_v51 = vmax.f32 %v2729_v35, %v7570_v46  ;;  %v2758_v36 = vmax.f32 %v2730_v4, %v7582_v43  ;;  %v7951_v53 = vpop.permute.xlu0 %3747 }
 0x2c2   : > { %v7917_v63 = vmax.f32 %v2542_v16, %v2619_v58  ;;  %v7933_v62 = vmax.f32 %v2703_v40, %v7570_v46  ;;  %v7936_v15 = vmax.f32 %v2704_v1, %v7582_v43  ;;  %v7953_v44 = vpop.permute.xlu1 %3749  ;;  %v2706_v35 = vmax.f32 %v7506_v20, %v7582_v43 }
 0x2c3   : > { %3779 = vrot.lane.b32.xlu0 %v7898_v14, %s5354_s18  ;;  %v2781_v29 = vmax.f32 %v2755_v23, %v7570_v46  ;;  %v2782_v22 = vmax.f32 %v2756_v13, %v7582_v43  ;;  %v2783_v12 = vmax.f32 %v2757_v51, %v7629_v41  ;;  %v2784_v52 = vmax.f32 %v2758_v36, %v7664_v11 }
 0x2c5   : > { %3781 = vrot.lane.b32.xlu1 %v7917_v63, %s5354_s18  ;;  %v2848_v38 = vrot.slane %v2781_v29, 6  ;;  %v2849_v61 = vrot.slane %v2782_v22, 6  ;;  %v2851_v5 = vrot.slane %v2783_v12, 6  ;;  %v7961_v29 = vmax.f32 %v2705_v17, %v7629_v41 }
 0x2c7   : > { %v2850_v56 = vsel %vm1074_vm1, %v2848_v38, %v2849_v61  ;;  %v2930_v6 = vsel %vm1074_vm1, -inf, %v2848_v38  ;;  %v2946_v32 = vsel %vm1074_vm1, %v2849_v61, -inf  ;;  %v2852_v38 = vrot.slane %v2784_v52, 6 }
 0x2c8   : > { %v3022_v2 = vrot.slane %v2930_v6, 1  ;;  %v3023_v10 = vrot.slane %v2850_v56, 1  ;;  %v3166_v50 = vrot.slane %v2930_v6, 2  ;;  %v3167_v58 = vrot.slane %v2850_v56, 2 }
 0x2c9   : > { %v3310_v25 = vrot.slane %v2930_v6, 3  ;;  %v3311_v33 = vrot.slane %v2850_v56, 3  ;;  %v3454_v0 = vrot.slane %v2930_v6, 4  ;;  %v3455_v16 = vrot.slane %v2850_v56, 4 }
 0x2ca   : > { %v3024_v54 = vsel %vm1235_vm2, %v3022_v2, %v3023_v10  ;;  %v3025_v23 = vrot.slane %v2946_v32, 1  ;;  %v3169_v13 = vrot.slane %v2946_v32, 2  ;;  %v3168_v40 = vsel %vm1380_vm3, %v3166_v50, %v3167_v58 }
 0x2cb   : > { %v3113_v4 = vmax.f32 %v2930_v6, %v3024_v54  ;;  %v3312_v1 = vsel %vm1525_vm4, %v3310_v25, %v3311_v33  ;;  %v3456_v22 = vsel %vm1670_vm5, %v3454_v0, %v3455_v16  ;;  %v3313_v36 = vrot.slane %v2946_v32, 3  ;;  %v7967_v6 = vpop.permute.xlu0 %3643 }
 0x2cc   : > { %v3026_v51 = vsel %vm1235_vm2, %v3023_v10, %v3025_v23  ;;  %v3170_v2 = vsel %vm1380_vm3, %v3167_v58, %v3169_v13  ;;  %v2931_v20 = vsel %vm1074_vm1, -inf, %v2851_v5  ;;  %8999 = vst [vmem:[#allocation58_spill] sm:$0xff] %v7967_v6  ;;  %v3457_v50 = vrot.slane %v2946_v32, 4  ;;  %v7970_v10 = vpop.permute.xlu1 %3645 }
 0x2cd   : > { %v3257_v61 = vmax.f32 %v3113_v4, %v3168_v40  ;;  %v3114_v12 = vmax.f32 %v2850_v56, %v3026_v51  ;;  %v2853_v25 = vsel %vm1074_vm1, %v2851_v5, %v2852_v38  ;;  %v3027_v54 = vrot.slane %v2931_v20, 1  ;;  %9000 = vst [vmem:[#allocation59_spill] sm:$0xff] %v7970_v10 }
 0x2ce   : > { %v3171_v17 = vrot.slane %v2931_v20, 2  ;;  %v3028_v0 = vrot.slane %v2853_v25, 1  ;;  %v3172_v45 = vrot.slane %v2853_v25, 2  ;;  %v3314_v52 = vsel %vm1525_vm4, %v3311_v33, %v3313_v36 }
 0x2cf   : > { %v3401_v28 = vmax.f32 %v3257_v61, %v3312_v1  ;;  %v3258_v49 = vmax.f32 %v3114_v12, %v3170_v2  ;;  %v3315_v56 = vrot.slane %v2931_v20, 3  ;;  %v3316_v23 = vrot.slane %v2853_v25, 3  ;;  %v7978_v10 = vpop.permute.xlu0 %3855 }
 0x2d0   : > { %v3459_v58 = vrot.slane %v2931_v20, 4  ;;  %v3029_v40 = vsel %vm1235_vm2, %v3027_v54, %v3028_v0  ;;  %v3460_v32 = vrot.slane %v2853_v25, 4  ;;  %v3458_v5 = vsel %vm1670_vm5, %v3455_v16, %v3457_v50 }
 0x2d1   : > { %v3545_v13 = vmax.f32 %v3401_v28, %v3456_v22  ;;  %v3402_v4 = vmax.f32 %v3258_v49, %v3314_v52  ;;  %v3115_v51 = vmax.f32 %v2931_v20, %v3029_v40  ;;  %v3173_v1 = vsel %vm1380_vm3, %v3171_v17, %v3172_v45 }
 0x2d2   : > { %v2947_v61 = vsel %vm1074_vm1, %v2852_v38, -inf  ;;  %v9001_v22 = vmax.f32 %v7933_v62, %v7629_v41  ;;  %v9002_v20 = vmax.f32 %v7936_v15, %v7664_v11  ;;  %v3317_v50 = vsel %vm1525_vm4, %v3315_v56, %v3316_v23 }
 0x2d3   : > { %3879 = vrot.lane.b32.xlu0 %v3545_v13, %s5355_s19  ;;  %v3546_v12 = vmax.f32 %v3402_v4, %v3458_v5  ;;  %v3030_v2 = vrot.slane %v2947_v61, 1  ;;  %v3174_v33 = vrot.slane %v2947_v61, 2  ;;  %v3318_v36 = vrot.slane %v2947_v61, 3  ;;  %v7993_v13 = vpop.permute.xlu1 %3857 }
 0x2d4   : > { %v3259_v28 = vmax.f32 %v3115_v51, %v3173_v1  ;;  %v3462_v49 = vrot.slane %v2947_v61, 4  ;;  %v2785_v16 = vmax.f32 %v9001_v22, %v7721_v26  ;;  %v2786_v38 = vmax.f32 %v9002_v20, %v7748_v31 }
 0x2d5   : > { %3881 = vrot.lane.b32.xlu1 %v3546_v12, %s5355_s19  ;;  %v3461_v54 = vsel %vm1670_vm5, %v3459_v58, %v3460_v32  ;;  %v3031_v17 = vsel %vm1235_vm2, %v3028_v0, %v3030_v2  ;;  %v3175_v52 = vsel %vm1380_vm3, %v3172_v45, %v3174_v33  ;;  %v2734_v5 = vmax.f32 %v2706_v35, %v7664_v11  ;;  %v8003_v35 = vpop.permute.xlu0 %3751 }
 0x2d6   : > { %v3403_v4 = vmax.f32 %v3259_v28, %v3317_v50  ;;  %v3116_v62 = vmax.f32 %v2853_v25, %v3031_v17  ;;  %v2854_v40 = vrot.slane %v2785_v16, 6  ;;  %v3319_v15 = vsel %vm1525_vm4, %v3316_v23, %v3318_v36 }
 0x2d7   : > { %v3463_v51 = vsel %vm1670_vm5, %v3460_v32, %v3462_v49  ;;  %v2855_v1 = vrot.slane %v2786_v38, 6  ;;  %v2761_v56 = vmax.f32 %v7961_v29, %v7721_v26  ;;  %v2762_v45 = vmax.f32 %v2734_v5, %v7748_v31  ;;  %v8008_v20 = vpop.permute.xlu1 %3753 }
 0x2d8   : > { %v3547_v58 = vmax.f32 %v3403_v4, %v3461_v54  ;;  %v3260_v61 = vmax.f32 %v3116_v62, %v3175_v52  ;;  %v2932_v0 = vsel %vm1074_vm1, -inf, %v2854_v40 }
 0x2d9   : > { %v2856_v12 = vsel %vm1074_vm1, %v2854_v40, %v2855_v1  ;;  %v3032_v25 = vrot.slane %v2932_v0, 1  ;;  %v3176_v2 = vrot.slane %v2932_v0, 2  ;;  %v3320_v33 = vrot.slane %v2932_v0, 3 }
 0x2da   : > { %3883 = vrot.lane.b32.xlu0 %v3547_v58, %s5355_s19  ;;  %v3404_v23 = vmax.f32 %v3260_v61, %v3319_v15  ;;  %v3033_v32 = vrot.slane %v2856_v12, 1  ;;  %v3177_v36 = vrot.slane %v2856_v12, 2  ;;  %v3321_v28 = vrot.slane %v2856_v12, 3  ;;  %v8017_v58 = vpop.permute.xlu0 %3647 }
 0x2db   : > { %v3464_v29 = vrot.slane %v2932_v0, 4  ;;  %v3465_v49 = vrot.slane %v2856_v12, 4  ;;  %v2948_v22 = vsel %vm1074_vm1, %v2855_v1, -inf  ;;  %v2787_v16 = vmax.f32 %v2761_v56, %v7755_v7  ;;  %9003 = vst [vmem:[#allocation60_spill] sm:$0xff] %v8017_v58 }
 0x2dc   : > { %v3548_v38 = vmax.f32 %v3404_v23, %v3463_v51  ;;  %v3034_v50 = vsel %vm1235_vm2, %v3032_v25, %v3033_v32  ;;  %v3035_v17 = vrot.slane %v2948_v22, 1  ;;  %v3179_v52 = vrot.slane %v2948_v22, 2 }
 0x2dd   : > { %v3117_v54 = vmax.f32 %v2932_v0, %v3034_v50  ;;  %v3178_v4 = vsel %vm1380_vm3, %v3176_v2, %v3177_v36  ;;  %v3323_v62 = vrot.slane %v2948_v22, 3  ;;  %v2788_v40 = vmax.f32 %v2762_v45, %v7785_v21 }
 0x2de   : > { %3885 = vrot.lane.b32.xlu1 %v3548_v38, %s5355_s19  ;;  %v2857_v5 = vrot.slane %v2787_v16, 6  ;;  %v3322_v1 = vsel %vm1525_vm4, %v3320_v33, %v3321_v28  ;;  %v3466_v56 = vsel %vm1670_vm5, %v3464_v29, %v3465_v49  ;;  %v3036_v51 = vsel %vm1235_vm2, %v3033_v32, %v3035_v17  ;;  %v8024_v33 = vpop.permute.xlu1 %3649 }
 0x2df   : > { %v3261_v15 = vmax.f32 %v3117_v54, %v3178_v4  ;;  %v3118_v61 = vmax.f32 %v2856_v12, %v3036_v51  ;;  %v3180_v0 = vsel %vm1380_vm3, %v3177_v36, %v3179_v52  ;;  %v3467_v25 = vrot.slane %v2948_v22, 4  ;;  %9004 = vst [vmem:[#allocation61_spill] sm:$0xff] %v8024_v33 }
 0x2e0   : > { %v2858_v23 = vrot.slane %v2788_v40, 6  ;;  %v3324_v2 = vsel %vm1525_vm4, %v3321_v28, %v3323_v62  ;;  %v2933_v45 = vsel %vm1074_vm1, -inf, %v2857_v5  ;;  %v2707_v16 = vmax.f32 %v7570_v46, %v7629_v41 }
 0x2e1   : > { %v3405_v38 = vmax.f32 %v3261_v15, %v3322_v1  ;;  %v3262_v29 = vmax.f32 %v3118_v61, %v3180_v0  ;;  %v3037_v50 = vrot.slane %v2933_v45, 1  ;;  %v2708_v12 = vmax.f32 %v7582_v43, %v7664_v11  ;;  %v8035_v43 = vpop.permute.xlu0 %3651 }
 0x2e2   : > { %v2859_v32 = vsel %vm1074_vm1, %v2857_v5, %v2858_v23  ;;  %v3181_v54 = vrot.slane %v2933_v45, 2  ;;  %v3468_v28 = vsel %vm1670_vm5, %v3465_v49, %v3467_v25  ;;  %v3325_v4 = vrot.slane %v2933_v45, 3  ;;  %9005 = vst [vmem:[#allocation62_spill] sm:$0xff] %v8035_v43 }
 0x2e3   : > { %v3549_v36 = vmax.f32 %v3405_v38, %v3466_v56  ;;  %v3038_v22 = vrot.slane %v2859_v32, 1  ;;  %v3182_v17 = vrot.slane %v2859_v32, 2  ;;  %v3406_v52 = vmax.f32 %v3262_v29, %v3324_v2  ;;  %v8038_v38 = vpop.permute.xlu1 %3653 }
 0x2e4   : > { %v2735_v62 = vmax.f32 %v2707_v16, %v7721_v26  ;;  %v3326_v40 = vrot.slane %v2859_v32, 3  ;;  %v2949_v5 = vsel %vm1074_vm1, %v2858_v23, -inf  ;;  %v2736_v15 = vmax.f32 %v2708_v12, %v7748_v31  ;;  %9006 = vst [vmem:[#allocation63_spill] sm:$0xff] %v8038_v38 }
 0x2e5   : > { %3887 = vrot.lane.b32.xlu0 %v3549_v36, %s5355_s19  ;;  %v3039_v46 = vsel %vm1235_vm2, %v3037_v50, %v3038_v22  ;;  %v3550_v1 = vmax.f32 %v3406_v52, %v3468_v28  ;;  %v3469_v51 = vrot.slane %v2933_v45, 4  ;;  %v3183_v61 = vsel %vm1380_vm3, %v3181_v54, %v3182_v17 }
 0x2e6   : > { %v3119_v56 = vmax.f32 %v2933_v45, %v3039_v46  ;;  %v3470_v49 = vrot.slane %v2859_v32, 4  ;;  %v3040_v0 = vrot.slane %v2949_v5, 1  ;;  %v3184_v25 = vrot.slane %v2949_v5, 2  ;;  %v9007_v46 = vld [vmem:[#allocation6_spill] sm:$0xff] }
 0x2e7   : > { %3889 = vrot.lane.b32.xlu1 %v3550_v1, %s5355_s19  ;;  %v2763_v23 = vmax.f32 %v2735_v62, %v7755_v7  ;;  %v2764_v16 = vmax.f32 %v2736_v15, %v7785_v21  ;;  %v3327_v29 = vsel %vm1525_vm4, %v3325_v4, %v3326_v40  ;;  %v3328_v45 = vrot.slane %v2949_v5, 3  ;;  %v8056_v4 = vpop.permute.xlu0 %3655 }
 0x2e8   : > { %v3263_v2 = vmax.f32 %v3119_v56, %v3183_v61  ;;  %v3041_v50 = vsel %vm1235_vm2, %v3038_v22, %v3040_v0  ;;  %v3472_v12 = vrot.slane %v2949_v5, 4  ;;  %v8050_v1 = vsel %vm3947_vm6, %v9007_v46, %v7472_v42  ;;  %9008 = vst [vmem:[#allocation6_spill] sm:$0xff] %v8056_v4  ;;  %v4045_v4 = vld [vmem:[%s8665_s4] sm:$0xff] }
 0x2e9   : > { %v3120_v54 = vmax.f32 %v2859_v32, %v3041_v50  ;;  %v2789_v52 = vmax.f32 %v2763_v23, %v7849_v60  ;;  %v2790_v28 = vmax.f32 %v2764_v16, %v7872_v8  ;;  %v3471_v62 = vsel %vm1670_vm5, %v3469_v51, %v3470_v49  ;;  %v8063_v23 = vpop.permute.xlu1 %3657 }
 0x2ea   : > { %v3407_v36 = vmax.f32 %v3263_v2, %v3327_v29  ;;  %v3185_v15 = vsel %vm1380_vm3, %v3182_v17, %v3184_v25  ;;  %v2709_v22 = vmax.f32 %v7629_v41, %v7721_v26  ;;  %v3329_v0 = vsel %vm1525_vm4, %v3326_v40, %v3328_v45  ;;  %9009 = vst [vmem:[#allocation64_spill] sm:$0xff] %v8063_v23  ;;  %v9010_v45 = vld [vmem:[#allocation4_spill] sm:$0xff] }
 0x2eb   : > { %v3264_v32 = vmax.f32 %v3120_v54, %v3185_v15  ;;  %v2860_v56 = vrot.slane %v2789_v52, 6  ;;  %v2861_v61 = vrot.slane %v2790_v28, 6  ;;  %v3473_v2 = vsel %vm1670_vm5, %v3470_v49, %v3472_v12  ;;  %v8078_v15 = vpop.permute.xlu0 %3859 }
 0x2ec   : > { %v3551_v5 = vmax.f32 %v3407_v36, %v3471_v62  ;;  %v2710_v42 = vmax.f32 %v7664_v11, %v7748_v31  ;;  %v2737_v51 = vmax.f32 %v2709_v22, %v7755_v7  ;;  %v8072_v11 = vsel %vm3947_vm6, %v9010_v45, %v7486_v57 }
 0x2ed   : > { %v3408_v41 = vmax.f32 %v3264_v32, %v3329_v0  ;;  %v2862_v17 = vsel %vm1074_vm1, %v2860_v56, %v2861_v61  ;;  %v2934_v25 = vsel %vm1074_vm1, -inf, %v2860_v56  ;;  %v2950_v16 = vsel %vm1074_vm1, %v2861_v61, -inf }
 0x2ee   : > { %3891 = vrot.lane.b32.xlu0 %v3551_v5, %s5355_s19  ;;  %v3042_v29 = vrot.slane %v2934_v25, 1  ;;  %v3043_v40 = vrot.slane %v2862_v17, 1  ;;  %v3186_v50 = vrot.slane %v2934_v25, 2  ;;  %v3187_v49 = vrot.slane %v2862_v17, 2 }
 0x2ef   : > { %v3552_v12 = vmax.f32 %v3408_v41, %v3473_v2  ;;  %v3330_v36 = vrot.slane %v2934_v25, 3  ;;  %v3331_v54 = vrot.slane %v2862_v17, 3  ;;  %v3045_v28 = vrot.slane %v2950_v16, 1  ;;  %v8084_v41 = vpop.permute.xlu1 %3861 }
 0x2f0   : > { %v3044_v52 = vsel %vm1235_vm2, %v3042_v29, %v3043_v40  ;;  %v2738_v46 = vmax.f32 %v2710_v42, %v7785_v21  ;;  %v2711_v62 = vmax.f32 %v7721_v26, %v7755_v7  ;;  %v3474_v5 = vrot.slane %v2934_v25, 4 }
 0x2f1   : > { %3893 = vrot.lane.b32.xlu1 %v3552_v12, %s5355_s19  ;;  %v3121_v22 = vmax.f32 %v2934_v25, %v3044_v52  ;;  %v3475_v32 = vrot.slane %v2862_v17, 4  ;;  %v3189_v57 = vrot.slane %v2950_v16, 2  ;;  %v3188_v56 = vsel %vm1380_vm3, %v3186_v50, %v3187_v49 }
 0x2f2   : > { %v3046_v61 = vsel %vm1235_vm2, %v3043_v40, %v3045_v28  ;;  %v3333_v0 = vrot.slane %v2950_v16, 3  ;;  %v2765_v2 = vmax.f32 %v2737_v51, %v7849_v60  ;;  %v3332_v26 = vsel %vm1525_vm4, %v3330_v36, %v3331_v54  ;;  %v8097_v36 = vpop.permute.xlu0 %3755 }
 0x2f3   : > { %v3265_v42 = vmax.f32 %v3121_v22, %v3188_v56  ;;  %v3122_v29 = vmax.f32 %v2862_v17, %v3046_v61  ;;  %v3477_v45 = vrot.slane %v2950_v16, 4  ;;  %v3190_v12 = vsel %vm1380_vm3, %v3187_v49, %v3189_v57  ;;  %v9012_v61 = vld [vmem:[#allocation20_spill] sm:$0xff] }
 0x2f4   : > { %v2766_v25 = vmax.f32 %v2738_v46, %v7872_v8  ;;  %v2791_v52 = vmax.f32 %v2765_v2, %v7898_v14  ;;  %v2712_v50 = vmax.f32 %v7748_v31, %v7785_v21  ;;  %v3476_v28 = vsel %vm1670_vm5, %v3474_v5, %v3475_v32  ;;  %v9011_v46 = vld [vmem:[#allocation2_spill] sm:$0xff] }
 0x2f5   : > { %v3409_v40 = vmax.f32 %v3265_v42, %v3332_v26  ;;  %v3266_v51 = vmax.f32 %v3122_v29, %v3190_v12  ;;  %v2739_v23 = vmax.f32 %v2711_v62, %v7849_v60  ;;  %v3334_v22 = vsel %vm1525_vm4, %v3331_v54, %v3333_v0  ;;  %v8112_v42 = vpop.permute.xlu1 %3757 }
 0x2f6   : > { %v2792_v17 = vmax.f32 %v2766_v25, %v7917_v63  ;;  %v2863_v16 = vrot.slane %v2791_v52, 6  ;;  %v2740_v49 = vmax.f32 %v2712_v50, %v7872_v8  ;;  %v8102_v57 = vsel %vm3947_vm6, %v9011_v46, %v7478_v59  ;;  %v8120_v46 = vpop.permute.xlu0 %3863 }
 0x2f7   : > { %v3553_v31 = vmax.f32 %v3409_v40, %v3476_v28  ;;  %v3410_v56 = vmax.f32 %v3266_v51, %v3334_v22  ;;  %v2767_v5 = vmax.f32 %v2739_v23, %v7898_v14  ;;  %v8108_v54 = vsel %vm312_vm0, %v8050_v1, %v9012_v61 }
 0x2f8   : > { %v3478_v62 = vsel %vm1670_vm5, %v3475_v32, %v3477_v45  ;;  %v2864_v0 = vrot.slane %v2792_v17, 6  ;;  %v2935_v2 = vsel %vm1074_vm1, -inf, %v2863_v16  ;;  %v2768_v12 = vmax.f32 %v2740_v49, %v7917_v63  ;;  %v9013_v49 = vld [vmem:[#allocation45_spill] sm:$0xff] }
 0x2f9   : > { %3895 = vrot.lane.b32.xlu0 %v3553_v31, %s5355_s19  ;;  %v3554_v59 = vmax.f32 %v3410_v56, %v3478_v62  ;;  %v3047_v26 = vrot.slane %v2935_v2, 1  ;;  %v3191_v29 = vrot.slane %v2935_v2, 2  ;;  %v3335_v25 = vrot.slane %v2935_v2, 3 }
 0x2fa   : > { %v2865_v23 = vsel %vm1074_vm1, %v2863_v16, %v2864_v0  ;;  %v3479_v52 = vrot.slane %v2935_v2, 4  ;;  %v2951_v1 = vsel %vm1074_vm1, %v2864_v0, -inf  ;;  %v2793_v40 = vmax.f32 %v2767_v5, %v7798_v9 }
 0x2fb   : > { %3897 = vrot.lane.b32.xlu1 %v3554_v59, %s5355_s19  ;;  %v3048_v32 = vrot.slane %v2865_v23, 1  ;;  %v3192_v45 = vrot.slane %v2865_v23, 2  ;;  %v3336_v50 = vrot.slane %v2865_v23, 3  ;;  %v3480_v28 = vrot.slane %v2865_v23, 4 }
 0x2fc   : > { %v3050_v51 = vrot.slane %v2951_v1, 1  ;;  %v3194_v22 = vrot.slane %v2951_v1, 2  ;;  %v3338_v17 = vrot.slane %v2951_v1, 3  ;;  %v8125_v16 = vsel %vm312_vm0, %v8072_v11, %v9013_v49  ;;  %v4046_v11 = vld [vmem:[%s8665_s4 + $0x8] sm:$0xff] }
 0x2fd   : > { %v3049_v31 = vsel %vm1235_vm2, %v3047_v26, %v3048_v32  ;;  %v2713_v56 = vmax.f32 %v7755_v7, %v7849_v60  ;;  %v2714_v61 = vmax.f32 %v7785_v21, %v7872_v8  ;;  %v3193_v62 = vsel %vm1380_vm3, %v3191_v29, %v3192_v45  ;;  %v8140_v26 = vpop.permute.xlu1 %3865 }
 0x2fe   : > { %v3123_v5 = vmax.f32 %v2935_v2, %v3049_v31  ;;  %v3051_v0 = vsel %vm1235_vm2, %v3048_v32, %v3050_v51  ;;  %v3482_v59 = vrot.slane %v2951_v1, 4  ;;  %v3337_v7 = vsel %vm1525_vm4, %v3335_v25, %v3336_v50 }
 0x2ff   : > { %v3124_v49 = vmax.f32 %v2865_v23, %v3051_v0  ;;  %v2794_v21 = vmax.f32 %v2768_v12, %v7833_v27  ;;  %v2866_v2 = vrot.slane %v2793_v40, 6  ;;  %v3481_v32 = vsel %vm1670_vm5, %v3479_v52, %v3480_v28  ;;  %v8150_v12 = vpop.permute.xlu0 %3759 }
 0x300   : > { %v3267_v29 = vmax.f32 %v3123_v5, %v3193_v62  ;;  %v3195_v1 = vsel %vm1380_vm3, %v3192_v45, %v3194_v22  ;;  %v3339_v51 = vsel %vm1525_vm4, %v3336_v50, %v3338_v17  ;;  %v5072_v33 = vpack.c.bf16 %v4046_v11, %v4045_v4 }
 0x301   : > { %v3268_v31 = vmax.f32 %v3124_v49, %v3195_v1  ;;  %v2867_v38 = vrot.slane %v2794_v21, 6  ;;  %v2936_v43 = vsel %vm1074_vm1, -inf, %v2866_v2  ;;  %v3483_v6 = vsel %vm1670_vm5, %v3480_v28, %v3482_v59  ;;  %v8155_v62 = vpop.permute.xlu1 %3761 }
 0x302   : > { %v3411_v58 = vmax.f32 %v3267_v29, %v3337_v7  ;;  %v3052_v25 = vrot.slane %v2936_v43, 1  ;;  %v2741_v23 = vmax.f32 %v2713_v56, %v7898_v14  ;;  %v3196_v5 = vrot.slane %v2936_v43, 2  ;;  %5073 = vmatprep.subr.bf16.mxu1 %v5072_v33 }
 0x303   : > { %v3412_v40 = vmax.f32 %v3268_v31, %v3339_v51  ;;  %v2868_v52 = vsel %vm1074_vm1, %v2866_v2, %v2867_v38  ;;  %v2952_v45 = vsel %vm1074_vm1, %v2867_v38, -inf  ;;  %v2742_v4 = vmax.f32 %v2714_v61, %v7917_v63  ;;  %5075 = vmatpush3.bf16.msra.mxu1 %v5072_v33  ;;  %v8164_v1 = vpop.permute.xlu0 %3867 }
 0x304   : > { %v3555_v50 = vmax.f32 %v3411_v58, %v3481_v32  ;;  %v3053_v22 = vrot.slane %v2868_v52, 1  ;;  %v3197_v17 = vrot.slane %v2868_v52, 2  ;;  %v3340_v0 = vrot.slane %v2936_v43, 3 }
 0x305   : > { %v3556_v28 = vmax.f32 %v3412_v40, %v3483_v6  ;;  %v3055_v56 = vrot.slane %v2952_v45, 1  ;;  %v3199_v59 = vrot.slane %v2952_v45, 2  ;;  %v3341_v7 = vrot.slane %v2868_v52, 3 }
 0x306   : > { %3899 = vrot.lane.b32.xlu0 %v3555_v50, %s5355_s19  ;;  %v3054_v11 = vsel %vm1235_vm2, %v3052_v25, %v3053_v22  ;;  %v3484_v49 = vrot.slane %v2936_v43, 4  ;;  %v3485_v38 = vrot.slane %v2868_v52, 4  ;;  %v3198_v21 = vsel %vm1380_vm3, %v3196_v5, %v3197_v17  ;;  %v8171_v5 = vpop.permute.xlu1 %3869 }
 0x307   : > { %3901 = vrot.lane.b32.xlu1 %v3556_v28, %s5355_s19  ;;  %v3125_v58 = vmax.f32 %v2936_v43, %v3054_v11  ;;  %v3056_v33 = vsel %vm1235_vm2, %v3053_v22, %v3055_v56  ;;  %v3343_v61 = vrot.slane %v2952_v45, 3  ;;  %v3200_v6 = vsel %vm1380_vm3, %v3197_v17, %v3199_v59 }
 0x308   : > { %v3126_v2 = vmax.f32 %v2868_v52, %v3056_v33  ;;  %v3487_v29 = vrot.slane %v2952_v45, 4  ;;  %v2769_v32 = vmax.f32 %v2741_v23, %v7798_v9  ;;  %v2770_v31 = vmax.f32 %v2742_v4, %v7833_v27  ;;  %v9015_v33 = vld [vmem:[#allocation3_spill] sm:$0xff] }
 0x309   : > { %v3269_v51 = vmax.f32 %v3125_v58, %v3198_v21  ;;  %v3342_v43 = vsel %vm1525_vm4, %v3340_v0, %v3341_v7  ;;  %v4013_v52 = vsel %vm4012_vm7, %v8108_v54, %v7915_v55  ;;  %v3486_v23 = vsel %vm1670_vm5, %v3484_v49, %v3485_v38  ;;  %v9014_v21 = vld [vmem:[#allocation44_spill] sm:$0xff] }
 0x30a   : > { %v3270_v25 = vmax.f32 %v3126_v2, %v3200_v6  ;;  %v2869_v40 = vrot.slane %v2769_v32, 6  ;;  %v3344_v50 = vsel %vm1525_vm4, %v3341_v7, %v3343_v61  ;;  %v2870_v22 = vrot.slane %v2770_v31, 6  ;;  %5024 = vmatprep.mubr.msk.f32.mxu1 %vm4047_vm8, %v4013_v52  ;;  %v8196_v32 = vpop.permute.xlu1 %3765 }
 0x30b   : > { %v3413_v45 = vmax.f32 %v3269_v51, %v3342_v43  ;;  %v3488_v4 = vsel %vm1670_vm5, %v3485_v38, %v3487_v29  ;;  %v4014_v0 = vsel %vm4012_vm7, %v8125_v16, %v7929_v18  ;;  %v2715_v59 = vmax.f32 %v7849_v60, %v7898_v14  ;;  %v8185_v38 = vpop.permute.xlu0 %3763  ;;  %v9016_v51 = vld [vmem:[#allocation47_spill] sm:$0xff] }
 0x30c   : > { %v3414_v17 = vmax.f32 %v3270_v25, %v3344_v50  ;;  %v2937_v28 = vsel %vm1074_vm1, -inf, %v2869_v40  ;;  %v2871_v54 = vsel %vm1074_vm1, %v2869_v40, %v2870_v22  ;;  %5025 = vmatmul.mubr.msk.f32.vlgmr.msra.gmra.mrb[0].mxu1 %vm4047_vm8, %v4014_v0  ;;  %v3950_v61 = vsel %vm3947_vm6, %v9015_v33, %v9014_v21 }
 0x30d   : > { %v3557_v55 = vmax.f32 %v3413_v45, %v3486_v23  ;;  %v3057_v56 = vrot.slane %v2937_v28, 1  ;;  %v3058_v7 = vrot.slane %v2871_v54, 1  ;;  %v3201_v49 = vrot.slane %v2937_v28, 2  ;;  %v9017_v23 = vld [vmem:[#allocation25_spill] sm:$0xff] }
 0x30e   : > { %v3558_v11 = vmax.f32 %v3414_v17, %v3488_v4  ;;  %v3202_v58 = vrot.slane %v2871_v54, 2  ;;  %v3345_v18 = vrot.slane %v2937_v28, 3  ;;  %v2953_v16 = vsel %vm1074_vm1, %v2870_v22, -inf }
 0x30f   : > { %3903 = vrot.lane.b32.xlu0 %v3557_v55, %s5355_s19  ;;  %v2716_v60 = vmax.f32 %v7872_v8, %v7917_v63  ;;  %v3059_v14 = vsel %vm1235_vm2, %v3057_v56, %v3058_v7  ;;  %v3346_v2 = vrot.slane %v2871_v54, 3  ;;  %v3060_v6 = vrot.slane %v2953_v16, 1 }
 0x310   : > { %3905 = vrot.lane.b32.xlu1 %v3558_v11, %s5355_s19  ;;  %v3204_v29 = vrot.slane %v2953_v16, 2  ;;  %v3982_v31 = vsel %vm312_vm0, %v3950_v61, %v9016_v51  ;;  %v3127_v43 = vmax.f32 %v2937_v28, %v3059_v14  ;;  %v3489_v25 = vrot.slane %v2937_v28, 4  ;;  %v8209_v11 = vpop.permute.xlu0 %3871 }
 0x311   : > { %v3490_v40 = vrot.slane %v2871_v54, 4  ;;  %v3203_v52 = vsel %vm1380_vm3, %v3201_v49, %v3202_v58  ;;  %v3061_v45 = vsel %vm1235_vm2, %v3058_v7, %v3060_v6  ;;  %v3348_v8 = vrot.slane %v2953_v16, 3 }
 0x312   : > { %v2743_v63 = vmax.f32 %v2715_v59, %v7798_v9  ;;  %v3983_v50 = vsel %vm312_vm0, %v8102_v57, %v9017_v23  ;;  %v3271_v22 = vmax.f32 %v3127_v43, %v3203_v52  ;;  %v3128_v17 = vmax.f32 %v2871_v54, %v3061_v45  ;;  %v9019_v52 = vld [vmem:[#allocation5_spill] sm:$0xff]  ;;  %v9020_v45 = vld [vmem:[#allocation43_spill] sm:$0xff] }
 0x313   : > { %v2744_v4 = vmax.f32 %v2716_v60, %v7833_v27  ;;  %v3347_v0 = vsel %vm1525_vm4, %v3345_v18, %v3346_v2  ;;  %v3205_v28 = vsel %vm1380_vm3, %v3202_v58, %v3204_v29  ;;  %v3492_v55 = vrot.slane %v2953_v16, 4  ;;  %v8218_v58 = vpop.permute.xlu1 %3873 }
 0x314   : > { %v2872_v56 = vrot.slane %v2743_v63, 6  ;;  %v3415_v7 = vmax.f32 %v3271_v22, %v3347_v0  ;;  %v3491_v49 = vsel %vm1670_vm5, %v3489_v25, %v3490_v40  ;;  %v3272_v9 = vmax.f32 %v3128_v17, %v3205_v28  ;;  %v8227_v43 = vpop.permute.xlu0 %3767  ;;  %v9018_v25 = vld [vmem:[#allocation39_spill] sm:$0xff] }
 0x315   : > { %v2873_v59 = vrot.slane %v2744_v4, 6  ;;  %v3349_v21 = vsel %vm1525_vm4, %v3346_v2, %v3348_v8  ;;  %v4015_v27 = vsel %vm4012_vm7, %v3982_v31, %v7978_v10  ;;  %v4016_v54 = vsel %vm4012_vm7, %v3983_v50, %v7993_v13  ;;  %v9021_v8 = vld [vmem:[#allocation7_spill] sm:$0xff] }
 0x316   : > { %v2938_v57 = vsel %vm1074_vm1, -inf, %v2872_v56  ;;  %v3559_v33 = vmax.f32 %v3415_v7, %v3491_v49  ;;  %v3416_v61 = vmax.f32 %v3272_v9, %v3349_v21  ;;  %5027 = vmatprep.mubr.msk.f32.mxu1 %vm4047_vm8, %v4015_v27  ;;  %v3493_v60 = vsel %vm1670_vm5, %v3490_v40, %v3492_v55  ;;  %v9022_v55 = vld [vmem:[#allocation27_spill] sm:$0xff] }
 0x317   : > { %v2874_v18 = vsel %vm1074_vm1, %v2872_v56, %v2873_v59  ;;  %v3062_v16 = vrot.slane %v2938_v57, 1  ;;  %v3206_v2 = vrot.slane %v2938_v57, 2  ;;  %5028 = vmatmul.mubr.msk.f32.gmra.mrb[2].mxu1 %vm4047_vm8, %v4016_v54  ;;  %v3350_v29 = vrot.slane %v2938_v57, 3  ;;  %v8237_v28 = vpop.permute.xlu1 %3769  ;;  %v9023_v56 = vld [vmem:[#allocation11_spill] sm:$0xff] }
 0x318   : > { %v3063_v14 = vrot.slane %v2874_v18, 1  ;;  %v3207_v6 = vrot.slane %v2874_v18, 2  ;;  %3907 = vrot.lane.b32.xlu0 %v3559_v33, %s5355_s19  ;;  %v3560_v10 = vmax.f32 %v3416_v61, %v3493_v60  ;;  %v3351_v51 = vrot.slane %v2874_v18, 3 }
 0x319   : > { %v2954_v31 = vsel %vm1074_vm1, %v2873_v59, -inf  ;;  %v3953_v40 = vsel %vm3947_vm6, %v9019_v52, %v9018_v25  ;;  %v3952_v63 = vsel %vm3947_vm6, %v9021_v8, %v9020_v45  ;;  %v3494_v17 = vrot.slane %v2938_v57, 4  ;;  %v9027_v52 = vld [vmem:[#allocation12_spill] sm:$0xff] }
 0x31a   : > { %v3064_v13 = vsel %vm1235_vm2, %v3062_v16, %v3063_v14  ;;  %3909 = vrot.lane.b32.xlu1 %v3560_v10, %s5355_s19  ;;  %v3065_v50 = vrot.slane %v2954_v31, 1  ;;  %v3208_v22 = vsel %vm1380_vm3, %v3206_v2, %v3207_v6  ;;  %v3495_v4 = vrot.slane %v2874_v18, 4 }
 0x31b   : > { %v3129_v23 = vmax.f32 %v2938_v57, %v3064_v13  ;;  %v3209_v0 = vrot.slane %v2954_v31, 2  ;;  %v3954_v7 = vsel %vm3947_vm6, %v9023_v56, %v9022_v55  ;;  %v3353_v59 = vrot.slane %v2954_v31, 3  ;;  %v9024_v13 = vld [vmem:[#allocation42_spill] sm:$0xff]  ;;  %v8271_v45 = vpop.permute.xlu1 %3773 }
 0x31c   : > { %v3066_v9 = vsel %vm1235_vm2, %v3063_v14, %v3065_v50  ;;  %v3984_v21 = vsel %vm312_vm0, %v3952_v63, %v7695_v24  ;;  %v3985_v27 = vsel %vm312_vm0, %v3953_v40, %v7700_v30  ;;  %v3352_v57 = vsel %vm1525_vm4, %v3350_v29, %v3351_v51  ;;  %v8256_v30 = vpop.permute.xlu0 %3771  ;;  %v9029_v50 = vld [vmem:[#allocation10_spill] sm:$0xff] }
 0x31d   : > { %v3273_v49 = vmax.f32 %v3129_v23, %v3208_v22  ;;  %v3130_v54 = vmax.f32 %v2874_v18, %v3066_v9  ;;  %v3986_v33 = vsel %vm312_vm0, %v3954_v7, %v7751_v34  ;;  %v3210_v16 = vsel %vm1380_vm3, %v3207_v6, %v3209_v0  ;;  %v9025_v18 = vld [vmem:[#allocation8_spill] sm:$0xff]  ;;  %v9028_v23 = vld [vmem:[#allocation41_spill] sm:$0xff]  ;;  %v9031_v0 = vld [vmem:[#allocation14_spill] sm:$0xff] }
 0x31e   : > { %v3497_v60 = vrot.slane %v2954_v31, 4  ;;  %v3496_v2 = vsel %vm1670_vm5, %v3494_v17, %v3495_v4  ;;  %v4017_v10 = vsel %vm4012_vm7, %v3984_v21, %v8078_v15  ;;  %v4018_v24 = vsel %vm4012_vm7, %v3985_v27, %v8084_v41  ;;  %v9026_v31 = vld [vmem:[#allocation49_spill] sm:$0xff]  ;;  %v9030_v17 = vld [vmem:[#allocation46_spill] sm:$0xff]  ;;  %v9035_v21 = vld [vmem:[#allocation16_spill] sm:$0xff] }
 0x31f   : > { %v3417_v61 = vmax.f32 %v3273_v49, %v3352_v57  ;;  %v3274_v14 = vmax.f32 %v3130_v54, %v3210_v16  ;;  %v3955_v29 = vsel %vm3947_vm6, %v9025_v18, %v9024_v13  ;;  %v3354_v25 = vsel %vm1525_vm4, %v3351_v51, %v3353_v59  ;;  %5030 = vmatprep.mubr.msk.f32.mxu1 %vm4047_vm8, %v4017_v10  ;;  %v9033_v49 = vld [vmem:[#allocation13_spill] sm:$0xff]  ;;  %v9036_v54 = vld [vmem:[#allocation48_spill] sm:$0xff] }
 0x320   : > { %v4019_v6 = vsel %vm4012_vm7, %v3986_v33, %v8120_v46  ;;  %v3956_v15 = vsel %vm3947_vm6, %v9027_v52, %v9026_v31  ;;  %v3987_v41 = vsel %vm312_vm0, %v3955_v29, %v7766_v48  ;;  %5031 = vmatmul.mubr.msk.f32.gmra.mrb[4].mxu1 %vm4047_vm8, %v4018_v24  ;;  %v3498_v8 = vsel %vm1670_vm5, %v3495_v4, %v3497_v60  ;;  %v8301_v7 = vpop.permute.xlu1 %3785  ;;  %v9037_v33 = vld [vmem:[#allocation15_spill] sm:$0xff]  ;;  %v9038_v24 = vld [vmem:[#allocation50_spill] sm:$0xff]  ;;  %v9039_v13 = vld [vmem:[#allocation21_spill] sm:$0xff] }
 0x321   : > { %v3561_v34 = vmax.f32 %v3417_v61, %v3496_v2  ;;  %v3418_v40 = vmax.f32 %v3274_v14, %v3354_v25  ;;  %v3988_v51 = vsel %vm312_vm0, %v3956_v15, %v7817_v3  ;;  %5033 = vmatprep.mubr.msk.f32.mxu1 %vm4047_vm8, %v4019_v6  ;;  %v4020_v46 = vsel %vm4012_vm7, %v3987_v41, %v8140_v26  ;;  %v8292_v26 = vpop.permute.xlu0 %3783  ;;  %v9041_v25 = vld [vmem:[#allocation18_spill] sm:$0xff] }
 0x322   : > { %v4021_v48 = vsel %vm4012_vm7, %v3988_v51, %v8164_v1  ;;  %v3957_v22 = vsel %vm3947_vm6, %v9029_v50, %v9028_v23  ;;  %v3958_v3 = vsel %vm3947_vm6, %v9031_v0, %v9030_v17  ;;  %v3961_v61 = vsel %vm3947_vm6, %v9037_v33, %v9036_v54  ;;  %v9043_v51 = vld [vmem:[#allocation23_spill] sm:$0xff]  ;;  %v9046_v0 = vld [vmem:[#allocation54_spill] sm:$0xff]  ;;  %v9053_v54 = vld [vmem:[#allocation29_spill] sm:$0xff] }
 0x323   : > { %3911 = vrot.lane.b32.xlu0 %v3561_v34, %s5355_s19  ;;  %v3562_v63 = vmax.f32 %v3418_v40, %v3498_v8  ;;  %v3989_v4 = vsel %vm312_vm0, %v3957_v22, %v7827_v19  ;;  %v3990_v1 = vsel %vm312_vm0, %v3958_v3, %v7863_v39  ;;  %v9032_v19 = vld [vmem:[#allocation19_spill] sm:$0xff]  ;;  %v9034_v39 = vld [vmem:[#allocation24_spill] sm:$0xff]  ;;  %v3993_v16 = vsel %vm312_vm0, %v3961_v61, %v7953_v44 }
 0x324   : > { %5034 = vmatmul.mubr.msk.f32.gmra.mrb[6].mxu1 %vm4047_vm8, %v4020_v46  ;;  %v4022_v55 = vsel %vm4012_vm7, %v3989_v4, %v8171_v5  ;;  %v4023_v56 = vsel %vm4012_vm7, %v3990_v1, %v8209_v11  ;;  %v3959_v9 = vsel %vm3947_vm6, %v9033_v49, %v9032_v19  ;;  %v3960_v27 = vsel %vm3947_vm6, %v9035_v21, %v9034_v39  ;;  %v9040_v34 = vld [vmem:[#allocation51_spill] sm:$0xff]  ;;  %v9042_v40 = vld [vmem:[#allocation52_spill] sm:$0xff]  ;;  %v9049_v19 = vld [vmem:[#allocation26_spill] sm:$0xff] }
 0x325   : > { %3913 = vrot.lane.b32.xlu1 %v3562_v63, %s5355_s19  ;;  %5036 = vmatprep.mubr.msk.f32.mxu1 %vm4047_vm8, %v4021_v48  ;;  %v3991_v59 = vsel %vm312_vm0, %v3959_v9, %v7870_v37  ;;  %v3992_v11 = vsel %vm312_vm0, %v3960_v27, %v7951_v53  ;;  %v3962_v44 = vsel %vm3947_vm6, %v9039_v13, %v9038_v24  ;;  %v9045_v48 = vld [vmem:[#allocation22_spill] sm:$0xff]  ;;  %v9047_v3 = vld [vmem:[#allocation28_spill] sm:$0xff]  ;;  %v9056_v13 = vld [vmem:[#allocation31_spill] sm:$0xff] }
 0x326   : > { %v4024_v5 = vsel %vm4012_vm7, %v3991_v59, %v8218_v58  ;;  %v3994_v18 = vsel %vm312_vm0, %v3962_v44, %v8003_v35  ;;  %v3963_v6 = vsel %vm3947_vm6, %v9041_v25, %v9040_v34  ;;  %v3964_v35 = vsel %vm3947_vm6, %v9043_v51, %v9042_v40  ;;  %v9050_v39 = vld [vmem:[#allocation56_spill] sm:$0xff]  ;;  %v9051_v21 = vld [vmem:[#allocation30_spill] sm:$0xff] }
 0x327   : > { %v3995_v52 = vsel %vm312_vm0, %v3963_v6, %v8008_v20  ;;  %v3996_v8 = vsel %vm312_vm0, %v3964_v35, %v8097_v36  ;;  %v9044_v20 = vld [vmem:[#allocation53_spill] sm:$0xff]  ;;  %v3966_v36 = vsel %vm3947_vm6, %v9047_v3, %v9046_v0  ;;  %v9055_v24 = vld [vmem:[#allocation40_spill] sm:$0xff]  ;;  %v9058_v25 = vld [vmem:[#allocation34_spill] sm:$0xff] }
 0x328   : > { %5037 = vmatmul.mubr.msk.f32.gmra.mrb[8].mxu1 %vm4047_vm8, %v4022_v55  ;;  %v3965_v23 = vsel %vm3947_vm6, %v9045_v48, %v9044_v20  ;;  %v3998_v4 = vsel %vm312_vm0, %v3966_v36, %v8150_v12  ;;  %v3968_v12 = vsel %vm3947_vm6, %v9051_v21, %v9050_v39  ;;  %v3971_v44 = vsel %vm3947_vm6, %v9056_v13, %v9055_v24  ;;  %v9059_v6 = vld [vmem:[#allocation59_spill] sm:$0xff]  ;;  %v9063_v20 = vld [vmem:[#allocation61_spill] sm:$0xff]  ;;  %v9065_v3 = vld [vmem:[#allocation62_spill] sm:$0xff] }
 0x329   : > { %5039 = vmatprep.mubr.msk.f32.mxu1 %vm4047_vm8, %v4023_v56  ;;  %v3997_v50 = vsel %vm312_vm0, %v3965_v23, %v8112_v42  ;;  %v9048_v56 = vld [vmem:[#allocation55_spill] sm:$0xff]  ;;  %v4000_v27 = vsel %vm312_vm0, %v3968_v12, %v8185_v38  ;;  %v9066_v36 = vld [vmem:[#allocation38_spill] sm:$0xff]  ;;  %v9070_v39 = vld [vmem:[#allocation17_spill] sm:$0xff] }
 0x32a   : > { %v3967_v49 = vsel %vm3947_vm6, %v9049_v19, %v9048_v56  ;;  %v9064_v48 = vld [vmem:[#allocation35_spill] sm:$0xff]  ;;  %v9068_v56 = vld [vmem:[#allocation37_spill] sm:$0xff] }
 0x32b   : > { %v3999_v42 = vsel %vm312_vm0, %v3967_v49, %v8155_v62 }
 0x32c   : > { %5040 = vmatmul.mubr.msk.f32.gmra.mrb[10].mxu1 %vm4047_vm8, %v4024_v5 }
 0x32d   : > { %v3876_v57 = vpop.permute.xlu0 %3875 }
 0x32e   : > { %v4025_v37 = vsel %vm4012_vm7, %v3992_v11, %v3876_v57  ;;  %v9052_v57 = vld [vmem:[#allocation57_spill] sm:$0xff] }
 0x32f   : > { %v3878_v60 = vpop.permute.xlu1 %3877  ;;  %5042 = vmatprep.mubr.msk.f32.mxu1 %vm4047_vm8, %v4025_v37  ;;  %v3969_v62 = vsel %vm3947_vm6, %v9053_v54, %v9052_v57 }
 0x330   : > { %v4026_v58 = vsel %vm4012_vm7, %v3993_v16, %v3878_v60  ;;  %v4001_v33 = vsel %vm312_vm0, %v3969_v62, %v8196_v32  ;;  %v9054_v16 = vld [vmem:[#allocation32_spill] sm:$0xff]  ;;  %v4003_v32 = vsel %vm312_vm0, %v3971_v44, %v8237_v28 }
 0x331   : > { %5043 = vmatmul.mubr.msk.f32.gmra.mrb[12].mxu1 %vm4047_vm8, %v4026_v58  ;;  %v8327_v53 = vpop.permute.xlu0 %3775  ;;  %v3970_v38 = vsel %vm3947_vm6, %v9054_v16, %v7885_v47  ;;  %v9057_v47 = vld [vmem:[#allocation58_spill] sm:$0xff] }
 0x332   : > { %v4002_v60 = vsel %vm312_vm0, %v3970_v38, %v8227_v43  ;;  %v3972_v43 = vsel %vm3947_vm6, %v9058_v25, %v9057_v47 }
 0x333   : > { %v8329_v2 = vpop.permute.xlu1 %3777 }
 0x335   : > { %v8331_v14 = vpop.permute.xlu0 %3779 }
 0x337   : > { %v8333_v10 = vpop.permute.xlu1 %3781 }
 0x345   : > { %v3880_v29 = vpop.permute.xlu0 %3879 }
 0x346   : > { %v4027_v31 = vsel %vm4012_vm7, %v3994_v18, %v3880_v29 }
 0x347   : > { %5045 = vmatprep.mubr.msk.f32.mxu1 %vm4047_vm8, %v4027_v31  ;;  %v3882_v15 = vpop.permute.xlu1 %3881  ;;  %v9060_v31 = vld [vmem:[#allocation33_spill] sm:$0xff] }
 0x348   : > { %v4028_v41 = vsel %vm4012_vm7, %v3995_v52, %v3882_v15  ;;  %v3973_v52 = vsel %vm3947_vm6, %v9060_v31, %v9059_v6  ;;  %v4004_v15 = vsel %vm312_vm0, %v3972_v43, %v8256_v30  ;;  %v3975_v30 = vsel %vm3947_vm6, %v9064_v48, %v9063_v20 }
 0x349   : > { %5046 = vmatmul.mubr.msk.f32.gmra.mrb[14].mxu1 %vm4047_vm8, %v4028_v41  ;;  %v4005_v28 = vsel %vm312_vm0, %v3973_v52, %v8271_v45 }
 0x34c   : > { %v3884_v46 = vpop.permute.xlu0 %3883 }
 0x34d   : > { %v4029_v63 = vsel %vm4012_vm7, %v3996_v8, %v3884_v46  ;;  %v9061_v8 = vld [vmem:[#allocation60_spill] sm:$0xff] }
 0x34e   : > { %5048 = vmatprep.mubr.msk.f32.mxu1 %vm4047_vm8, %v4029_v63  ;;  %v9062_v46 = vld [vmem:[#allocation36_spill] sm:$0xff] }
 0x34f   : > { %v3974_v63 = vsel %vm3947_vm6, %v9062_v46, %v9061_v8 }
 0x350   : > { %v3886_v22 = vpop.permute.xlu1 %3885  ;;  %v4006_v45 = vsel %vm312_vm0, %v3974_v63, %v8327_v53 }
 0x351   : > { %v4030_v17 = vsel %vm4012_vm7, %v3997_v50, %v3886_v22  ;;  %v4007_v50 = vsel %vm312_vm0, %v3975_v30, %v8329_v2 }
 0x352   : > { %5049 = vmatmul.mubr.msk.f32.gmra.mrb[16].mxu1 %vm4047_vm8, %v4030_v17 }
 0x357   : > { %v3888_v1 = vpop.permute.xlu0 %3887 }
 0x358   : > { %v4031_v55 = vsel %vm4012_vm7, %v3998_v4, %v3888_v1  ;;  %v3976_v4 = vsel %vm3947_vm6, %v9066_v36, %v9065_v3 }
 0x359   : > { %5051 = vmatprep.mubr.msk.f32.mxu1 %vm4047_vm8, %v4031_v55  ;;  %v3890_v9 = vpop.permute.xlu1 %3889  ;;  %v4008_v53 = vsel %vm312_vm0, %v3976_v4, %v8331_v14  ;;  %v9067_v55 = vld [vmem:[#allocation63_spill] sm:$0xff] }
 0x35a   : > { %v4032_v59 = vsel %vm4012_vm7, %v3999_v42, %v3890_v9  ;;  %v3977_v2 = vsel %vm3947_vm6, %v9068_v56, %v9067_v55 }
 0x35b   : > { %5052 = vmatmul.mubr.msk.f32.gmra.mrb[18].mxu1 %vm4047_vm8, %v4032_v59  ;;  %v4009_v49 = vsel %vm312_vm0, %v3977_v2, %v8333_v10  ;;  %v9069_v59 = vld [vmem:[#allocation6_spill] sm:$0xff] }
 0x35c   : > { %v3978_v14 = vsel %vm3947_vm6, %v9070_v39, %v9069_v59 }
 0x35d   : > { %v4010_v21 = vsel %vm312_vm0, %v3978_v14, %v8292_v26  ;;  %v8464_v26 = vld [vmem:[%s8666_s5] ss:$0 sm:$0xff] }
 0x360   : > { %v3892_v5 = vpop.permute.xlu0 %3891 }
 0x361   : > { %v4033_v11 = vsel %vm4012_vm7, %v4000_v27, %v3892_v5  ;;  %v9071_v5 = vld [vmem:[#allocation64_spill] sm:$0xff] }
 0x362   : > { %5054 = vmatprep.mubr.msk.f32.mxu1 %vm4047_vm8, %v4033_v11  ;;  %v9072_v11 = vld [vmem:[#allocation9_spill] sm:$0xff] }
 0x363   : > { %v3894_v61 = vpop.permute.xlu1 %3893  ;;  %v3979_v10 = vsel %vm3947_vm6, %v9072_v11, %v9071_v5 }
 0x364   : > { %v4034_v37 = vsel %vm4012_vm7, %v4001_v33, %v3894_v61  ;;  %v4011_v57 = vsel %vm312_vm0, %v3979_v10, %v8301_v7  ;;  %v8469_v61 = vld [vmem:[%s8667_s6] ss:$0 sm:$0xff] }
 0x365   : > { %5055 = vmatmul.mubr.msk.f32.gmra.mrb[20].mxu1 %vm4047_vm8, %v4034_v37 }
 0x36b   : > { %v3896_v58 = vpop.permute.xlu0 %3895 }
 0x36c   : > { %v4035_v18 = vsel %vm4012_vm7, %v4002_v60, %v3896_v58 }
 0x36d   : > { %5057 = vmatprep.mubr.msk.f32.mxu1 %vm4047_vm8, %v4035_v18  ;;  %v3898_v29 = vpop.permute.xlu1 %3897 }
 0x36e   : > { %v4036_v34 = vsel %vm4012_vm7, %v4003_v32, %v3898_v29 }
 0x36f   : > { %5058 = vmatmul.mubr.msk.f32.gmra.mrb[22].mxu1 %vm4047_vm8, %v4036_v34 }
 0x378   : > { %v3900_v41 = vpop.permute.xlu0 %3899 }
 0x379   : > { %v4037_v40 = vsel %vm4012_vm7, %v4004_v15, %v3900_v41  ;;  %v3902_v51 = vpop.permute.xlu1 %3901 }
 0x37a   : > { %5060 = vmatprep.mubr.msk.f32.mxu1 %vm4047_vm8, %v4037_v40  ;;  %v4038_v35 = vsel %vm4012_vm7, %v4005_v28, %v3902_v51 }
 0x37b   : > { %5061 = vmatmul.mubr.msk.f32.gmra.mrb[24].mxu1 %vm4047_vm8, %v4038_v35 }
 0x381   : > { %v3904_v23 = vpop.permute.xlu0 %3903 }
 0x382   : > { %v4039_v22 = vsel %vm4012_vm7, %v4006_v45, %v3904_v23  ;;  %v3906_v17 = vpop.permute.xlu1 %3905 }
 0x383   : > { %5063 = vmatprep.mubr.msk.f32.mxu1 %vm4047_vm8, %v4039_v22  ;;  %v4040_v0 = vsel %vm4012_vm7, %v4007_v50, %v3906_v17 }
 0x384   : > { %5064 = vmatmul.mubr.msk.f32.gmra.mrb[26].mxu1 %vm4047_vm8, %v4040_v0 }
 0x38a   : > { %v3908_v1 = vpop.permute.xlu0 %3907 }
 0x38b   : > { %v4041_v19 = vsel %vm4012_vm7, %v4008_v53, %v3908_v1 }
 0x38c   : > { %5066 = vmatprep.mubr.msk.f32.mxu1 %vm4047_vm8, %v4041_v19  ;;  %v3910_v42 = vpop.permute.xlu1 %3909 }
 0x38d   : > { %v4042_v9 = vsel %vm4012_vm7, %v4009_v49, %v3910_v42 }
 0x38e   : > { %5067 = vmatmul.mubr.msk.f32.gmra.mrb[28].mxu1 %vm4047_vm8, %v4042_v9 }
 0x395   : > { %v3912_v12 = vpop.permute.xlu0 %3911 }
 0x396   : > { %v4043_v27 = vsel %vm4012_vm7, %v4010_v21, %v3912_v12 }
 0x397   : > { %5069 = vmatprep.mubr.msk.f32.mxu1 %vm4047_vm8, %v4043_v27  ;;  %v3914_v54 = vpop.permute.xlu1 %3913 }
 0x398   : > { %v4044_v62 = vsel %vm4012_vm7, %v4011_v57, %v3914_v54 }
 0x399   : > { %5070 = vmatmul.mubr.msk.f32.gmra.mrb[30].mxu1 %vm4047_vm8, %v4044_v62 }
 0x3df   : > { %v5026_v33 = vpop.f32.mrb[0].mxu1 }
 0x3e0   : > { %v4377_v37 = vmul.f32 %v5026_v33, %v8464_v26  ;;  %v4210_v16 = vpop.f32.mrb[1].mxu1 }
 0x3e1   : > { %v4376_v7 = vmul.f32 %v8464_v26, %v4210_v16 }
 0x3e2   : > { %v4416_v38 = vadd.f32 %v8469_v61, %v4377_v37 }
 0x3e3   : > { %v4415_v60 = vadd.f32 %v8469_v61, %v4376_v7 }
 0x3e4   : > { %v4868_v58 = vmul.f32 -1.442695, %v4416_v38 }
 0x3e5   : > { %v4867_v24 = vmul.f32 -1.442695, %v4415_v60 }
 0x3e6   : > { %5215 = vpow2.f32 %v4868_v58 }
 0x3e7   : > { %5217 = vpow2.f32 %v4867_v24 }
 0x3ea   : > { %v5029_v13 = vpop.f32.mrb[2].mxu1 }
 0x3eb   : > { %v4379_v44 = vmul.f32 %v5029_v13, %v8464_v26  ;;  %v4220_v18 = vpop.f32.mrb[3].mxu1 }
 0x3ec   : > { %v4378_v32 = vmul.f32 %v8464_v26, %v4220_v18 }
 0x3ed   : > { %v8478_v29 = vadd.f32 %v8469_v61, %v4379_v44 }
 0x3ee   : > { %v8481_v34 = vadd.f32 %v8469_v61, %v4378_v32 }
 0x3ef   : > { %v4870_v47 = vmul.f32 -1.442695, %v8478_v29 }
 0x3f0   : > { %v5216_v25 = vpop.eup %5215  ;;  %v4869_v43 = vmul.f32 -1.442695, %v8481_v34 }
 0x3f1   : > { %v5218_v6 = vpop.eup %5217  ;;  %v4544_v31 = vadd.f32 1.0, %v5216_v25  ;;  %5219 = vpow2.f32 %v4870_v47 }
 0x3f2   : > { %v4543_v52 = vadd.f32 1.0, %v5218_v6  ;;  %5221 = vpow2.f32 %v4869_v43 }
 0x3f3   : > { %5223 = vrcp.f32 %v4544_v31  ;;  %v5032_v15 = vpop.f32.mrb[4].mxu1 }
 0x3f4   : > { %5225 = vrcp.f32 %v4543_v52  ;;  %v4381_v41 = vmul.f32 %v5032_v15, %v8464_v26  ;;  %v4230_v28 = vpop.f32.mrb[5].mxu1 }
 0x3f5   : > { %v4380_v40 = vmul.f32 %v8464_v26, %v4230_v28 }
 0x3f6   : > { %v8488_v51 = vadd.f32 %v8469_v61, %v4381_v41 }
 0x3f7   : > { %v8491_v35 = vadd.f32 %v8469_v61, %v4380_v40  ;;  %v5035_v8 = vpop.f32.mrb[6].mxu1 }
 0x3f8   : > { %v4872_v46 = vmul.f32 -1.442695, %v8488_v51  ;;  %v4383_v63 = vmul.f32 %v5035_v8, %v8464_v26  ;;  %v4240_v20 = vpop.f32.mrb[7].mxu1 }
 0x3f9   : > { %v4871_v48 = vmul.f32 -1.442695, %v8491_v35  ;;  %v4382_v30 = vmul.f32 %v8464_v26, %v4240_v20 }
 0x3fa   : > { %5227 = vpow2.f32 %v4872_v46  ;;  %v8498_v23 = vadd.f32 %v8469_v61, %v4383_v63 }
 0x3fb   : > { %v5220_v45 = vpop.eup %5219  ;;  %5229 = vpow2.f32 %v4871_v48  ;;  %v8501_v17 = vadd.f32 %v8469_v61, %v4382_v30  ;;  %v5038_v0 = vpop.f32.mrb[8].mxu1 }
 0x3fc   : > { %v5222_v50 = vpop.eup %5221  ;;  %v4546_v22 = vadd.f32 1.0, %v5220_v45  ;;  %v4874_v4 = vmul.f32 -1.442695, %v8498_v23  ;;  %v4385_v53 = vmul.f32 %v5038_v0, %v8464_v26  ;;  %v4250_v1 = vpop.f32.mrb[9].mxu1 }
 0x3fd   : > { %v5224_v3 = vpop.eup %5223  ;;  %v4545_v36 = vadd.f32 1.0, %v5222_v50  ;;  %v4873_v2 = vmul.f32 -1.442695, %v8501_v17  ;;  %v4384_v19 = vmul.f32 %v8464_v26, %v4250_v1 }
 0x3fe   : > { %v5226_v55 = vpop.eup %5225  ;;  %v4640_v56 = vmul.f32 %v5224_v3, %v4416_v38  ;;  %5231 = vrcp.f32 %v4546_v22  ;;  %v8515_v42 = vadd.f32 %v8469_v61, %v4385_v53 }
 0x3ff   : > { %v4639_v49 = vmul.f32 %v5226_v55, %v4415_v60  ;;  %5233 = vrcp.f32 %v4545_v36  ;;  %v8520_v9 = vadd.f32 %v8469_v61, %v4384_v19  ;;  %v5041_v59 = vpop.f32.mrb[10].mxu1 }
 0x400   : > { %4672 = vst.msk [vmem:[%s8508_s10 + $0x8] sm:$0xff] %vm4047_vm8, %v4640_v56  ;;  %5235 = vpow2.f32 %v4874_v4  ;;  %v4876_v39 = vmul.f32 -1.442695, %v8515_v42  ;;  %v4387_v14 = vmul.f32 %v5041_v59, %v8464_v26  ;;  %v4260_v21 = vpop.f32.mrb[11].mxu1 }
 0x401   : > { %4671 = vst.msk [vmem:[%s8508_s10] sm:$0xff] %vm4047_vm8, %v4639_v49  ;;  %5237 = vpow2.f32 %v4873_v2  ;;  %v4875_v12 = vmul.f32 -1.442695, %v8520_v9  ;;  %v4386_v27 = vmul.f32 %v8464_v26, %v4260_v21 }
 0x402   : > { %5239 = vpow2.f32 %v4876_v39  ;;  %v8529_v5 = vadd.f32 %v8469_v61, %v4387_v14 }
 0x403   : > { %5241 = vpow2.f32 %v4875_v12  ;;  %v8532_v11 = vadd.f32 %v8469_v61, %v4386_v27 }
 0x404   : > { %v5044_v10 = vpop.f32.mrb[12].mxu1  ;;  %v5228_v57 = vpop.eup %5227  ;;  %v4878_v54 = vmul.f32 -1.442695, %v8529_v5 }
 0x405   : > { %v4389_v62 = vmul.f32 %v5044_v10, %v8464_v26  ;;  %v4270_v33 = vpop.f32.mrb[13].mxu1  ;;  %v5230_v37 = vpop.eup %5229  ;;  %v4548_v16 = vadd.f32 1.0, %v5228_v57  ;;  %v4877_v7 = vmul.f32 -1.442695, %v8532_v11 }
 0x406   : > { %v4388_v38 = vmul.f32 %v8464_v26, %v4270_v33  ;;  %v4547_v60 = vadd.f32 1.0, %v5230_v37  ;;  %5243 = vpow2.f32 %v4878_v54 }
 0x407   : > { %v8539_v58 = vadd.f32 %v8469_v61, %v4389_v62  ;;  %5245 = vrcp.f32 %v4548_v16 }
 0x408   : > { %v5232_v24 = vpop.eup %5231  ;;  %v8542_v13 = vadd.f32 %v8469_v61, %v4388_v38  ;;  %5247 = vrcp.f32 %v4547_v60 }
 0x409   : > { %v5234_v44 = vpop.eup %5233  ;;  %v4642_v18 = vmul.f32 %v5232_v24, %v8478_v29  ;;  %v4880_v32 = vmul.f32 -1.442695, %v8539_v58  ;;  %5249 = vpow2.f32 %v4877_v7 }
 0x40a   : > { %v5236_v47 = vpop.eup %5235  ;;  %v4641_v25 = vmul.f32 %v5234_v44, %v8481_v34  ;;  %v4879_v43 = vmul.f32 -1.442695, %v8542_v13 }
 0x40b   : > { %v5238_v6 = vpop.eup %5237  ;;  %4674 = vst.msk [vmem:[%s8508_s10 + $0x18] sm:$0xff] %vm4047_vm8, %v4642_v18  ;;  %v4550_v31 = vadd.f32 1.0, %v5236_v47  ;;  %5251 = vpow2.f32 %v4880_v32 }
 0x40c   : > { %4673 = vst.msk [vmem:[%s8508_s10 + $0x10] sm:$0xff] %vm4047_vm8, %v4641_v25  ;;  %v4549_v52 = vadd.f32 1.0, %v5238_v6  ;;  %5253 = vpow2.f32 %v4879_v43  ;;  %v5240_v15 = vpop.eup %5239 }
 0x40d   : > { %5255 = vrcp.f32 %v4550_v31  ;;  %v5242_v29 = vpop.eup %5241  ;;  %v4552_v41 = vadd.f32 1.0, %v5240_v15 }
 0x40e   : > { %5257 = vrcp.f32 %v4549_v52  ;;  %v4551_v34 = vadd.f32 1.0, %v5242_v29 }
 0x40f   : > { %5259 = vrcp.f32 %v4552_v41 }
 0x410   : > { %v5244_v28 = vpop.eup %5243  ;;  %5261 = vrcp.f32 %v4551_v34 }
 0x411   : > { %v5246_v40 = vpop.eup %5245  ;;  %v4554_v8 = vadd.f32 1.0, %v5244_v28 }
 0x412   : > { %v5248_v46 = vpop.eup %5247  ;;  %v4644_v63 = vmul.f32 %v5246_v40, %v8488_v51 }
 0x413   : > { %v5250_v20 = vpop.eup %5249  ;;  %v4643_v48 = vmul.f32 %v5248_v46, %v8491_v35  ;;  %5263 = vrcp.f32 %v4554_v8 }
 0x414   : > { %4676 = vst.msk [vmem:[%s8508_s10 + $0x28] sm:$0xff] %vm4047_vm8, %v4644_v63  ;;  %v4553_v45 = vadd.f32 1.0, %v5250_v20 }
 0x415   : > { %v5252_v30 = vpop.eup %5251  ;;  %4675 = vst.msk [vmem:[%s8508_s10 + $0x20] sm:$0xff] %vm4047_vm8, %v4643_v48 }
 0x416   : > { %v5254_v50 = vpop.eup %5253  ;;  %v4556_v22 = vadd.f32 1.0, %v5252_v30  ;;  %5265 = vrcp.f32 %v4553_v45 }
 0x417   : > { %v5256_v0 = vpop.eup %5255  ;;  %v4555_v3 = vadd.f32 1.0, %v5254_v50 }
 0x418   : > { %v5258_v36 = vpop.eup %5257  ;;  %v4646_v51 = vmul.f32 %v5256_v0, %v8498_v23  ;;  %5267 = vrcp.f32 %v4556_v22 }
 0x419   : > { %v4645_v35 = vmul.f32 %v5258_v36, %v8501_v17  ;;  %5269 = vrcp.f32 %v4555_v3  ;;  %v5260_v4 = vpop.eup %5259 }
 0x41a   : > { %4678 = vst.msk [vmem:[%s8508_s10 + $0x38] sm:$0xff] %vm4047_vm8, %v4646_v51  ;;  %v5262_v1 = vpop.eup %5261  ;;  %v4648_v55 = vmul.f32 %v5260_v4, %v8515_v42 }
 0x41b   : > { %4677 = vst.msk [vmem:[%s8508_s10 + $0x30] sm:$0xff] %vm4047_vm8, %v4645_v35  ;;  %v4647_v23 = vmul.f32 %v5262_v1, %v8520_v9 }
 0x41c   : > { %v5047_v53 = vpop.f32.mrb[14].mxu1  ;;  %4680 = vst.msk [vmem:[%s8508_s10 + $0x48] sm:$0xff] %vm4047_vm8, %v4648_v55 }
 0x41d   : > { %v4391_v56 = vmul.f32 %v5047_v53, %v8464_v26  ;;  %v4280_v2 = vpop.f32.mrb[15].mxu1  ;;  %v5264_v49 = vpop.eup %5263  ;;  %4679 = vst.msk [vmem:[%s8508_s10 + $0x40] sm:$0xff] %vm4047_vm8, %v4647_v23 }
 0x41e   : > { %v4390_v19 = vmul.f32 %v8464_v26, %v4280_v2  ;;  %v4650_v39 = vmul.f32 %v5264_v49, %v8529_v5 }
 0x41f   : > { %v4430_v17 = vadd.f32 %v8469_v61, %v4391_v56 }
 0x420   : > { %v4429_v59 = vadd.f32 %v8469_v61, %v4390_v19  ;;  %v5266_v21 = vpop.eup %5265  ;;  %4682 = vst.msk [vmem:[%s8508_s10 + $0x58] sm:$0xff] %vm4047_vm8, %v4650_v39 }
 0x421   : > { %v4882_v42 = vmul.f32 -1.442695, %v4430_v17  ;;  %v4649_v12 = vmul.f32 %v5266_v21, %v8532_v11 }
 0x422   : > { %v4881_v14 = vmul.f32 -1.442695, %v4429_v59  ;;  %v5268_v9 = vpop.eup %5267 }
 0x423   : > { %5271 = vpow2.f32 %v4882_v42  ;;  %v5270_v27 = vpop.eup %5269  ;;  %v4652_v10 = vmul.f32 %v5268_v9, %v8539_v58  ;;  %4681 = vst.msk [vmem:[%s8508_s10 + $0x50] sm:$0xff] %vm4047_vm8, %v4649_v12 }
 0x424   : > { %5273 = vpow2.f32 %v4881_v14  ;;  %v4651_v5 = vmul.f32 %v5270_v27, %v8542_v13 }
 0x425   : > { %v5050_v57 = vpop.f32.mrb[16].mxu1  ;;  %4684 = vst.msk [vmem:[%s8508_s10 + $0x68] sm:$0xff] %vm4047_vm8, %v4652_v10 }
 0x426   : > { %v4393_v54 = vmul.f32 %v5050_v57, %v8464_v26  ;;  %v4290_v62 = vpop.f32.mrb[17].mxu1  ;;  %4683 = vst.msk [vmem:[%s8508_s10 + $0x60] sm:$0xff] %vm4047_vm8, %v4651_v5 }
 0x427   : > { %v4392_v33 = vmul.f32 %v8464_v26, %v4290_v62 }
 0x428   : > { %v4432_v11 = vadd.f32 %v8469_v61, %v4393_v54 }
 0x429   : > { %v4431_v37 = vadd.f32 %v8469_v61, %v4392_v33 }
 0x42a   : > { %v4884_v16 = vmul.f32 -1.442695, %v4432_v11 }
 0x42b   : > { %v4883_v7 = vmul.f32 -1.442695, %v4431_v37 }
 0x42c   : > { %5275 = vpow2.f32 %v4884_v16 }
 0x42d   : > { %v5272_v38 = vpop.eup %5271  ;;  %5277 = vpow2.f32 %v4883_v7 }
 0x42e   : > { %v5274_v60 = vpop.eup %5273  ;;  %v4558_v58 = vadd.f32 1.0, %v5272_v38  ;;  %v5053_v13 = vpop.f32.mrb[18].mxu1 }
 0x42f   : > { %v4557_v24 = vadd.f32 1.0, %v5274_v60  ;;  %v4395_v44 = vmul.f32 %v5053_v13, %v8464_v26  ;;  %v4300_v18 = vpop.f32.mrb[19].mxu1 }
 0x430   : > { %5279 = vrcp.f32 %v4558_v58  ;;  %v4394_v32 = vmul.f32 %v8464_v26, %v4300_v18 }
 0x431   : > { %5281 = vrcp.f32 %v4557_v24  ;;  %v4434_v47 = vadd.f32 %v8469_v61, %v4395_v44 }
 0x432   : > { %v4433_v25 = vadd.f32 %v8469_v61, %v4394_v32 }
 0x433   : > { %v4886_v43 = vmul.f32 -1.442695, %v4434_v47 }
 0x434   : > { %v4885_v6 = vmul.f32 -1.442695, %v4433_v25 }
 0x435   : > { %5283 = vpow2.f32 %v4886_v43 }
 0x436   : > { %v5276_v31 = vpop.eup %5275  ;;  %5285 = vpow2.f32 %v4885_v6 }
 0x437   : > { %v5278_v52 = vpop.eup %5277  ;;  %v4560_v15 = vadd.f32 1.0, %v5276_v31 }
 0x438   : > { %v4559_v29 = vadd.f32 1.0, %v5278_v52  ;;  %v5056_v41 = vpop.f32.mrb[20].mxu1 }
 0x439   : > { %5287 = vrcp.f32 %v4560_v15  ;;  %v4397_v28 = vmul.f32 %v5056_v41, %v8464_v26  ;;  %v4310_v40 = vpop.f32.mrb[21].mxu1 }
 0x43a   : > { %v5280_v34 = vpop.eup %5279  ;;  %5289 = vrcp.f32 %v4559_v29  ;;  %v4396_v63 = vmul.f32 %v8464_v26, %v4310_v40 }
 0x43b   : > { %v5282_v8 = vpop.eup %5281  ;;  %v4654_v46 = vmul.f32 %v5280_v34, %v4430_v17  ;;  %v4436_v48 = vadd.f32 %v8469_v61, %v4397_v28 }
 0x43c   : > { %v4653_v20 = vmul.f32 %v5282_v8, %v4429_v59  ;;  %v4435_v30 = vadd.f32 %v8469_v61, %v4396_v63 }
 0x43d   : > { %4686 = vst.msk [vmem:[%s8508_s10 + $0x78] sm:$0xff] %vm4047_vm8, %v4654_v46  ;;  %v4888_v45 = vmul.f32 -1.442695, %v4436_v48 }
 0x43e   : > { %4685 = vst.msk [vmem:[%s8508_s10 + $0x70] sm:$0xff] %vm4047_vm8, %v4653_v20  ;;  %v4887_v50 = vmul.f32 -1.442695, %v4435_v30 }
 0x43f   : > { %v5284_v22 = vpop.eup %5283  ;;  %5291 = vpow2.f32 %v4888_v45 }
 0x440   : > { %v5286_v0 = vpop.eup %5285  ;;  %v4562_v3 = vadd.f32 1.0, %v5284_v22  ;;  %5293 = vpow2.f32 %v4887_v50 }
 0x441   : > { %v4561_v36 = vadd.f32 1.0, %v5286_v0 }
 0x442   : > { %5295 = vrcp.f32 %v4562_v3  ;;  %v5059_v35 = vpop.f32.mrb[22].mxu1 }
 0x443   : > { %v5288_v51 = vpop.eup %5287  ;;  %5297 = vrcp.f32 %v4561_v36  ;;  %v4399_v1 = vmul.f32 %v5059_v35, %v8464_v26  ;;  %v4320_v55 = vpop.f32.mrb[23].mxu1 }
 0x444   : > { %v5290_v4 = vpop.eup %5289  ;;  %v4656_v53 = vmul.f32 %v5288_v51, %v4432_v11  ;;  %v4398_v2 = vmul.f32 %v8464_v26, %v4320_v55 }
 0x445   : > { %v4655_v56 = vmul.f32 %v5290_v4, %v4431_v37  ;;  %v4438_v23 = vadd.f32 %v8469_v61, %v4399_v1 }
 0x446   : > { %4688 = vst.msk [vmem:[%s8508_s10 + $0x88] sm:$0xff] %vm4047_vm8, %v4656_v53  ;;  %v4437_v19 = vadd.f32 %v8469_v61, %v4398_v2 }
 0x447   : > { %4687 = vst.msk [vmem:[%s8508_s10 + $0x80] sm:$0xff] %vm4047_vm8, %v4655_v56  ;;  %v4890_v17 = vmul.f32 -1.442695, %v4438_v23 }
 0x448   : > { %v4889_v49 = vmul.f32 -1.442695, %v4437_v19 }
 0x449   : > { %v5292_v59 = vpop.eup %5291  ;;  %5299 = vpow2.f32 %v4890_v17 }
 0x44a   : > { %v5294_v39 = vpop.eup %5293  ;;  %v4564_v42 = vadd.f32 1.0, %v5292_v59  ;;  %5301 = vpow2.f32 %v4889_v49 }
 0x44b   : > { %v4563_v14 = vadd.f32 1.0, %v5294_v39 }
 0x44c   : > { %v5296_v21 = vpop.eup %5295  ;;  %5303 = vrcp.f32 %v4564_v42 }
 0x44d   : > { %v5298_v9 = vpop.eup %5297  ;;  %v4658_v12 = vmul.f32 %v5296_v21, %v4434_v47  ;;  %5305 = vrcp.f32 %v4563_v14 }
 0x44e   : > { %v4657_v27 = vmul.f32 %v5298_v9, %v4433_v25  ;;  %v5062_v10 = vpop.f32.mrb[24].mxu1 }
 0x44f   : > { %4690 = vst.msk [vmem:[%s8508_s10 + $0x98] sm:$0xff] %vm4047_vm8, %v4658_v12  ;;  %v4401_v57 = vmul.f32 %v5062_v10, %v8464_v26  ;;  %v4330_v5 = vpop.f32.mrb[25].mxu1 }
 0x450   : > { %4689 = vst.msk [vmem:[%s8508_s10 + $0x90] sm:$0xff] %vm4047_vm8, %v4657_v27  ;;  %v4400_v54 = vmul.f32 %v8464_v26, %v4330_v5 }
 0x451   : > { %v4440_v62 = vadd.f32 %v8469_v61, %v4401_v57 }
 0x452   : > { %v8618_v33 = vadd.f32 %v8469_v61, %v4400_v54 }
 0x453   : > { %v5300_v11 = vpop.eup %5299  ;;  %v4892_v37 = vmul.f32 -1.442695, %v4440_v62 }
 0x454   : > { %v5302_v16 = vpop.eup %5301  ;;  %v4566_v7 = vadd.f32 1.0, %v5300_v11  ;;  %v4891_v38 = vmul.f32 -1.442695, %v8618_v33 }
 0x455   : > { %v4565_v60 = vadd.f32 1.0, %v5302_v16  ;;  %5307 = vpow2.f32 %v4892_v37 }
 0x456   : > { %v5304_v58 = vpop.eup %5303  ;;  %5309 = vrcp.f32 %v4566_v7 }
 0x457   : > { %v5306_v24 = vpop.eup %5305  ;;  %v4660_v13 = vmul.f32 %v5304_v58, %v4436_v48  ;;  %5311 = vrcp.f32 %v4565_v60  ;;  %v5065_v44 = vpop.f32.mrb[26].mxu1 }
 0x458   : > { %v4659_v18 = vmul.f32 %v5306_v24, %v4435_v30  ;;  %5313 = vpow2.f32 %v4891_v38  ;;  %v4403_v32 = vmul.f32 %v5065_v44, %v8464_v26  ;;  %v4340_v47 = vpop.f32.mrb[27].mxu1 }
 0x459   : > { %4692 = vst.msk [vmem:[%s8508_s10 + $0xa8] sm:$0xff] %vm4047_vm8, %v4660_v13  ;;  %v4402_v25 = vmul.f32 %v8464_v26, %v4340_v47 }
 0x45a   : > { %4691 = vst.msk [vmem:[%s8508_s10 + $0xa0] sm:$0xff] %vm4047_vm8, %v4659_v18  ;;  %v4442_v43 = vadd.f32 %v8469_v61, %v4403_v32 }
 0x45b   : > { %v4441_v6 = vadd.f32 %v8469_v61, %v4402_v25 }
 0x45c   : > { %v4894_v31 = vmul.f32 -1.442695, %v4442_v43 }
 0x45d   : > { %v4893_v52 = vmul.f32 -1.442695, %v4441_v6 }
 0x45e   : > { %5315 = vpow2.f32 %v4894_v31 }
 0x45f   : > { %v5308_v15 = vpop.eup %5307  ;;  %5317 = vpow2.f32 %v4893_v52 }
 0x460   : > { %v5310_v29 = vpop.eup %5309  ;;  %v4568_v41 = vadd.f32 1.0, %v5308_v15 }
 0x461   : > { %v5312_v34 = vpop.eup %5311  ;;  %v4662_v28 = vmul.f32 %v5310_v29, %v4438_v23  ;;  %v5068_v46 = vpop.f32.mrb[28].mxu1 }
 0x462   : > { %v5314_v40 = vpop.eup %5313  ;;  %v4661_v8 = vmul.f32 %v5312_v34, %v4437_v19  ;;  %5319 = vrcp.f32 %v4568_v41  ;;  %v4405_v20 = vmul.f32 %v5068_v46, %v8464_v26  ;;  %v4350_v48 = vpop.f32.mrb[29].mxu1 }
 0x463   : > { %4694 = vst.msk [vmem:[%s8508_s10 + $0xb8] sm:$0xff] %vm4047_vm8, %v4662_v28  ;;  %v4567_v63 = vadd.f32 1.0, %v5314_v40  ;;  %v4404_v30 = vmul.f32 %v8464_v26, %v4350_v48 }
 0x464   : > { %4693 = vst.msk [vmem:[%s8508_s10 + $0xb0] sm:$0xff] %vm4047_vm8, %v4661_v8  ;;  %v4444_v45 = vadd.f32 %v8469_v61, %v4405_v20 }
 0x465   : > { %5321 = vrcp.f32 %v4567_v63  ;;  %v4443_v50 = vadd.f32 %v8469_v61, %v4404_v30 }
 0x466   : > { %v4896_v22 = vmul.f32 -1.442695, %v4444_v45 }
 0x467   : > { %v4895_v3 = vmul.f32 -1.442695, %v4443_v50 }
 0x468   : > { %v5316_v0 = vpop.eup %5315  ;;  %5323 = vpow2.f32 %v4896_v22 }
 0x469   : > { %v5318_v36 = vpop.eup %5317  ;;  %v4570_v51 = vadd.f32 1.0, %v5316_v0  ;;  %5325 = vpow2.f32 %v4895_v3 }
 0x46a   : > { %v4569_v35 = vadd.f32 1.0, %v5318_v36 }
 0x46b   : > { %5327 = vrcp.f32 %v4570_v51 }
 0x46c   : > { %v5320_v4 = vpop.eup %5319  ;;  %5329 = vrcp.f32 %v4569_v35  ;;  %v5071_v1 = vpop.f32.mrb[30].mxu1 }
 0x46d   : > { %v4664_v53 = vmul.f32 %v5320_v4, %v4440_v62  ;;  %v4407_v55 = vmul.f32 %v5071_v1, %v8464_v26  ;;  %v4360_v56 = vpop.f32.mrb[31].mxu1 }
 0x46e   : > { %v4406_v23 = vmul.f32 %v8464_v26, %v4360_v56 }
 0x46f   : > { %v5322_v2 = vpop.eup %5321  ;;  %4696 = vst.msk [vmem:[%s8508_s10 + $0xc8] sm:$0xff] %vm4047_vm8, %v4664_v53  ;;  %v4446_v17 = vadd.f32 %v8469_v61, %v4407_v55 }
 0x470   : > { %v4663_v19 = vmul.f32 %v5322_v2, %v8618_v33  ;;  %v4445_v49 = vadd.f32 %v8469_v61, %v4406_v23 }
 0x471   : > { %v4898_v59 = vmul.f32 -1.442695, %v4446_v17 }
 0x472   : > { %4695 = vst.msk [vmem:[%s8508_s10 + $0xc0] sm:$0xff] %vm4047_vm8, %v4663_v19  ;;  %v5324_v39 = vpop.eup %5323  ;;  %v4897_v42 = vmul.f32 -1.442695, %v4445_v49 }
 0x473   : > { %v5326_v14 = vpop.eup %5325  ;;  %v4572_v21 = vadd.f32 1.0, %v5324_v39  ;;  %5331 = vpow2.f32 %v4898_v59 }
 0x474   : > { %v4571_v12 = vadd.f32 1.0, %v5326_v14  ;;  %5333 = vpow2.f32 %v4897_v42 }
 0x475   : > { %v5328_v9 = vpop.eup %5327  ;;  %5335 = vrcp.f32 %v4572_v21 }
 0x476   : > { %v5330_v26 = vpop.eup %5329  ;;  %v4666_v27 = vmul.f32 %v5328_v9, %v4442_v43  ;;  %5337 = vrcp.f32 %v4571_v12 }
 0x477   : > { %v4665_v10 = vmul.f32 %v5330_v26, %v4441_v6 }
 0x478   : > { %4698 = vst.msk [vmem:[%s8508_s10 + $0xd8] sm:$0xff] %vm4047_vm8, %v4666_v27 }
 0x479   : > { %4697 = vst.msk [vmem:[%s8508_s10 + $0xd0] sm:$0xff] %vm4047_vm8, %v4665_v10 }
 0x47d   : > { %v5332_v61 = vpop.eup %5331 }
 0x47e   : > { %v5334_v57 = vpop.eup %5333  ;;  %v4574_v5 = vadd.f32 1.0, %v5332_v61 }
 0x47f   : > { %v5336_v54 = vpop.eup %5335  ;;  %v4573_v62 = vadd.f32 1.0, %v5334_v57 }
 0x480   : > { %v5338_v33 = vpop.eup %5337  ;;  %v4668_v11 = vmul.f32 %v5336_v54, %v4444_v45  ;;  %5339 = vrcp.f32 %v4574_v5 }
 0x481   : > { %v4667_v37 = vmul.f32 %v5338_v33, %v4443_v50  ;;  %5341 = vrcp.f32 %v4573_v62 }
 0x482   : > { %4700 = vst.msk [vmem:[%s8508_s10 + $0xe8] sm:$0xff] %vm4047_vm8, %v4668_v11 }
 0x483   : > { %4699 = vst.msk [vmem:[%s8508_s10 + $0xe0] sm:$0xff] %vm4047_vm8, %v4667_v37 }
 0x48a   : > { %v5340_v16 = vpop.eup %5339 }
 0x48b   : > { %v5342_v7 = vpop.eup %5341  ;;  %v4670_v38 = vmul.f32 %v5340_v16, %v4446_v17 }
 0x48c   : > { %v4669_v60 = vmul.f32 %v5342_v7, %v4445_v49 }
 0x48d   : > { %4702 = vst.msk [vmem:[%s8508_s10 + $0xf8] sm:$0xff] %vm4047_vm8, %v4670_v38 }
 0x48e   : > { %4701 = vst.msk [vmem:[%s8508_s10 + $0xf0] sm:$0xff] %vm4047_vm8, %v4669_v60 }
 0x48f PF: > { %s17_s24 = sadd.s32 1, %s5351_s24  }
 0x490   : > { %p14_p4 = scmp.ge.s32.totalorder %s17_s24, 4  }
 0x492   :  { %16 = sbr.rel (!%p14_p4) target bundleno = 1 (0x1), region = 78 }

</bundles_post_ra>
